<compile_context>
chip_gen: v7x
topology: tpu7x:2x2x1
jax: 0.10.0
libtpu: 0.0.40
codegen_flags: <defaults>
</compile_context>

<pallas_src>
import math

import numpy as np

import jax
import jax.numpy as jnp
from jax import lax
from jax.experimental import pallas as pl
from jax.experimental.pallas import tpu as pltpu

# ---------------- model config (small, deterministic) ----------------
B = 2          # batch
L = 8          # decoder sequence length
S = 12         # cross (encoder) sequence length
D_MODEL = 32   # d_model
N_HEADS = 4
D_HEAD = D_MODEL // N_HEADS
D_FF = 64
C_OUT = 4
MOVING_AVG = 5     # odd kernel for series_decomp
N_LAYERS = 2
EPS = 1e-5
ATTN_SCALE = 1.0 / math.sqrt(D_HEAD)


# ============================ fused Pallas kernel ============================

def _decoder_kernel(x_ref, cross_ref, trend_ref, avg_ref,
                    wqkv_ref, bqkv_ref, wo_ref, bo_ref,
                    conv1_ref, conv2_ref, w3_ref,
                    projw_ref, tail_ref, out_ref):
    """Whole Decoder forward (all batch elements, all layers), fully VMEM-resident."""
    f32 = jnp.float32

    # ---- hoisted constants: built ONCE, reused by every layer / batch element ----
    A = avg_ref[...].astype(f32)                           # (L, L) moving-average matrix
    gamma = tail_ref[:, 0:D_MODEL].astype(f32)             # (1, D)
    beta = tail_ref[:, D_MODEL:2 * D_MODEL].astype(f32)    # (1, D)
    projb = tail_ref[:, 2 * D_MODEL:].astype(f32)          # (1, C_OUT)
    projw = projw_ref[...].astype(f32)                     # (D, C_OUT)
    row = lax.broadcasted_iota(jnp.int32, (N_HEADS, L, L), 1)
    col = lax.broadcasted_iota(jnp.int32, (N_HEADS, L, L), 2)
    causal_allow = col <= row                               # (H, L, L)

    def split_heads(z):
        # (T, H*Dh) -> (H, T, Dh): heads (contiguous 8-lane slices) become a leading
        # batched-matmul axis.  Static slices + stack only (no 3-D transpose/reshape).
        return jnp.stack([z[:, h * D_HEAD:(h + 1) * D_HEAD] for h in range(N_HEADS)],
                         axis=0)

    # ---- multi-head full attention (AttentionLayer + FullAttention) ----
    def mha(q_in, kv_in, wqkv, bqkv, wo, bo, *, allow, self_attn):
        Lq = q_in.shape[0]
        if self_attn:
            # one fused (L, 3D) projection
            qkv = jnp.dot(q_in, wqkv, preferred_element_type=f32) + bqkv
            q = qkv[:, 0:D_MODEL]
            k = qkv[:, D_MODEL:2 * D_MODEL]
            v = qkv[:, 2 * D_MODEL:]
        else:
            # q from decoder stream, fused (S, 2D) K/V from encoder output
            q = jnp.dot(q_in, wqkv[:, 0:D_MODEL], preferred_element_type=f32) \
                + bqkv[:, 0:D_MODEL]
            kv = jnp.dot(kv_in, wqkv[:, D_MODEL:], preferred_element_type=f32) \
                + bqkv[:, D_MODEL:]
            k = kv[:, 0:D_MODEL]
            v = kv[:, D_MODEL:]
        qh, kh, vh = split_heads(q), split_heads(k), split_heads(v)   # (H, T, Dh)
        # ONE batched QK^T, ONE softmax, ONE PV for all heads (no per-head Python loop).
        s = jnp.einsum('hqd,hkd->hqk', qh, kh,
                       preferred_element_type=f32) * ATTN_SCALE       # (H, Lq, Sk)
        if allow is not None:
            s = jnp.where(allow, s, -jnp.inf)      # diagonal always unmasked -> no NaN
        m = jnp.max(s, axis=-1, keepdims=True)
        p = jnp.exp(s - m)
        denom = jnp.sum(p, axis=-1, keepdims=True)
        p = p * pl.reciprocal(denom, approx=True)  # divide -> EUP slot
        o = jnp.einsum('hqk,hkd->hqd', p, vh, preferred_element_type=f32)   # (H, Lq, Dh)
        o = jnp.concatenate([o[h] for h in range(N_HEADS)], axis=-1)        # (Lq, D)
        return jnp.dot(o, wo, preferred_element_type=f32) + bo

    # ---- series_decomp: AvgPool1d(stride=1, replicate pad) folded into one matmul ----
    def series_decomp(z):
        mean = jnp.dot(A, z, preferred_element_type=f32)   # (L, D)
        return z - mean, mean

    # ---- Conv1d(d_model -> c_out, k=3, padding=1, circular, bias=False), taps fused ----
    def residual_trend_proj(rt, w3):
        prev = pltpu.roll(rt, shift=1, axis=0)             # prev[i] = rt[i-1] (wrap)
        nxt = pltpu.roll(rt, shift=L - 1, axis=0)          # nxt[i]  = rt[i+1] (wrap)
        cat = jnp.concatenate([prev, rt, nxt], axis=-1)    # (L, 3D)
        return jnp.dot(cat, w3, preferred_element_type=f32)           # (L, C_OUT)

    # ---- static unroll over batch: no serial grid steps; the two independent chains
    #      interleave in the VLIW schedule ----
    for b in range(B):
        x = x_ref[b].astype(f32)          # (L, D)
        cross = cross_ref[b].astype(f32)  # (S, D)
        trend = trend_ref[b].astype(f32)  # (L, C_OUT)

        for layer in range(N_LAYERS):
            si, ci = 2 * layer, 2 * layer + 1   # stacked weight indices: self / cross
            # self attention block (dropout = identity in eval)
            x = x + mha(x, x, wqkv_ref[si], bqkv_ref[si], wo_ref[si], bo_ref[si],
                        allow=causal_allow, self_attn=True)
            x, t1 = series_decomp(x)
            # cross attention block
            x = x + mha(x, cross, wqkv_ref[ci], bqkv_ref[ci], wo_ref[ci], bo_ref[ci],
                        allow=None, self_attn=False)
            x, t2 = series_decomp(x)
            # feed-forward via 1x1 convs (feature-dim matmuls), bias=False, fused
            y = jnp.maximum(jnp.dot(x, conv1_ref[layer], preferred_element_type=f32), 0.0)
            y = jnp.dot(y, conv2_ref[layer], preferred_element_type=f32)
            x, t3 = series_decomp(x + y)
            # residual trend projection + accumulation (Decoder: trend += residual_trend)
            trend = trend + residual_trend_proj(t1 + t2 + t3, w3_ref[layer])

        # ---- my_Layernorm: LayerNorm over features, subtract per-sequence mean ----
        mu = jnp.mean(x, axis=-1, keepdims=True)
        var = jnp.mean((x - mu) ** 2, axis=-1, keepdims=True)
        xhat = (x - mu) * lax.rsqrt(var + EPS)
        xhat = xhat * gamma + beta
        xhat = xhat - jnp.mean(xhat, axis=0, keepdims=True)

        # ---- final nn.Linear(d_model, c_out); packed lane store [x_proj | trend] ----
        xo = jnp.dot(xhat, projw, preferred_element_type=f32) + projb
        out_ref[b] = jnp.concatenate([xo, trend], axis=-1).astype(out_ref.dtype)


# ============================ wrapper ============================

def _build_avg_matrix(length):
    """(L, L) matrix so that A @ z == AvgPool1d(k=MOVING_AVG, stride=1, replicate pad)(z)."""
    half = (MOVING_AVG - 1) // 2
    mat = np.zeros((length, length), np.float32)
    for i in range(length):
        for t in range(-half, half + 1):
            j = min(max(i + t, 0), length - 1)
            mat[i, j] += 1.0 / MOVING_AVG
    return jnp.asarray(mat)


def decoder_forward(params, x, cross, trend):
    Bn, Ln, _ = x.shape
    Cn = trend.shape[2]
    avg = _build_avg_matrix(Ln)

    vmem = pl.BlockSpec(memory_space=pltpu.MemorySpace.VMEM)   # whole array, VMEM-resident

    out = pl.pallas_call(
        _decoder_kernel,
        out_shape=jax.ShapeDtypeStruct((Bn, Ln, 2 * Cn), x.dtype),
        # no grid: everything fits in VMEM; batch is unrolled inside the kernel
        in_specs=[vmem] * 13,
        out_specs=vmem,
    )(x, cross, trend, avg,
      params["wqkv"], params["bqkv"], params["wo"], params["bo"],
      params["conv1_w"], params["conv2_w"], params["proj_w3"],
      params["proj_w"], params["norm_tail"])

    return out[:, :, :Cn], out[:, :, Cn:]


# ============================ parameter init ============================

def init_params(key):
    keys = iter(jax.random.split(key, 16))

    def nrm(shape, scale=0.1):
        return (scale * jax.random.normal(next(keys), shape)).astype(jnp.float32)

    norm_gamma = jnp.ones((1, D_MODEL), jnp.float32)
    norm_beta = jnp.zeros((1, D_MODEL), jnp.float32)
    proj_b = nrm((1, C_OUT))

    return dict(
        # attention weights stacked on a leading axis: index 2*layer = self-attn,
        # 2*layer+1 = cross-attn (fused [wq | wk | wv] columns).
        wqkv=nrm((2 * N_LAYERS, D_MODEL, 3 * D_MODEL)),
        bqkv=nrm((2 * N_LAYERS, 1, 3 * D_MODEL)),
        wo=nrm((2 * N_LAYERS, D_MODEL, D_MODEL)),
        bo=nrm((2 * N_LAYERS, 1, D_MODEL)),
        conv1_w=nrm((N_LAYERS, D_MODEL, D_FF)),    # Conv1d(d_model->d_ff, k=1, bias=False)
        conv2_w=nrm((N_LAYERS, D_FF, D_MODEL)),    # Conv1d(d_ff->d_model, k=1, bias=False)
        # Conv1d(d_model->c_out, k=3, circular, bias=False), taps pre-fused per layer:
        # rows [0:D] multiply in[i-1] (PyTorch weight[:, :, 0]), [D:2D] -> in[i],
        # [2D:3D] -> in[i+1].  Verify this mapping when importing trained weights.
        proj_w3=nrm((N_LAYERS, 3 * D_MODEL, C_OUT)),
        proj_w=nrm((D_MODEL, C_OUT)),              # final nn.Linear(d_model, c_out)
        # packed [gamma | beta | proj_b] row -> single lane-dense DMA stream
        norm_tail=jnp.concatenate([norm_gamma, norm_beta, proj_b], axis=-1),
    )


# ============================ main ============================

if __name__ == "__main__":
    key = jax.random.PRNGKey(0)
    kp, kx, kc, kt = jax.random.split(key, 4)
    params = init_params(kp)
    x = jax.random.normal(kx, (B, L, D_MODEL), jnp.float32)       # decoder input
    cross = jax.random.normal(kc, (B, S, D_MODEL), jnp.float32)   # encoder output
    trend = jax.random.normal(kt, (B, L, C_OUT), jnp.float32)     # initial trend

    fwd = jax.jit(decoder_forward)
    out_x, out_trend = fwd(params, x, cross, trend)
    jax.block_until_ready((out_x, out_trend))

    assert out_x.shape == (B, L, C_OUT), out_x.shape
    assert out_trend.shape == (B, L, C_OUT), out_trend.shape
    assert jnp.all(jnp.isfinite(out_x)) and jnp.all(jnp.isfinite(out_trend))
    print("KERNEL_OK")
</pallas_src>

<mosaic_0001>
module attributes {stable_mosaic.version = 11 : i64} {
  func.func @_decoder_kernel(%arg0: memref<2x8x32xf32, #tpu.memory_space<vmem>>, %arg1: memref<2x12x32xf32, #tpu.memory_space<vmem>>, %arg2: memref<2x8x4xf32, #tpu.memory_space<vmem>>, %arg3: memref<8x8xf32, #tpu.memory_space<vmem>>, %arg4: memref<4x32x96xf32, #tpu.memory_space<vmem>>, %arg5: memref<4x1x96xf32, #tpu.memory_space<vmem>>, %arg6: memref<4x32x32xf32, #tpu.memory_space<vmem>>, %arg7: memref<4x1x32xf32, #tpu.memory_space<vmem>>, %arg8: memref<2x32x64xf32, #tpu.memory_space<vmem>>, %arg9: memref<2x64x32xf32, #tpu.memory_space<vmem>>, %arg10: memref<2x96x4xf32, #tpu.memory_space<vmem>>, %arg11: memref<32x4xf32, #tpu.memory_space<vmem>>, %arg12: memref<1x68xf32, #tpu.memory_space<vmem>>, %arg13: memref<2x8x8xf32, #tpu.memory_space<vmem>>) attributes {dimension_semantics = [], scalar_prefetch = 0 : i64, scratch_operands = 0 : i64, tpu.core_type = #tpu.core_type<tc>} {
    %c0 = arith.constant 0 : index
    %c0_0 = arith.constant 0 : index
    %0 = vector.load %arg3[%c0, %c0_0] : memref<8x8xf32, #tpu.memory_space<vmem>>, vector<8x8xf32>
    %c0_1 = arith.constant 0 : index
    %c0_2 = arith.constant 0 : index
    %1 = vector.load %arg12[%c0_1, %c0_2] : memref<1x68xf32, #tpu.memory_space<vmem>>, vector<1x32xf32>
    %c0_3 = arith.constant 0 : index
    %c32 = arith.constant 32 : index
    %2 = vector.load %arg12[%c0_3, %c32] : memref<1x68xf32, #tpu.memory_space<vmem>>, vector<1x32xf32>
    %c0_4 = arith.constant 0 : index
    %c64 = arith.constant 64 : index
    %3 = vector.load %arg12[%c0_4, %c64] : memref<1x68xf32, #tpu.memory_space<vmem>>, vector<1x4xf32>
    %c0_5 = arith.constant 0 : index
    %c0_6 = arith.constant 0 : index
    %4 = vector.load %arg11[%c0_5, %c0_6] : memref<32x4xf32, #tpu.memory_space<vmem>>, vector<32x4xf32>
    %5 = tpu.iota {dimensions = array<i32: 1>} : vector<4x8x8xi32>
    %6 = tpu.iota {dimensions = array<i32: 2>} : vector<4x8x8xi32>
    %7 = arith.cmpi sle, %6, %5 : vector<4x8x8xi32>
    %c0_7 = arith.constant 0 : index
    %c0_8 = arith.constant 0 : index
    %c0_9 = arith.constant 0 : index
    %8 = vector.load %arg0[%c0_7, %c0_8, %c0_9] : memref<2x8x32xf32, #tpu.memory_space<vmem>>, vector<1x8x32xf32>
    %9 = vector.shape_cast %8 : vector<1x8x32xf32> to vector<8x32xf32>
    %c0_10 = arith.constant 0 : index
    %c0_11 = arith.constant 0 : index
    %c0_12 = arith.constant 0 : index
    %10 = vector.load %arg1[%c0_10, %c0_11, %c0_12] : memref<2x12x32xf32, #tpu.memory_space<vmem>>, vector<1x12x32xf32>
    %11 = vector.shape_cast %10 : vector<1x12x32xf32> to vector<12x32xf32>
    %c0_13 = arith.constant 0 : index
    %c0_14 = arith.constant 0 : index
    %c0_15 = arith.constant 0 : index
    %12 = vector.load %arg2[%c0_13, %c0_14, %c0_15] : memref<2x8x4xf32, #tpu.memory_space<vmem>>, vector<1x8x4xf32>
    %13 = vector.shape_cast %12 : vector<1x8x4xf32> to vector<8x4xf32>
    %c0_16 = arith.constant 0 : index
    %c0_17 = arith.constant 0 : index
    %c0_18 = arith.constant 0 : index
    %14 = vector.load %arg4[%c0_16, %c0_17, %c0_18] : memref<4x32x96xf32, #tpu.memory_space<vmem>>, vector<1x32x96xf32>
    %15 = vector.shape_cast %14 : vector<1x32x96xf32> to vector<32x96xf32>
    %c0_19 = arith.constant 0 : index
    %c0_20 = arith.constant 0 : index
    %c0_21 = arith.constant 0 : index
    %16 = vector.load %arg5[%c0_19, %c0_20, %c0_21] : memref<4x1x96xf32, #tpu.memory_space<vmem>>, vector<1x1x96xf32>
    %17 = vector.shape_cast %16 : vector<1x1x96xf32> to vector<1x96xf32>
    %c0_22 = arith.constant 0 : index
    %c0_23 = arith.constant 0 : index
    %c0_24 = arith.constant 0 : index
    %18 = vector.load %arg6[%c0_22, %c0_23, %c0_24] : memref<4x32x32xf32, #tpu.memory_space<vmem>>, vector<1x32x32xf32>
    %19 = vector.shape_cast %18 : vector<1x32x32xf32> to vector<32x32xf32>
    %c0_25 = arith.constant 0 : index
    %c0_26 = arith.constant 0 : index
    %c0_27 = arith.constant 0 : index
    %20 = vector.load %arg7[%c0_25, %c0_26, %c0_27] : memref<4x1x32xf32, #tpu.memory_space<vmem>>, vector<1x1x32xf32>
    %21 = vector.shape_cast %20 : vector<1x1x32xf32> to vector<1x32xf32>
    %cst = arith.constant dense<0.000000e+00> : vector<8x96xf32>
    %22 = tpu.matmul %9, %15, %cst {dimension_numbers = #tpu.dot_dimension_numbers<[1], [0], [0], [1], [0, 0, 1, 1], [], []>} : vector<8x32xf32>, vector<32x96xf32>, vector<8x96xf32> -> vector<8x96xf32>
    %23 = vector.broadcast %17 : vector<1x96xf32> to vector<8x96xf32>
    %24 = arith.addf %22, %23 : vector<8x96xf32>
    %25 = vector.extract_strided_slice %24 {offsets = [0, 0], sizes = [8, 32], strides = [1, 1]} : vector<8x96xf32> to vector<8x32xf32>
    %26 = vector.extract_strided_slice %24 {offsets = [0, 32], sizes = [8, 32], strides = [1, 1]} : vector<8x96xf32> to vector<8x32xf32>
    %27 = vector.extract_strided_slice %24 {offsets = [0, 64], sizes = [8, 32], strides = [1, 1]} : vector<8x96xf32> to vector<8x32xf32>
    %28 = vector.extract_strided_slice %25 {offsets = [0, 0], sizes = [8, 8], strides = [1, 1]} : vector<8x32xf32> to vector<8x8xf32>
    %29 = vector.extract_strided_slice %25 {offsets = [0, 8], sizes = [8, 8], strides = [1, 1]} : vector<8x32xf32> to vector<8x8xf32>
    %30 = vector.extract_strided_slice %25 {offsets = [0, 16], sizes = [8, 8], strides = [1, 1]} : vector<8x32xf32> to vector<8x8xf32>
    %31 = vector.extract_strided_slice %25 {offsets = [0, 24], sizes = [8, 8], strides = [1, 1]} : vector<8x32xf32> to vector<8x8xf32>
    %32 = vector.shape_cast %28 : vector<8x8xf32> to vector<1x8x8xf32>
    %33 = vector.shape_cast %29 : vector<8x8xf32> to vector<1x8x8xf32>
    %34 = vector.shape_cast %30 : vector<8x8xf32> to vector<1x8x8xf32>
    %35 = vector.shape_cast %31 : vector<8x8xf32> to vector<1x8x8xf32>
    %36 = tpu.concatenate %32, %33, %34, %35 in 0 : vector<1x8x8xf32>, vector<1x8x8xf32>, vector<1x8x8xf32>, vector<1x8x8xf32> -> vector<4x8x8xf32>
    %37 = vector.extract_strided_slice %26 {offsets = [0, 0], sizes = [8, 8], strides = [1, 1]} : vector<8x32xf32> to vector<8x8xf32>
    %38 = vector.extract_strided_slice %26 {offsets = [0, 8], sizes = [8, 8], strides = [1, 1]} : vector<8x32xf32> to vector<8x8xf32>
    %39 = vector.extract_strided_slice %26 {offsets = [0, 16], sizes = [8, 8], strides = [1, 1]} : vector<8x32xf32> to vector<8x8xf32>
    %40 = vector.extract_strided_slice %26 {offsets = [0, 24], sizes = [8, 8], strides = [1, 1]} : vector<8x32xf32> to vector<8x8xf32>
    %41 = vector.shape_cast %37 : vector<8x8xf32> to vector<1x8x8xf32>
    %42 = vector.shape_cast %38 : vector<8x8xf32> to vector<1x8x8xf32>
    %43 = vector.shape_cast %39 : vector<8x8xf32> to vector<1x8x8xf32>
    %44 = vector.shape_cast %40 : vector<8x8xf32> to vector<1x8x8xf32>
    %45 = tpu.concatenate %41, %42, %43, %44 in 0 : vector<1x8x8xf32>, vector<1x8x8xf32>, vector<1x8x8xf32>, vector<1x8x8xf32> -> vector<4x8x8xf32>
    %46 = vector.extract_strided_slice %27 {offsets = [0, 0], sizes = [8, 8], strides = [1, 1]} : vector<8x32xf32> to vector<8x8xf32>
    %47 = vector.extract_strided_slice %27 {offsets = [0, 8], sizes = [8, 8], strides = [1, 1]} : vector<8x32xf32> to vector<8x8xf32>
    %48 = vector.extract_strided_slice %27 {offsets = [0, 16], sizes = [8, 8], strides = [1, 1]} : vector<8x32xf32> to vector<8x8xf32>
    %49 = vector.extract_strided_slice %27 {offsets = [0, 24], sizes = [8, 8], strides = [1, 1]} : vector<8x32xf32> to vector<8x8xf32>
    %50 = vector.shape_cast %46 : vector<8x8xf32> to vector<1x8x8xf32>
    %51 = vector.shape_cast %47 : vector<8x8xf32> to vector<1x8x8xf32>
    %52 = vector.shape_cast %48 : vector<8x8xf32> to vector<1x8x8xf32>
    %53 = vector.shape_cast %49 : vector<8x8xf32> to vector<1x8x8xf32>
    %54 = tpu.concatenate %50, %51, %52, %53 in 0 : vector<1x8x8xf32>, vector<1x8x8xf32>, vector<1x8x8xf32>, vector<1x8x8xf32> -> vector<4x8x8xf32>
    "tpu.trace_start"() <{level = 10 : i32, message = "hqd,hkd->hqk"}> : () -> ()
    %cst_28 = arith.constant dense<0.000000e+00> : vector<4x8x8xf32>
    %55 = tpu.matmul %36, %45, %cst_28 {dimension_numbers = #tpu.dot_dimension_numbers<[2], [2], [1], [1], [0, 0, 0, 1, 1, 1], [0], [0]>} : vector<4x8x8xf32>, vector<4x8x8xf32>, vector<4x8x8xf32> -> vector<4x8x8xf32>
    "tpu.trace_stop"() : () -> ()
    %cst_29 = arith.constant 0.353553385 : f32
    %56 = vector.broadcast %cst_29 : f32 to vector<4x8x8xf32>
    %57 = arith.mulf %55, %56 : vector<4x8x8xf32>
    %cst_30 = arith.constant 0xFF800000 : f32
    %58 = vector.broadcast %cst_30 : f32 to vector<4x8x8xf32>
    %59 = arith.select %7, %57, %58 : vector<4x8x8xi1>, vector<4x8x8xf32>
    %cst_31 = arith.constant dense<0xFF800000> : vector<4x8xf32>
    %60 = vector.multi_reduction <maximumf>, %59, %cst_31 [2] : vector<4x8x8xf32> to vector<4x8xf32>
    %61 = vector.shape_cast %60 : vector<4x8xf32> to vector<4x8x1xf32>
    %62 = vector.broadcast %61 : vector<4x8x1xf32> to vector<4x8x8xf32>
    %63 = arith.subf %59, %62 : vector<4x8x8xf32>
    %64 = math.exp %63 : vector<4x8x8xf32>
    %cst_32 = arith.constant dense<0.000000e+00> : vector<4x8xf32>
    %65 = vector.multi_reduction <add>, %64, %cst_32 [2] : vector<4x8x8xf32> to vector<4x8xf32>
    %66 = vector.shape_cast %65 : vector<4x8xf32> to vector<4x8x1xf32>
    %67 = tpu.reciprocal %66 {approx = true} : vector<4x8x1xf32> -> vector<4x8x1xf32>
    %68 = vector.broadcast %67 : vector<4x8x1xf32> to vector<4x8x8xf32>
    %69 = arith.mulf %64, %68 : vector<4x8x8xf32>
    "tpu.trace_start"() <{level = 10 : i32, message = "hqk,hkd->hqd"}> : () -> ()
    %cst_33 = arith.constant dense<0.000000e+00> : vector<4x8x8xf32>
    %70 = tpu.matmul %69, %54, %cst_33 {dimension_numbers = #tpu.dot_dimension_numbers<[2], [1], [1], [2], [0, 0, 0, 1, 1, 2], [0], [0]>} : vector<4x8x8xf32>, vector<4x8x8xf32>, vector<4x8x8xf32> -> vector<4x8x8xf32>
    "tpu.trace_stop"() : () -> ()
    %71 = vector.extract_strided_slice %70 {offsets = [0, 0, 0], sizes = [1, 8, 8], strides = [1, 1, 1]} : vector<4x8x8xf32> to vector<1x8x8xf32>
    %72 = vector.shape_cast %71 : vector<1x8x8xf32> to vector<8x8xf32>
    %73 = vector.extract_strided_slice %70 {offsets = [1, 0, 0], sizes = [1, 8, 8], strides = [1, 1, 1]} : vector<4x8x8xf32> to vector<1x8x8xf32>
    %74 = vector.shape_cast %73 : vector<1x8x8xf32> to vector<8x8xf32>
    %75 = vector.extract_strided_slice %70 {offsets = [2, 0, 0], sizes = [1, 8, 8], strides = [1, 1, 1]} : vector<4x8x8xf32> to vector<1x8x8xf32>
    %76 = vector.shape_cast %75 : vector<1x8x8xf32> to vector<8x8xf32>
    %77 = vector.extract_strided_slice %70 {offsets = [3, 0, 0], sizes = [1, 8, 8], strides = [1, 1, 1]} : vector<4x8x8xf32> to vector<1x8x8xf32>
    %78 = vector.shape_cast %77 : vector<1x8x8xf32> to vector<8x8xf32>
    %79 = tpu.concatenate %72, %74, %76, %78 in 1 : vector<8x8xf32>, vector<8x8xf32>, vector<8x8xf32>, vector<8x8xf32> -> vector<8x32xf32>
    %cst_34 = arith.constant dense<0.000000e+00> : vector<8x32xf32>
    %80 = tpu.matmul %79, %19, %cst_34 {dimension_numbers = #tpu.dot_dimension_numbers<[1], [0], [0], [1], [0, 0, 1, 1], [], []>} : vector<8x32xf32>, vector<32x32xf32>, vector<8x32xf32> -> vector<8x32xf32>
    %81 = vector.broadcast %21 : vector<1x32xf32> to vector<8x32xf32>
    %82 = arith.addf %80, %81 : vector<8x32xf32>
    %83 = arith.addf %9, %82 : vector<8x32xf32>
    %cst_35 = arith.constant dense<0.000000e+00> : vector<8x32xf32>
    %84 = tpu.matmul %0, %83, %cst_35 {dimension_numbers = #tpu.dot_dimension_numbers<[1], [0], [0], [1], [0, 0, 1, 1], [], []>} : vector<8x8xf32>, vector<8x32xf32>, vector<8x32xf32> -> vector<8x32xf32>
    %85 = arith.subf %83, %84 : vector<8x32xf32>
    %c1 = arith.constant 1 : index
    %c0_36 = arith.constant 0 : index
    %c0_37 = arith.constant 0 : index
    %86 = vector.load %arg4[%c1, %c0_36, %c0_37] : memref<4x32x96xf32, #tpu.memory_space<vmem>>, vector<1x32x96xf32>
    %87 = vector.shape_cast %86 : vector<1x32x96xf32> to vector<32x96xf32>
    %c1_38 = arith.constant 1 : index
    %c0_39 = arith.constant 0 : index
    %c0_40 = arith.constant 0 : index
    %88 = vector.load %arg5[%c1_38, %c0_39, %c0_40] : memref<4x1x96xf32, #tpu.memory_space<vmem>>, vector<1x1x96xf32>
    %89 = vector.shape_cast %88 : vector<1x1x96xf32> to vector<1x96xf32>
    %c1_41 = arith.constant 1 : index
    %c0_42 = arith.constant 0 : index
    %c0_43 = arith.constant 0 : index
    %90 = vector.load %arg6[%c1_41, %c0_42, %c0_43] : memref<4x32x32xf32, #tpu.memory_space<vmem>>, vector<1x32x32xf32>
    %91 = vector.shape_cast %90 : vector<1x32x32xf32> to vector<32x32xf32>
    %c1_44 = arith.constant 1 : index
    %c0_45 = arith.constant 0 : index
    %c0_46 = arith.constant 0 : index
    %92 = vector.load %arg7[%c1_44, %c0_45, %c0_46] : memref<4x1x32xf32, #tpu.memory_space<vmem>>, vector<1x1x32xf32>
    %93 = vector.shape_cast %92 : vector<1x1x32xf32> to vector<1x32xf32>
    %94 = vector.extract_strided_slice %87 {offsets = [0, 0], sizes = [32, 32], strides = [1, 1]} : vector<32x96xf32> to vector<32x32xf32>
    %cst_47 = arith.constant dense<0.000000e+00> : vector<8x32xf32>
    %95 = tpu.matmul %85, %94, %cst_47 {dimension_numbers = #tpu.dot_dimension_numbers<[1], [0], [0], [1], [0, 0, 1, 1], [], []>} : vector<8x32xf32>, vector<32x32xf32>, vector<8x32xf32> -> vector<8x32xf32>
    %96 = vector.extract_strided_slice %89 {offsets = [0, 0], sizes = [1, 32], strides = [1, 1]} : vector<1x96xf32> to vector<1x32xf32>
    %97 = vector.broadcast %96 : vector<1x32xf32> to vector<8x32xf32>
    %98 = arith.addf %95, %97 : vector<8x32xf32>
    %99 = vector.extract_strided_slice %87 {offsets = [0, 32], sizes = [32, 64], strides = [1, 1]} : vector<32x96xf32> to vector<32x64xf32>
    %cst_48 = arith.constant dense<0.000000e+00> : vector<12x64xf32>
    %100 = tpu.matmul %11, %99, %cst_48 {dimension_numbers = #tpu.dot_dimension_numbers<[1], [0], [0], [1], [0, 0, 1, 1], [], []>} : vector<12x32xf32>, vector<32x64xf32>, vector<12x64xf32> -> vector<12x64xf32>
    %101 = vector.extract_strided_slice %89 {offsets = [0, 32], sizes = [1, 64], strides = [1, 1]} : vector<1x96xf32> to vector<1x64xf32>
    %102 = vector.broadcast %101 : vector<1x64xf32> to vector<12x64xf32>
    %103 = arith.addf %100, %102 : vector<12x64xf32>
    %104 = vector.extract_strided_slice %103 {offsets = [0, 0], sizes = [12, 32], strides = [1, 1]} : vector<12x64xf32> to vector<12x32xf32>
    %105 = vector.extract_strided_slice %103 {offsets = [0, 32], sizes = [12, 32], strides = [1, 1]} : vector<12x64xf32> to vector<12x32xf32>
    %106 = vector.extract_strided_slice %98 {offsets = [0, 0], sizes = [8, 8], strides = [1, 1]} : vector<8x32xf32> to vector<8x8xf32>
    %107 = vector.extract_strided_slice %98 {offsets = [0, 8], sizes = [8, 8], strides = [1, 1]} : vector<8x32xf32> to vector<8x8xf32>
    %108 = vector.extract_strided_slice %98 {offsets = [0, 16], sizes = [8, 8], strides = [1, 1]} : vector<8x32xf32> to vector<8x8xf32>
    %109 = vector.extract_strided_slice %98 {offsets = [0, 24], sizes = [8, 8], strides = [1, 1]} : vector<8x32xf32> to vector<8x8xf32>
    %110 = vector.shape_cast %106 : vector<8x8xf32> to vector<1x8x8xf32>
    %111 = vector.shape_cast %107 : vector<8x8xf32> to vector<1x8x8xf32>
    %112 = vector.shape_cast %108 : vector<8x8xf32> to vector<1x8x8xf32>
    %113 = vector.shape_cast %109 : vector<8x8xf32> to vector<1x8x8xf32>
    %114 = tpu.concatenate %110, %111, %112, %113 in 0 : vector<1x8x8xf32>, vector<1x8x8xf32>, vector<1x8x8xf32>, vector<1x8x8xf32> -> vector<4x8x8xf32>
    %115 = vector.extract_strided_slice %104 {offsets = [0, 0], sizes = [12, 8], strides = [1, 1]} : vector<12x32xf32> to vector<12x8xf32>
    %116 = vector.extract_strided_slice %104 {offsets = [0, 8], sizes = [12, 8], strides = [1, 1]} : vector<12x32xf32> to vector<12x8xf32>
    %117 = vector.extract_strided_slice %104 {offsets = [0, 16], sizes = [12, 8], strides = [1, 1]} : vector<12x32xf32> to vector<12x8xf32>
    %118 = vector.extract_strided_slice %104 {offsets = [0, 24], sizes = [12, 8], strides = [1, 1]} : vector<12x32xf32> to vector<12x8xf32>
    %119 = vector.shape_cast %115 : vector<12x8xf32> to vector<1x12x8xf32>
    %120 = vector.shape_cast %116 : vector<12x8xf32> to vector<1x12x8xf32>
    %121 = vector.shape_cast %117 : vector<12x8xf32> to vector<1x12x8xf32>
    %122 = vector.shape_cast %118 : vector<12x8xf32> to vector<1x12x8xf32>
    %123 = tpu.concatenate %119, %120, %121, %122 in 0 : vector<1x12x8xf32>, vector<1x12x8xf32>, vector<1x12x8xf32>, vector<1x12x8xf32> -> vector<4x12x8xf32>
    %124 = vector.extract_strided_slice %105 {offsets = [0, 0], sizes = [12, 8], strides = [1, 1]} : vector<12x32xf32> to vector<12x8xf32>
    %125 = vector.extract_strided_slice %105 {offsets = [0, 8], sizes = [12, 8], strides = [1, 1]} : vector<12x32xf32> to vector<12x8xf32>
    %126 = vector.extract_strided_slice %105 {offsets = [0, 16], sizes = [12, 8], strides = [1, 1]} : vector<12x32xf32> to vector<12x8xf32>
    %127 = vector.extract_strided_slice %105 {offsets = [0, 24], sizes = [12, 8], strides = [1, 1]} : vector<12x32xf32> to vector<12x8xf32>
    %128 = vector.shape_cast %124 : vector<12x8xf32> to vector<1x12x8xf32>
    %129 = vector.shape_cast %125 : vector<12x8xf32> to vector<1x12x8xf32>
    %130 = vector.shape_cast %126 : vector<12x8xf32> to vector<1x12x8xf32>
    %131 = vector.shape_cast %127 : vector<12x8xf32> to vector<1x12x8xf32>
    %132 = tpu.concatenate %128, %129, %130, %131 in 0 : vector<1x12x8xf32>, vector<1x12x8xf32>, vector<1x12x8xf32>, vector<1x12x8xf32> -> vector<4x12x8xf32>
    "tpu.trace_start"() <{level = 10 : i32, message = "hqd,hkd->hqk"}> : () -> ()
    %cst_49 = arith.constant dense<0.000000e+00> : vector<4x8x12xf32>
    %133 = tpu.matmul %114, %123, %cst_49 {dimension_numbers = #tpu.dot_dimension_numbers<[2], [2], [1], [1], [0, 0, 0, 1, 1, 1], [0], [0]>} : vector<4x8x8xf32>, vector<4x12x8xf32>, vector<4x8x12xf32> -> vector<4x8x12xf32>
    "tpu.trace_stop"() : () -> ()
    %cst_50 = arith.constant 0.353553385 : f32
    %134 = vector.broadcast %cst_50 : f32 to vector<4x8x12xf32>
    %135 = arith.mulf %133, %134 : vector<4x8x12xf32>
    %cst_51 = arith.constant dense<0xFF800000> : vector<4x8xf32>
    %136 = vector.multi_reduction <maximumf>, %135, %cst_51 [2] : vector<4x8x12xf32> to vector<4x8xf32>
    %137 = vector.shape_cast %136 : vector<4x8xf32> to vector<4x8x1xf32>
    %138 = vector.broadcast %137 : vector<4x8x1xf32> to vector<4x8x12xf32>
    %139 = arith.subf %135, %138 : vector<4x8x12xf32>
    %140 = math.exp %139 : vector<4x8x12xf32>
    %cst_52 = arith.constant dense<0.000000e+00> : vector<4x8xf32>
    %141 = vector.multi_reduction <add>, %140, %cst_52 [2] : vector<4x8x12xf32> to vector<4x8xf32>
    %142 = vector.shape_cast %141 : vector<4x8xf32> to vector<4x8x1xf32>
    %143 = tpu.reciprocal %142 {approx = true} : vector<4x8x1xf32> -> vector<4x8x1xf32>
    %144 = vector.broadcast %143 : vector<4x8x1xf32> to vector<4x8x12xf32>
    %145 = arith.mulf %140, %144 : vector<4x8x12xf32>
    "tpu.trace_start"() <{level = 10 : i32, message = "hqk,hkd->hqd"}> : () -> ()
    %cst_53 = arith.constant dense<0.000000e+00> : vector<4x8x8xf32>
    %146 = tpu.matmul %145, %132, %cst_53 {dimension_numbers = #tpu.dot_dimension_numbers<[2], [1], [1], [2], [0, 0, 0, 1, 1, 2], [0], [0]>} : vector<4x8x12xf32>, vector<4x12x8xf32>, vector<4x8x8xf32> -> vector<4x8x8xf32>
    "tpu.trace_stop"() : () -> ()
    %147 = vector.extract_strided_slice %146 {offsets = [0, 0, 0], sizes = [1, 8, 8], strides = [1, 1, 1]} : vector<4x8x8xf32> to vector<1x8x8xf32>
    %148 = vector.shape_cast %147 : vector<1x8x8xf32> to vector<8x8xf32>
    %149 = vector.extract_strided_slice %146 {offsets = [1, 0, 0], sizes = [1, 8, 8], strides = [1, 1, 1]} : vector<4x8x8xf32> to vector<1x8x8xf32>
    %150 = vector.shape_cast %149 : vector<1x8x8xf32> to vector<8x8xf32>
    %151 = vector.extract_strided_slice %146 {offsets = [2, 0, 0], sizes = [1, 8, 8], strides = [1, 1, 1]} : vector<4x8x8xf32> to vector<1x8x8xf32>
    %152 = vector.shape_cast %151 : vector<1x8x8xf32> to vector<8x8xf32>
    %153 = vector.extract_strided_slice %146 {offsets = [3, 0, 0], sizes = [1, 8, 8], strides = [1, 1, 1]} : vector<4x8x8xf32> to vector<1x8x8xf32>
    %154 = vector.shape_cast %153 : vector<1x8x8xf32> to vector<8x8xf32>
    %155 = tpu.concatenate %148, %150, %152, %154 in 1 : vector<8x8xf32>, vector<8x8xf32>, vector<8x8xf32>, vector<8x8xf32> -> vector<8x32xf32>
    %cst_54 = arith.constant dense<0.000000e+00> : vector<8x32xf32>
    %156 = tpu.matmul %155, %91, %cst_54 {dimension_numbers = #tpu.dot_dimension_numbers<[1], [0], [0], [1], [0, 0, 1, 1], [], []>} : vector<8x32xf32>, vector<32x32xf32>, vector<8x32xf32> -> vector<8x32xf32>
    %157 = vector.broadcast %93 : vector<1x32xf32> to vector<8x32xf32>
    %158 = arith.addf %156, %157 : vector<8x32xf32>
    %159 = arith.addf %85, %158 : vector<8x32xf32>
    %cst_55 = arith.constant dense<0.000000e+00> : vector<8x32xf32>
    %160 = tpu.matmul %0, %159, %cst_55 {dimension_numbers = #tpu.dot_dimension_numbers<[1], [0], [0], [1], [0, 0, 1, 1], [], []>} : vector<8x8xf32>, vector<8x32xf32>, vector<8x32xf32> -> vector<8x32xf32>
    %161 = arith.subf %159, %160 : vector<8x32xf32>
    %c0_56 = arith.constant 0 : index
    %c0_57 = arith.constant 0 : index
    %c0_58 = arith.constant 0 : index
    %162 = vector.load %arg8[%c0_56, %c0_57, %c0_58] : memref<2x32x64xf32, #tpu.memory_space<vmem>>, vector<1x32x64xf32>
    %163 = vector.shape_cast %162 : vector<1x32x64xf32> to vector<32x64xf32>
    %cst_59 = arith.constant dense<0.000000e+00> : vector<8x64xf32>
    %164 = tpu.matmul %161, %163, %cst_59 {dimension_numbers = #tpu.dot_dimension_numbers<[1], [0], [0], [1], [0, 0, 1, 1], [], []>} : vector<8x32xf32>, vector<32x64xf32>, vector<8x64xf32> -> vector<8x64xf32>
    %cst_60 = arith.constant 0.000000e+00 : f32
    %165 = vector.broadcast %cst_60 : f32 to vector<8x64xf32>
    %166 = arith.maximumf %164, %165 : vector<8x64xf32>
    %c0_61 = arith.constant 0 : index
    %c0_62 = arith.constant 0 : index
    %c0_63 = arith.constant 0 : index
    %167 = vector.load %arg9[%c0_61, %c0_62, %c0_63] : memref<2x64x32xf32, #tpu.memory_space<vmem>>, vector<1x64x32xf32>
    %168 = vector.shape_cast %167 : vector<1x64x32xf32> to vector<64x32xf32>
    %cst_64 = arith.constant dense<0.000000e+00> : vector<8x32xf32>
    %169 = tpu.matmul %166, %168, %cst_64 {dimension_numbers = #tpu.dot_dimension_numbers<[1], [0], [0], [1], [0, 0, 1, 1], [], []>} : vector<8x64xf32>, vector<64x32xf32>, vector<8x32xf32> -> vector<8x32xf32>
    %170 = arith.addf %161, %169 : vector<8x32xf32>
    %cst_65 = arith.constant dense<0.000000e+00> : vector<8x32xf32>
    %171 = tpu.matmul %0, %170, %cst_65 {dimension_numbers = #tpu.dot_dimension_numbers<[1], [0], [0], [1], [0, 0, 1, 1], [], []>} : vector<8x8xf32>, vector<8x32xf32>, vector<8x32xf32> -> vector<8x32xf32>
    %172 = arith.subf %170, %171 : vector<8x32xf32>
    %173 = arith.addf %84, %160 : vector<8x32xf32>
    %174 = arith.addf %173, %171 : vector<8x32xf32>
    %c0_66 = arith.constant 0 : index
    %c0_67 = arith.constant 0 : index
    %c0_68 = arith.constant 0 : index
    %175 = vector.load %arg10[%c0_66, %c0_67, %c0_68] : memref<2x96x4xf32, #tpu.memory_space<vmem>>, vector<1x96x4xf32>
    %176 = vector.shape_cast %175 : vector<1x96x4xf32> to vector<96x4xf32>
    %c1_i32 = arith.constant 1 : i32
    %177 = tpu.dynamic_rotate %174 by %c1_i32 dim 0 : vector<8x32xf32>, i32 -> vector<8x32xf32>
    %c7_i32 = arith.constant 7 : i32
    %178 = tpu.dynamic_rotate %174 by %c7_i32 dim 0 : vector<8x32xf32>, i32 -> vector<8x32xf32>
    %179 = tpu.concatenate %177, %174, %178 in 1 : vector<8x32xf32>, vector<8x32xf32>, vector<8x32xf32> -> vector<8x96xf32>
    %cst_69 = arith.constant dense<0.000000e+00> : vector<8x4xf32>
    %180 = tpu.matmul %179, %176, %cst_69 {dimension_numbers = #tpu.dot_dimension_numbers<[1], [0], [0], [1], [0, 0, 1, 1], [], []>} : vector<8x96xf32>, vector<96x4xf32>, vector<8x4xf32> -> vector<8x4xf32>
    %181 = arith.addf %13, %180 : vector<8x4xf32>
    %c2 = arith.constant 2 : index
    %c0_70 = arith.constant 0 : index
    %c0_71 = arith.constant 0 : index
    %182 = vector.load %arg4[%c2, %c0_70, %c0_71] : memref<4x32x96xf32, #tpu.memory_space<vmem>>, vector<1x32x96xf32>
    %183 = vector.shape_cast %182 : vector<1x32x96xf32> to vector<32x96xf32>
    %c2_72 = arith.constant 2 : index
    %c0_73 = arith.constant 0 : index
    %c0_74 = arith.constant 0 : index
    %184 = vector.load %arg5[%c2_72, %c0_73, %c0_74] : memref<4x1x96xf32, #tpu.memory_space<vmem>>, vector<1x1x96xf32>
    %185 = vector.shape_cast %184 : vector<1x1x96xf32> to vector<1x96xf32>
    %c2_75 = arith.constant 2 : index
    %c0_76 = arith.constant 0 : index
    %c0_77 = arith.constant 0 : index
    %186 = vector.load %arg6[%c2_75, %c0_76, %c0_77] : memref<4x32x32xf32, #tpu.memory_space<vmem>>, vector<1x32x32xf32>
    %187 = vector.shape_cast %186 : vector<1x32x32xf32> to vector<32x32xf32>
    %c2_78 = arith.constant 2 : index
    %c0_79 = arith.constant 0 : index
    %c0_80 = arith.constant 0 : index
    %188 = vector.load %arg7[%c2_78, %c0_79, %c0_80] : memref<4x1x32xf32, #tpu.memory_space<vmem>>, vector<1x1x32xf32>
    %189 = vector.shape_cast %188 : vector<1x1x32xf32> to vector<1x32xf32>
    %cst_81 = arith.constant dense<0.000000e+00> : vector<8x96xf32>
    %190 = tpu.matmul %172, %183, %cst_81 {dimension_numbers = #tpu.dot_dimension_numbers<[1], [0], [0], [1], [0, 0, 1, 1], [], []>} : vector<8x32xf32>, vector<32x96xf32>, vector<8x96xf32> -> vector<8x96xf32>
    %191 = vector.broadcast %185 : vector<1x96xf32> to vector<8x96xf32>
    %192 = arith.addf %190, %191 : vector<8x96xf32>
    %193 = vector.extract_strided_slice %192 {offsets = [0, 0], sizes = [8, 32], strides = [1, 1]} : vector<8x96xf32> to vector<8x32xf32>
    %194 = vector.extract_strided_slice %192 {offsets = [0, 32], sizes = [8, 32], strides = [1, 1]} : vector<8x96xf32> to vector<8x32xf32>
    %195 = vector.extract_strided_slice %192 {offsets = [0, 64], sizes = [8, 32], strides = [1, 1]} : vector<8x96xf32> to vector<8x32xf32>
    %196 = vector.extract_strided_slice %193 {offsets = [0, 0], sizes = [8, 8], strides = [1, 1]} : vector<8x32xf32> to vector<8x8xf32>
    %197 = vector.extract_strided_slice %193 {offsets = [0, 8], sizes = [8, 8], strides = [1, 1]} : vector<8x32xf32> to vector<8x8xf32>
    %198 = vector.extract_strided_slice %193 {offsets = [0, 16], sizes = [8, 8], strides = [1, 1]} : vector<8x32xf32> to vector<8x8xf32>
    %199 = vector.extract_strided_slice %193 {offsets = [0, 24], sizes = [8, 8], strides = [1, 1]} : vector<8x32xf32> to vector<8x8xf32>
    %200 = vector.shape_cast %196 : vector<8x8xf32> to vector<1x8x8xf32>
    %201 = vector.shape_cast %197 : vector<8x8xf32> to vector<1x8x8xf32>
    %202 = vector.shape_cast %198 : vector<8x8xf32> to vector<1x8x8xf32>
    %203 = vector.shape_cast %199 : vector<8x8xf32> to vector<1x8x8xf32>
    %204 = tpu.concatenate %200, %201, %202, %203 in 0 : vector<1x8x8xf32>, vector<1x8x8xf32>, vector<1x8x8xf32>, vector<1x8x8xf32> -> vector<4x8x8xf32>
    %205 = vector.extract_strided_slice %194 {offsets = [0, 0], sizes = [8, 8], strides = [1, 1]} : vector<8x32xf32> to vector<8x8xf32>
    %206 = vector.extract_strided_slice %194 {offsets = [0, 8], sizes = [8, 8], strides = [1, 1]} : vector<8x32xf32> to vector<8x8xf32>
    %207 = vector.extract_strided_slice %194 {offsets = [0, 16], sizes = [8, 8], strides = [1, 1]} : vector<8x32xf32> to vector<8x8xf32>
    %208 = vector.extract_strided_slice %194 {offsets = [0, 24], sizes = [8, 8], strides = [1, 1]} : vector<8x32xf32> to vector<8x8xf32>
    %209 = vector.shape_cast %205 : vector<8x8xf32> to vector<1x8x8xf32>
    %210 = vector.shape_cast %206 : vector<8x8xf32> to vector<1x8x8xf32>
    %211 = vector.shape_cast %207 : vector<8x8xf32> to vector<1x8x8xf32>
    %212 = vector.shape_cast %208 : vector<8x8xf32> to vector<1x8x8xf32>
    %213 = tpu.concatenate %209, %210, %211, %212 in 0 : vector<1x8x8xf32>, vector<1x8x8xf32>, vector<1x8x8xf32>, vector<1x8x8xf32> -> vector<4x8x8xf32>
    %214 = vector.extract_strided_slice %195 {offsets = [0, 0], sizes = [8, 8], strides = [1, 1]} : vector<8x32xf32> to vector<8x8xf32>
    %215 = vector.extract_strided_slice %195 {offsets = [0, 8], sizes = [8, 8], strides = [1, 1]} : vector<8x32xf32> to vector<8x8xf32>
    %216 = vector.extract_strided_slice %195 {offsets = [0, 16], sizes = [8, 8], strides = [1, 1]} : vector<8x32xf32> to vector<8x8xf32>
    %217 = vector.extract_strided_slice %195 {offsets = [0, 24], sizes = [8, 8], strides = [1, 1]} : vector<8x32xf32> to vector<8x8xf32>
    %218 = vector.shape_cast %214 : vector<8x8xf32> to vector<1x8x8xf32>
    %219 = vector.shape_cast %215 : vector<8x8xf32> to vector<1x8x8xf32>
    %220 = vector.shape_cast %216 : vector<8x8xf32> to vector<1x8x8xf32>
    %221 = vector.shape_cast %217 : vector<8x8xf32> to vector<1x8x8xf32>
    %222 = tpu.concatenate %218, %219, %220, %221 in 0 : vector<1x8x8xf32>, vector<1x8x8xf32>, vector<1x8x8xf32>, vector<1x8x8xf32> -> vector<4x8x8xf32>
    "tpu.trace_start"() <{level = 10 : i32, message = "hqd,hkd->hqk"}> : () -> ()
    %cst_82 = arith.constant dense<0.000000e+00> : vector<4x8x8xf32>
    %223 = tpu.matmul %204, %213, %cst_82 {dimension_numbers = #tpu.dot_dimension_numbers<[2], [2], [1], [1], [0, 0, 0, 1, 1, 1], [0], [0]>} : vector<4x8x8xf32>, vector<4x8x8xf32>, vector<4x8x8xf32> -> vector<4x8x8xf32>
    "tpu.trace_stop"() : () -> ()
    %cst_83 = arith.constant 0.353553385 : f32
    %224 = vector.broadcast %cst_83 : f32 to vector<4x8x8xf32>
    %225 = arith.mulf %223, %224 : vector<4x8x8xf32>
    %cst_84 = arith.constant 0xFF800000 : f32
    %226 = vector.broadcast %cst_84 : f32 to vector<4x8x8xf32>
    %227 = arith.select %7, %225, %226 : vector<4x8x8xi1>, vector<4x8x8xf32>
    %cst_85 = arith.constant dense<0xFF800000> : vector<4x8xf32>
    %228 = vector.multi_reduction <maximumf>, %227, %cst_85 [2] : vector<4x8x8xf32> to vector<4x8xf32>
    %229 = vector.shape_cast %228 : vector<4x8xf32> to vector<4x8x1xf32>
    %230 = vector.broadcast %229 : vector<4x8x1xf32> to vector<4x8x8xf32>
    %231 = arith.subf %227, %230 : vector<4x8x8xf32>
    %232 = math.exp %231 : vector<4x8x8xf32>
    %cst_86 = arith.constant dense<0.000000e+00> : vector<4x8xf32>
    %233 = vector.multi_reduction <add>, %232, %cst_86 [2] : vector<4x8x8xf32> to vector<4x8xf32>
    %234 = vector.shape_cast %233 : vector<4x8xf32> to vector<4x8x1xf32>
    %235 = tpu.reciprocal %234 {approx = true} : vector<4x8x1xf32> -> vector<4x8x1xf32>
    %236 = vector.broadcast %235 : vector<4x8x1xf32> to vector<4x8x8xf32>
    %237 = arith.mulf %232, %236 : vector<4x8x8xf32>
    "tpu.trace_start"() <{level = 10 : i32, message = "hqk,hkd->hqd"}> : () -> ()
    %cst_87 = arith.constant dense<0.000000e+00> : vector<4x8x8xf32>
    %238 = tpu.matmul %237, %222, %cst_87 {dimension_numbers = #tpu.dot_dimension_numbers<[2], [1], [1], [2], [0, 0, 0, 1, 1, 2], [0], [0]>} : vector<4x8x8xf32>, vector<4x8x8xf32>, vector<4x8x8xf32> -> vector<4x8x8xf32>
    "tpu.trace_stop"() : () -> ()
    %239 = vector.extract_strided_slice %238 {offsets = [0, 0, 0], sizes = [1, 8, 8], strides = [1, 1, 1]} : vector<4x8x8xf32> to vector<1x8x8xf32>
    %240 = vector.shape_cast %239 : vector<1x8x8xf32> to vector<8x8xf32>
    %241 = vector.extract_strided_slice %238 {offsets = [1, 0, 0], sizes = [1, 8, 8], strides = [1, 1, 1]} : vector<4x8x8xf32> to vector<1x8x8xf32>
    %242 = vector.shape_cast %241 : vector<1x8x8xf32> to vector<8x8xf32>
    %243 = vector.extract_strided_slice %238 {offsets = [2, 0, 0], sizes = [1, 8, 8], strides = [1, 1, 1]} : vector<4x8x8xf32> to vector<1x8x8xf32>
    %244 = vector.shape_cast %243 : vector<1x8x8xf32> to vector<8x8xf32>
    %245 = vector.extract_strided_slice %238 {offsets = [3, 0, 0], sizes = [1, 8, 8], strides = [1, 1, 1]} : vector<4x8x8xf32> to vector<1x8x8xf32>
    %246 = vector.shape_cast %245 : vector<1x8x8xf32> to vector<8x8xf32>
    %247 = tpu.concatenate %240, %242, %244, %246 in 1 : vector<8x8xf32>, vector<8x8xf32>, vector<8x8xf32>, vector<8x8xf32> -> vector<8x32xf32>
    %cst_88 = arith.constant dense<0.000000e+00> : vector<8x32xf32>
    %248 = tpu.matmul %247, %187, %cst_88 {dimension_numbers = #tpu.dot_dimension_numbers<[1], [0], [0], [1], [0, 0, 1, 1], [], []>} : vector<8x32xf32>, vector<32x32xf32>, vector<8x32xf32> -> vector<8x32xf32>
    %249 = vector.broadcast %189 : vector<1x32xf32> to vector<8x32xf32>
    %250 = arith.addf %248, %249 : vector<8x32xf32>
    %251 = arith.addf %172, %250 : vector<8x32xf32>
    %cst_89 = arith.constant dense<0.000000e+00> : vector<8x32xf32>
    %252 = tpu.matmul %0, %251, %cst_89 {dimension_numbers = #tpu.dot_dimension_numbers<[1], [0], [0], [1], [0, 0, 1, 1], [], []>} : vector<8x8xf32>, vector<8x32xf32>, vector<8x32xf32> -> vector<8x32xf32>
    %253 = arith.subf %251, %252 : vector<8x32xf32>
    %c3 = arith.constant 3 : index
    %c0_90 = arith.constant 0 : index
    %c0_91 = arith.constant 0 : index
    %254 = vector.load %arg4[%c3, %c0_90, %c0_91] : memref<4x32x96xf32, #tpu.memory_space<vmem>>, vector<1x32x96xf32>
    %255 = vector.shape_cast %254 : vector<1x32x96xf32> to vector<32x96xf32>
    %c3_92 = arith.constant 3 : index
    %c0_93 = arith.constant 0 : index
    %c0_94 = arith.constant 0 : index
    %256 = vector.load %arg5[%c3_92, %c0_93, %c0_94] : memref<4x1x96xf32, #tpu.memory_space<vmem>>, vector<1x1x96xf32>
    %257 = vector.shape_cast %256 : vector<1x1x96xf32> to vector<1x96xf32>
    %c3_95 = arith.constant 3 : index
    %c0_96 = arith.constant 0 : index
    %c0_97 = arith.constant 0 : index
    %258 = vector.load %arg6[%c3_95, %c0_96, %c0_97] : memref<4x32x32xf32, #tpu.memory_space<vmem>>, vector<1x32x32xf32>
    %259 = vector.shape_cast %258 : vector<1x32x32xf32> to vector<32x32xf32>
    %c3_98 = arith.constant 3 : index
    %c0_99 = arith.constant 0 : index
    %c0_100 = arith.constant 0 : index
    %260 = vector.load %arg7[%c3_98, %c0_99, %c0_100] : memref<4x1x32xf32, #tpu.memory_space<vmem>>, vector<1x1x32xf32>
    %261 = vector.shape_cast %260 : vector<1x1x32xf32> to vector<1x32xf32>
    %262 = vector.extract_strided_slice %255 {offsets = [0, 0], sizes = [32, 32], strides = [1, 1]} : vector<32x96xf32> to vector<32x32xf32>
    %cst_101 = arith.constant dense<0.000000e+00> : vector<8x32xf32>
    %263 = tpu.matmul %253, %262, %cst_101 {dimension_numbers = #tpu.dot_dimension_numbers<[1], [0], [0], [1], [0, 0, 1, 1], [], []>} : vector<8x32xf32>, vector<32x32xf32>, vector<8x32xf32> -> vector<8x32xf32>
    %264 = vector.extract_strided_slice %257 {offsets = [0, 0], sizes = [1, 32], strides = [1, 1]} : vector<1x96xf32> to vector<1x32xf32>
    %265 = vector.broadcast %264 : vector<1x32xf32> to vector<8x32xf32>
    %266 = arith.addf %263, %265 : vector<8x32xf32>
    %267 = vector.extract_strided_slice %255 {offsets = [0, 32], sizes = [32, 64], strides = [1, 1]} : vector<32x96xf32> to vector<32x64xf32>
    %cst_102 = arith.constant dense<0.000000e+00> : vector<12x64xf32>
    %268 = tpu.matmul %11, %267, %cst_102 {dimension_numbers = #tpu.dot_dimension_numbers<[1], [0], [0], [1], [0, 0, 1, 1], [], []>} : vector<12x32xf32>, vector<32x64xf32>, vector<12x64xf32> -> vector<12x64xf32>
    %269 = vector.extract_strided_slice %257 {offsets = [0, 32], sizes = [1, 64], strides = [1, 1]} : vector<1x96xf32> to vector<1x64xf32>
    %270 = vector.broadcast %269 : vector<1x64xf32> to vector<12x64xf32>
    %271 = arith.addf %268, %270 : vector<12x64xf32>
    %272 = vector.extract_strided_slice %271 {offsets = [0, 0], sizes = [12, 32], strides = [1, 1]} : vector<12x64xf32> to vector<12x32xf32>
    %273 = vector.extract_strided_slice %271 {offsets = [0, 32], sizes = [12, 32], strides = [1, 1]} : vector<12x64xf32> to vector<12x32xf32>
    %274 = vector.extract_strided_slice %266 {offsets = [0, 0], sizes = [8, 8], strides = [1, 1]} : vector<8x32xf32> to vector<8x8xf32>
    %275 = vector.extract_strided_slice %266 {offsets = [0, 8], sizes = [8, 8], strides = [1, 1]} : vector<8x32xf32> to vector<8x8xf32>
    %276 = vector.extract_strided_slice %266 {offsets = [0, 16], sizes = [8, 8], strides = [1, 1]} : vector<8x32xf32> to vector<8x8xf32>
    %277 = vector.extract_strided_slice %266 {offsets = [0, 24], sizes = [8, 8], strides = [1, 1]} : vector<8x32xf32> to vector<8x8xf32>
    %278 = vector.shape_cast %274 : vector<8x8xf32> to vector<1x8x8xf32>
    %279 = vector.shape_cast %275 : vector<8x8xf32> to vector<1x8x8xf32>
    %280 = vector.shape_cast %276 : vector<8x8xf32> to vector<1x8x8xf32>
    %281 = vector.shape_cast %277 : vector<8x8xf32> to vector<1x8x8xf32>
    %282 = tpu.concatenate %278, %279, %280, %281 in 0 : vector<1x8x8xf32>, vector<1x8x8xf32>, vector<1x8x8xf32>, vector<1x8x8xf32> -> vector<4x8x8xf32>
    %283 = vector.extract_strided_slice %272 {offsets = [0, 0], sizes = [12, 8], strides = [1, 1]} : vector<12x32xf32> to vector<12x8xf32>
    %284 = vector.extract_strided_slice %272 {offsets = [0, 8], sizes = [12, 8], strides = [1, 1]} : vector<12x32xf32> to vector<12x8xf32>
    %285 = vector.extract_strided_slice %272 {offsets = [0, 16], sizes = [12, 8], strides = [1, 1]} : vector<12x32xf32> to vector<12x8xf32>
    %286 = vector.extract_strided_slice %272 {offsets = [0, 24], sizes = [12, 8], strides = [1, 1]} : vector<12x32xf32> to vector<12x8xf32>
    %287 = vector.shape_cast %283 : vector<12x8xf32> to vector<1x12x8xf32>
    %288 = vector.shape_cast %284 : vector<12x8xf32> to vector<1x12x8xf32>
    %289 = vector.shape_cast %285 : vector<12x8xf32> to vector<1x12x8xf32>
    %290 = vector.shape_cast %286 : vector<12x8xf32> to vector<1x12x8xf32>
    %291 = tpu.concatenate %287, %288, %289, %290 in 0 : vector<1x12x8xf32>, vector<1x12x8xf32>, vector<1x12x8xf32>, vector<1x12x8xf32> -> vector<4x12x8xf32>
    %292 = vector.extract_strided_slice %273 {offsets = [0, 0], sizes = [12, 8], strides = [1, 1]} : vector<12x32xf32> to vector<12x8xf32>
    %293 = vector.extract_strided_slice %273 {offsets = [0, 8], sizes = [12, 8], strides = [1, 1]} : vector<12x32xf32> to vector<12x8xf32>
    %294 = vector.extract_strided_slice %273 {offsets = [0, 16], sizes = [12, 8], strides = [1, 1]} : vector<12x32xf32> to vector<12x8xf32>
    %295 = vector.extract_strided_slice %273 {offsets = [0, 24], sizes = [12, 8], strides = [1, 1]} : vector<12x32xf32> to vector<12x8xf32>
    %296 = vector.shape_cast %292 : vector<12x8xf32> to vector<1x12x8xf32>
    %297 = vector.shape_cast %293 : vector<12x8xf32> to vector<1x12x8xf32>
    %298 = vector.shape_cast %294 : vector<12x8xf32> to vector<1x12x8xf32>
    %299 = vector.shape_cast %295 : vector<12x8xf32> to vector<1x12x8xf32>
    %300 = tpu.concatenate %296, %297, %298, %299 in 0 : vector<1x12x8xf32>, vector<1x12x8xf32>, vector<1x12x8xf32>, vector<1x12x8xf32> -> vector<4x12x8xf32>
    "tpu.trace_start"() <{level = 10 : i32, message = "hqd,hkd->hqk"}> : () -> ()
    %cst_103 = arith.constant dense<0.000000e+00> : vector<4x8x12xf32>
    %301 = tpu.matmul %282, %291, %cst_103 {dimension_numbers = #tpu.dot_dimension_numbers<[2], [2], [1], [1], [0, 0, 0, 1, 1, 1], [0], [0]>} : vector<4x8x8xf32>, vector<4x12x8xf32>, vector<4x8x12xf32> -> vector<4x8x12xf32>
    "tpu.trace_stop"() : () -> ()
    %cst_104 = arith.constant 0.353553385 : f32
    %302 = vector.broadcast %cst_104 : f32 to vector<4x8x12xf32>
    %303 = arith.mulf %301, %302 : vector<4x8x12xf32>
    %cst_105 = arith.constant dense<0xFF800000> : vector<4x8xf32>
    %304 = vector.multi_reduction <maximumf>, %303, %cst_105 [2] : vector<4x8x12xf32> to vector<4x8xf32>
    %305 = vector.shape_cast %304 : vector<4x8xf32> to vector<4x8x1xf32>
    %306 = vector.broadcast %305 : vector<4x8x1xf32> to vector<4x8x12xf32>
    %307 = arith.subf %303, %306 : vector<4x8x12xf32>
    %308 = math.exp %307 : vector<4x8x12xf32>
    %cst_106 = arith.constant dense<0.000000e+00> : vector<4x8xf32>
    %309 = vector.multi_reduction <add>, %308, %cst_106 [2] : vector<4x8x12xf32> to vector<4x8xf32>
    %310 = vector.shape_cast %309 : vector<4x8xf32> to vector<4x8x1xf32>
    %311 = tpu.reciprocal %310 {approx = true} : vector<4x8x1xf32> -> vector<4x8x1xf32>
    %312 = vector.broadcast %311 : vector<4x8x1xf32> to vector<4x8x12xf32>
    %313 = arith.mulf %308, %312 : vector<4x8x12xf32>
    "tpu.trace_start"() <{level = 10 : i32, message = "hqk,hkd->hqd"}> : () -> ()
    %cst_107 = arith.constant dense<0.000000e+00> : vector<4x8x8xf32>
    %314 = tpu.matmul %313, %300, %cst_107 {dimension_numbers = #tpu.dot_dimension_numbers<[2], [1], [1], [2], [0, 0, 0, 1, 1, 2], [0], [0]>} : vector<4x8x12xf32>, vector<4x12x8xf32>, vector<4x8x8xf32> -> vector<4x8x8xf32>
    "tpu.trace_stop"() : () -> ()
    %315 = vector.extract_strided_slice %314 {offsets = [0, 0, 0], sizes = [1, 8, 8], strides = [1, 1, 1]} : vector<4x8x8xf32> to vector<1x8x8xf32>
    %316 = vector.shape_cast %315 : vector<1x8x8xf32> to vector<8x8xf32>
    %317 = vector.extract_strided_slice %314 {offsets = [1, 0, 0], sizes = [1, 8, 8], strides = [1, 1, 1]} : vector<4x8x8xf32> to vector<1x8x8xf32>
    %318 = vector.shape_cast %317 : vector<1x8x8xf32> to vector<8x8xf32>
    %319 = vector.extract_strided_slice %314 {offsets = [2, 0, 0], sizes = [1, 8, 8], strides = [1, 1, 1]} : vector<4x8x8xf32> to vector<1x8x8xf32>
    %320 = vector.shape_cast %319 : vector<1x8x8xf32> to vector<8x8xf32>
    %321 = vector.extract_strided_slice %314 {offsets = [3, 0, 0], sizes = [1, 8, 8], strides = [1, 1, 1]} : vector<4x8x8xf32> to vector<1x8x8xf32>
    %322 = vector.shape_cast %321 : vector<1x8x8xf32> to vector<8x8xf32>
    %323 = tpu.concatenate %316, %318, %320, %322 in 1 : vector<8x8xf32>, vector<8x8xf32>, vector<8x8xf32>, vector<8x8xf32> -> vector<8x32xf32>
    %cst_108 = arith.constant dense<0.000000e+00> : vector<8x32xf32>
    %324 = tpu.matmul %323, %259, %cst_108 {dimension_numbers = #tpu.dot_dimension_numbers<[1], [0], [0], [1], [0, 0, 1, 1], [], []>} : vector<8x32xf32>, vector<32x32xf32>, vector<8x32xf32> -> vector<8x32xf32>
    %325 = vector.broadcast %261 : vector<1x32xf32> to vector<8x32xf32>
    %326 = arith.addf %324, %325 : vector<8x32xf32>
    %327 = arith.addf %253, %326 : vector<8x32xf32>
    %cst_109 = arith.constant dense<0.000000e+00> : vector<8x32xf32>
    %328 = tpu.matmul %0, %327, %cst_109 {dimension_numbers = #tpu.dot_dimension_numbers<[1], [0], [0], [1], [0, 0, 1, 1], [], []>} : vector<8x8xf32>, vector<8x32xf32>, vector<8x32xf32> -> vector<8x32xf32>
    %329 = arith.subf %327, %328 : vector<8x32xf32>
    %c1_110 = arith.constant 1 : index
    %c0_111 = arith.constant 0 : index
    %c0_112 = arith.constant 0 : index
    %330 = vector.load %arg8[%c1_110, %c0_111, %c0_112] : memref<2x32x64xf32, #tpu.memory_space<vmem>>, vector<1x32x64xf32>
    %331 = vector.shape_cast %330 : vector<1x32x64xf32> to vector<32x64xf32>
    %cst_113 = arith.constant dense<0.000000e+00> : vector<8x64xf32>
    %332 = tpu.matmul %329, %331, %cst_113 {dimension_numbers = #tpu.dot_dimension_numbers<[1], [0], [0], [1], [0, 0, 1, 1], [], []>} : vector<8x32xf32>, vector<32x64xf32>, vector<8x64xf32> -> vector<8x64xf32>
    %cst_114 = arith.constant 0.000000e+00 : f32
    %333 = vector.broadcast %cst_114 : f32 to vector<8x64xf32>
    %334 = arith.maximumf %332, %333 : vector<8x64xf32>
    %c1_115 = arith.constant 1 : index
    %c0_116 = arith.constant 0 : index
    %c0_117 = arith.constant 0 : index
    %335 = vector.load %arg9[%c1_115, %c0_116, %c0_117] : memref<2x64x32xf32, #tpu.memory_space<vmem>>, vector<1x64x32xf32>
    %336 = vector.shape_cast %335 : vector<1x64x32xf32> to vector<64x32xf32>
    %cst_118 = arith.constant dense<0.000000e+00> : vector<8x32xf32>
    %337 = tpu.matmul %334, %336, %cst_118 {dimension_numbers = #tpu.dot_dimension_numbers<[1], [0], [0], [1], [0, 0, 1, 1], [], []>} : vector<8x64xf32>, vector<64x32xf32>, vector<8x32xf32> -> vector<8x32xf32>
    %338 = arith.addf %329, %337 : vector<8x32xf32>
    %cst_119 = arith.constant dense<0.000000e+00> : vector<8x32xf32>
    %339 = tpu.matmul %0, %338, %cst_119 {dimension_numbers = #tpu.dot_dimension_numbers<[1], [0], [0], [1], [0, 0, 1, 1], [], []>} : vector<8x8xf32>, vector<8x32xf32>, vector<8x32xf32> -> vector<8x32xf32>
    %340 = arith.subf %338, %339 : vector<8x32xf32>
    %341 = arith.addf %252, %328 : vector<8x32xf32>
    %342 = arith.addf %341, %339 : vector<8x32xf32>
    %c1_120 = arith.constant 1 : index
    %c0_121 = arith.constant 0 : index
    %c0_122 = arith.constant 0 : index
    %343 = vector.load %arg10[%c1_120, %c0_121, %c0_122] : memref<2x96x4xf32, #tpu.memory_space<vmem>>, vector<1x96x4xf32>
    %344 = vector.shape_cast %343 : vector<1x96x4xf32> to vector<96x4xf32>
    %c1_i32_123 = arith.constant 1 : i32
    %345 = tpu.dynamic_rotate %342 by %c1_i32_123 dim 0 : vector<8x32xf32>, i32 -> vector<8x32xf32>
    %c7_i32_124 = arith.constant 7 : i32
    %346 = tpu.dynamic_rotate %342 by %c7_i32_124 dim 0 : vector<8x32xf32>, i32 -> vector<8x32xf32>
    %347 = tpu.concatenate %345, %342, %346 in 1 : vector<8x32xf32>, vector<8x32xf32>, vector<8x32xf32> -> vector<8x96xf32>
    %cst_125 = arith.constant dense<0.000000e+00> : vector<8x4xf32>
    %348 = tpu.matmul %347, %344, %cst_125 {dimension_numbers = #tpu.dot_dimension_numbers<[1], [0], [0], [1], [0, 0, 1, 1], [], []>} : vector<8x96xf32>, vector<96x4xf32>, vector<8x4xf32> -> vector<8x4xf32>
    %349 = arith.addf %181, %348 : vector<8x4xf32>
    %cst_126 = arith.constant dense<0.000000e+00> : vector<8xf32>
    %350 = vector.multi_reduction <add>, %340, %cst_126 [1] : vector<8x32xf32> to vector<8xf32>
    %351 = vector.shape_cast %350 : vector<8xf32> to vector<8x1xf32>
    %cst_127 = arith.constant 3.200000e+01 : f32
    %352 = vector.broadcast %cst_127 : f32 to vector<8x1xf32>
    %353 = arith.divf %351, %352 : vector<8x1xf32>
    %354 = vector.broadcast %353 : vector<8x1xf32> to vector<8x32xf32>
    %355 = arith.subf %340, %354 : vector<8x32xf32>
    %356 = arith.mulf %355, %355 : vector<8x32xf32>
    %cst_128 = arith.constant dense<0.000000e+00> : vector<8xf32>
    %357 = vector.multi_reduction <add>, %356, %cst_128 [1] : vector<8x32xf32> to vector<8xf32>
    %358 = vector.shape_cast %357 : vector<8xf32> to vector<8x1xf32>
    %cst_129 = arith.constant 3.200000e+01 : f32
    %359 = vector.broadcast %cst_129 : f32 to vector<8x1xf32>
    %360 = arith.divf %358, %359 : vector<8x1xf32>
    %361 = vector.broadcast %353 : vector<8x1xf32> to vector<8x32xf32>
    %362 = arith.subf %340, %361 : vector<8x32xf32>
    %cst_130 = arith.constant 9.99999974E-6 : f32
    %363 = vector.broadcast %cst_130 : f32 to vector<8x1xf32>
    %364 = arith.addf %360, %363 : vector<8x1xf32>
    %365 = math.rsqrt %364 : vector<8x1xf32>
    %366 = vector.broadcast %365 : vector<8x1xf32> to vector<8x32xf32>
    %367 = arith.mulf %362, %366 : vector<8x32xf32>
    %368 = vector.broadcast %1 : vector<1x32xf32> to vector<8x32xf32>
    %369 = arith.mulf %367, %368 : vector<8x32xf32>
    %370 = vector.broadcast %2 : vector<1x32xf32> to vector<8x32xf32>
    %371 = arith.addf %369, %370 : vector<8x32xf32>
    %cst_131 = arith.constant dense<0.000000e+00> : vector<32xf32>
    %372 = vector.multi_reduction <add>, %371, %cst_131 [0] : vector<8x32xf32> to vector<32xf32>
    %373 = vector.shape_cast %372 : vector<32xf32> to vector<1x32xf32>
    %cst_132 = arith.constant 8.000000e+00 : f32
    %374 = vector.broadcast %cst_132 : f32 to vector<1x32xf32>
    %375 = arith.divf %373, %374 : vector<1x32xf32>
    %376 = vector.broadcast %375 : vector<1x32xf32> to vector<8x32xf32>
    %377 = arith.subf %371, %376 : vector<8x32xf32>
    %cst_133 = arith.constant dense<0.000000e+00> : vector<8x4xf32>
    %378 = tpu.matmul %377, %4, %cst_133 {dimension_numbers = #tpu.dot_dimension_numbers<[1], [0], [0], [1], [0, 0, 1, 1], [], []>} : vector<8x32xf32>, vector<32x4xf32>, vector<8x4xf32> -> vector<8x4xf32>
    %379 = vector.broadcast %3 : vector<1x4xf32> to vector<8x4xf32>
    %380 = arith.addf %378, %379 : vector<8x4xf32>
    %381 = tpu.concatenate %380, %349 in 1 : vector<8x4xf32>, vector<8x4xf32> -> vector<8x8xf32>
    %c0_134 = arith.constant 0 : index
    %c0_135 = arith.constant 0 : index
    %c0_136 = arith.constant 0 : index
    %382 = vector.load %arg13[%c0_134, %c0_135, %c0_136] : memref<2x8x8xf32, #tpu.memory_space<vmem>>, vector<1x8x8xf32>
    %383 = vector.shape_cast %382 : vector<1x8x8xf32> to vector<8x8xf32>
    %384 = vector.shape_cast %381 : vector<8x8xf32> to vector<1x8x8xf32>
    tpu.vector_store %arg13[%c0_134, %c0_135, %c0_136], %384 {strides = array<i32>} : memref<2x8x8xf32, #tpu.memory_space<vmem>>, vector<1x8x8xf32>,
    %c1_137 = arith.constant 1 : index
    %c0_138 = arith.constant 0 : index
    %c0_139 = arith.constant 0 : index
    %385 = vector.load %arg0[%c1_137, %c0_138, %c0_139] : memref<2x8x32xf32, #tpu.memory_space<vmem>>, vector<1x8x32xf32>
    %386 = vector.shape_cast %385 : vector<1x8x32xf32> to vector<8x32xf32>
    %c1_140 = arith.constant 1 : index
    %c0_141 = arith.constant 0 : index
    %c0_142 = arith.constant 0 : index
    %387 = vector.load %arg1[%c1_140, %c0_141, %c0_142] : memref<2x12x32xf32, #tpu.memory_space<vmem>>, vector<1x12x32xf32>
    %388 = vector.shape_cast %387 : vector<1x12x32xf32> to vector<12x32xf32>
    %c1_143 = arith.constant 1 : index
    %c0_144 = arith.constant 0 : index
    %c0_145 = arith.constant 0 : index
    %389 = vector.load %arg2[%c1_143, %c0_144, %c0_145] : memref<2x8x4xf32, #tpu.memory_space<vmem>>, vector<1x8x4xf32>
    %390 = vector.shape_cast %389 : vector<1x8x4xf32> to vector<8x4xf32>
    %c0_146 = arith.constant 0 : index
    %c0_147 = arith.constant 0 : index
    %c0_148 = arith.constant 0 : index
    %391 = vector.load %arg4[%c0_146, %c0_147, %c0_148] : memref<4x32x96xf32, #tpu.memory_space<vmem>>, vector<1x32x96xf32>
    %392 = vector.shape_cast %391 : vector<1x32x96xf32> to vector<32x96xf32>
    %c0_149 = arith.constant 0 : index
    %c0_150 = arith.constant 0 : index
    %c0_151 = arith.constant 0 : index
    %393 = vector.load %arg5[%c0_149, %c0_150, %c0_151] : memref<4x1x96xf32, #tpu.memory_space<vmem>>, vector<1x1x96xf32>
    %394 = vector.shape_cast %393 : vector<1x1x96xf32> to vector<1x96xf32>
    %c0_152 = arith.constant 0 : index
    %c0_153 = arith.constant 0 : index
    %c0_154 = arith.constant 0 : index
    %395 = vector.load %arg6[%c0_152, %c0_153, %c0_154] : memref<4x32x32xf32, #tpu.memory_space<vmem>>, vector<1x32x32xf32>
    %396 = vector.shape_cast %395 : vector<1x32x32xf32> to vector<32x32xf32>
    %c0_155 = arith.constant 0 : index
    %c0_156 = arith.constant 0 : index
    %c0_157 = arith.constant 0 : index
    %397 = vector.load %arg7[%c0_155, %c0_156, %c0_157] : memref<4x1x32xf32, #tpu.memory_space<vmem>>, vector<1x1x32xf32>
    %398 = vector.shape_cast %397 : vector<1x1x32xf32> to vector<1x32xf32>
    %cst_158 = arith.constant dense<0.000000e+00> : vector<8x96xf32>
    %399 = tpu.matmul %386, %392, %cst_158 {dimension_numbers = #tpu.dot_dimension_numbers<[1], [0], [0], [1], [0, 0, 1, 1], [], []>} : vector<8x32xf32>, vector<32x96xf32>, vector<8x96xf32> -> vector<8x96xf32>
    %400 = vector.broadcast %394 : vector<1x96xf32> to vector<8x96xf32>
    %401 = arith.addf %399, %400 : vector<8x96xf32>
    %402 = vector.extract_strided_slice %401 {offsets = [0, 0], sizes = [8, 32], strides = [1, 1]} : vector<8x96xf32> to vector<8x32xf32>
    %403 = vector.extract_strided_slice %401 {offsets = [0, 32], sizes = [8, 32], strides = [1, 1]} : vector<8x96xf32> to vector<8x32xf32>
    %404 = vector.extract_strided_slice %401 {offsets = [0, 64], sizes = [8, 32], strides = [1, 1]} : vector<8x96xf32> to vector<8x32xf32>
    %405 = vector.extract_strided_slice %402 {offsets = [0, 0], sizes = [8, 8], strides = [1, 1]} : vector<8x32xf32> to vector<8x8xf32>
    %406 = vector.extract_strided_slice %402 {offsets = [0, 8], sizes = [8, 8], strides = [1, 1]} : vector<8x32xf32> to vector<8x8xf32>
    %407 = vector.extract_strided_slice %402 {offsets = [0, 16], sizes = [8, 8], strides = [1, 1]} : vector<8x32xf32> to vector<8x8xf32>
    %408 = vector.extract_strided_slice %402 {offsets = [0, 24], sizes = [8, 8], strides = [1, 1]} : vector<8x32xf32> to vector<8x8xf32>
    %409 = vector.shape_cast %405 : vector<8x8xf32> to vector<1x8x8xf32>
    %410 = vector.shape_cast %406 : vector<8x8xf32> to vector<1x8x8xf32>
    %411 = vector.shape_cast %407 : vector<8x8xf32> to vector<1x8x8xf32>
    %412 = vector.shape_cast %408 : vector<8x8xf32> to vector<1x8x8xf32>
    %413 = tpu.concatenate %409, %410, %411, %412 in 0 : vector<1x8x8xf32>, vector<1x8x8xf32>, vector<1x8x8xf32>, vector<1x8x8xf32> -> vector<4x8x8xf32>
    %414 = vector.extract_strided_slice %403 {offsets = [0, 0], sizes = [8, 8], strides = [1, 1]} : vector<8x32xf32> to vector<8x8xf32>
    %415 = vector.extract_strided_slice %403 {offsets = [0, 8], sizes = [8, 8], strides = [1, 1]} : vector<8x32xf32> to vector<8x8xf32>
    %416 = vector.extract_strided_slice %403 {offsets = [0, 16], sizes = [8, 8], strides = [1, 1]} : vector<8x32xf32> to vector<8x8xf32>
    %417 = vector.extract_strided_slice %403 {offsets = [0, 24], sizes = [8, 8], strides = [1, 1]} : vector<8x32xf32> to vector<8x8xf32>
    %418 = vector.shape_cast %414 : vector<8x8xf32> to vector<1x8x8xf32>
    %419 = vector.shape_cast %415 : vector<8x8xf32> to vector<1x8x8xf32>
    %420 = vector.shape_cast %416 : vector<8x8xf32> to vector<1x8x8xf32>
    %421 = vector.shape_cast %417 : vector<8x8xf32> to vector<1x8x8xf32>
    %422 = tpu.concatenate %418, %419, %420, %421 in 0 : vector<1x8x8xf32>, vector<1x8x8xf32>, vector<1x8x8xf32>, vector<1x8x8xf32> -> vector<4x8x8xf32>
    %423 = vector.extract_strided_slice %404 {offsets = [0, 0], sizes = [8, 8], strides = [1, 1]} : vector<8x32xf32> to vector<8x8xf32>
    %424 = vector.extract_strided_slice %404 {offsets = [0, 8], sizes = [8, 8], strides = [1, 1]} : vector<8x32xf32> to vector<8x8xf32>
    %425 = vector.extract_strided_slice %404 {offsets = [0, 16], sizes = [8, 8], strides = [1, 1]} : vector<8x32xf32> to vector<8x8xf32>
    %426 = vector.extract_strided_slice %404 {offsets = [0, 24], sizes = [8, 8], strides = [1, 1]} : vector<8x32xf32> to vector<8x8xf32>
    %427 = vector.shape_cast %423 : vector<8x8xf32> to vector<1x8x8xf32>
    %428 = vector.shape_cast %424 : vector<8x8xf32> to vector<1x8x8xf32>
    %429 = vector.shape_cast %425 : vector<8x8xf32> to vector<1x8x8xf32>
    %430 = vector.shape_cast %426 : vector<8x8xf32> to vector<1x8x8xf32>
    %431 = tpu.concatenate %427, %428, %429, %430 in 0 : vector<1x8x8xf32>, vector<1x8x8xf32>, vector<1x8x8xf32>, vector<1x8x8xf32> -> vector<4x8x8xf32>
    "tpu.trace_start"() <{level = 10 : i32, message = "hqd,hkd->hqk"}> : () -> ()
    %cst_159 = arith.constant dense<0.000000e+00> : vector<4x8x8xf32>
    %432 = tpu.matmul %413, %422, %cst_159 {dimension_numbers = #tpu.dot_dimension_numbers<[2], [2], [1], [1], [0, 0, 0, 1, 1, 1], [0], [0]>} : vector<4x8x8xf32>, vector<4x8x8xf32>, vector<4x8x8xf32> -> vector<4x8x8xf32>
    "tpu.trace_stop"() : () -> ()
    %cst_160 = arith.constant 0.353553385 : f32
    %433 = vector.broadcast %cst_160 : f32 to vector<4x8x8xf32>
    %434 = arith.mulf %432, %433 : vector<4x8x8xf32>
    %cst_161 = arith.constant 0xFF800000 : f32
    %435 = vector.broadcast %cst_161 : f32 to vector<4x8x8xf32>
    %436 = arith.select %7, %434, %435 : vector<4x8x8xi1>, vector<4x8x8xf32>
    %cst_162 = arith.constant dense<0xFF800000> : vector<4x8xf32>
    %437 = vector.multi_reduction <maximumf>, %436, %cst_162 [2] : vector<4x8x8xf32> to vector<4x8xf32>
    %438 = vector.shape_cast %437 : vector<4x8xf32> to vector<4x8x1xf32>
    %439 = vector.broadcast %438 : vector<4x8x1xf32> to vector<4x8x8xf32>
    %440 = arith.subf %436, %439 : vector<4x8x8xf32>
    %441 = math.exp %440 : vector<4x8x8xf32>
    %cst_163 = arith.constant dense<0.000000e+00> : vector<4x8xf32>
    %442 = vector.multi_reduction <add>, %441, %cst_163 [2] : vector<4x8x8xf32> to vector<4x8xf32>
    %443 = vector.shape_cast %442 : vector<4x8xf32> to vector<4x8x1xf32>
    %444 = tpu.reciprocal %443 {approx = true} : vector<4x8x1xf32> -> vector<4x8x1xf32>
    %445 = vector.broadcast %444 : vector<4x8x1xf32> to vector<4x8x8xf32>
    %446 = arith.mulf %441, %445 : vector<4x8x8xf32>
    "tpu.trace_start"() <{level = 10 : i32, message = "hqk,hkd->hqd"}> : () -> ()
    %cst_164 = arith.constant dense<0.000000e+00> : vector<4x8x8xf32>
    %447 = tpu.matmul %446, %431, %cst_164 {dimension_numbers = #tpu.dot_dimension_numbers<[2], [1], [1], [2], [0, 0, 0, 1, 1, 2], [0], [0]>} : vector<4x8x8xf32>, vector<4x8x8xf32>, vector<4x8x8xf32> -> vector<4x8x8xf32>
    "tpu.trace_stop"() : () -> ()
    %448 = vector.extract_strided_slice %447 {offsets = [0, 0, 0], sizes = [1, 8, 8], strides = [1, 1, 1]} : vector<4x8x8xf32> to vector<1x8x8xf32>
    %449 = vector.shape_cast %448 : vector<1x8x8xf32> to vector<8x8xf32>
    %450 = vector.extract_strided_slice %447 {offsets = [1, 0, 0], sizes = [1, 8, 8], strides = [1, 1, 1]} : vector<4x8x8xf32> to vector<1x8x8xf32>
    %451 = vector.shape_cast %450 : vector<1x8x8xf32> to vector<8x8xf32>
    %452 = vector.extract_strided_slice %447 {offsets = [2, 0, 0], sizes = [1, 8, 8], strides = [1, 1, 1]} : vector<4x8x8xf32> to vector<1x8x8xf32>
    %453 = vector.shape_cast %452 : vector<1x8x8xf32> to vector<8x8xf32>
    %454 = vector.extract_strided_slice %447 {offsets = [3, 0, 0], sizes = [1, 8, 8], strides = [1, 1, 1]} : vector<4x8x8xf32> to vector<1x8x8xf32>
    %455 = vector.shape_cast %454 : vector<1x8x8xf32> to vector<8x8xf32>
    %456 = tpu.concatenate %449, %451, %453, %455 in 1 : vector<8x8xf32>, vector<8x8xf32>, vector<8x8xf32>, vector<8x8xf32> -> vector<8x32xf32>
    %cst_165 = arith.constant dense<0.000000e+00> : vector<8x32xf32>
    %457 = tpu.matmul %456, %396, %cst_165 {dimension_numbers = #tpu.dot_dimension_numbers<[1], [0], [0], [1], [0, 0, 1, 1], [], []>} : vector<8x32xf32>, vector<32x32xf32>, vector<8x32xf32> -> vector<8x32xf32>
    %458 = vector.broadcast %398 : vector<1x32xf32> to vector<8x32xf32>
    %459 = arith.addf %457, %458 : vector<8x32xf32>
    %460 = arith.addf %386, %459 : vector<8x32xf32>
    %cst_166 = arith.constant dense<0.000000e+00> : vector<8x32xf32>
    %461 = tpu.matmul %0, %460, %cst_166 {dimension_numbers = #tpu.dot_dimension_numbers<[1], [0], [0], [1], [0, 0, 1, 1], [], []>} : vector<8x8xf32>, vector<8x32xf32>, vector<8x32xf32> -> vector<8x32xf32>
    %462 = arith.subf %460, %461 : vector<8x32xf32>
    %c1_167 = arith.constant 1 : index
    %c0_168 = arith.constant 0 : index
    %c0_169 = arith.constant 0 : index
    %463 = vector.load %arg4[%c1_167, %c0_168, %c0_169] : memref<4x32x96xf32, #tpu.memory_space<vmem>>, vector<1x32x96xf32>
    %464 = vector.shape_cast %463 : vector<1x32x96xf32> to vector<32x96xf32>
    %c1_170 = arith.constant 1 : index
    %c0_171 = arith.constant 0 : index
    %c0_172 = arith.constant 0 : index
    %465 = vector.load %arg5[%c1_170, %c0_171, %c0_172] : memref<4x1x96xf32, #tpu.memory_space<vmem>>, vector<1x1x96xf32>
    %466 = vector.shape_cast %465 : vector<1x1x96xf32> to vector<1x96xf32>
    %c1_173 = arith.constant 1 : index
    %c0_174 = arith.constant 0 : index
    %c0_175 = arith.constant 0 : index
    %467 = vector.load %arg6[%c1_173, %c0_174, %c0_175] : memref<4x32x32xf32, #tpu.memory_space<vmem>>, vector<1x32x32xf32>
    %468 = vector.shape_cast %467 : vector<1x32x32xf32> to vector<32x32xf32>
    %c1_176 = arith.constant 1 : index
    %c0_177 = arith.constant 0 : index
    %c0_178 = arith.constant 0 : index
    %469 = vector.load %arg7[%c1_176, %c0_177, %c0_178] : memref<4x1x32xf32, #tpu.memory_space<vmem>>, vector<1x1x32xf32>
    %470 = vector.shape_cast %469 : vector<1x1x32xf32> to vector<1x32xf32>
    %471 = vector.extract_strided_slice %464 {offsets = [0, 0], sizes = [32, 32], strides = [1, 1]} : vector<32x96xf32> to vector<32x32xf32>
    %cst_179 = arith.constant dense<0.000000e+00> : vector<8x32xf32>
    %472 = tpu.matmul %462, %471, %cst_179 {dimension_numbers = #tpu.dot_dimension_numbers<[1], [0], [0], [1], [0, 0, 1, 1], [], []>} : vector<8x32xf32>, vector<32x32xf32>, vector<8x32xf32> -> vector<8x32xf32>
    %473 = vector.extract_strided_slice %466 {offsets = [0, 0], sizes = [1, 32], strides = [1, 1]} : vector<1x96xf32> to vector<1x32xf32>
    %474 = vector.broadcast %473 : vector<1x32xf32> to vector<8x32xf32>
    %475 = arith.addf %472, %474 : vector<8x32xf32>
    %476 = vector.extract_strided_slice %464 {offsets = [0, 32], sizes = [32, 64], strides = [1, 1]} : vector<32x96xf32> to vector<32x64xf32>
    %cst_180 = arith.constant dense<0.000000e+00> : vector<12x64xf32>
    %477 = tpu.matmul %388, %476, %cst_180 {dimension_numbers = #tpu.dot_dimension_numbers<[1], [0], [0], [1], [0, 0, 1, 1], [], []>} : vector<12x32xf32>, vector<32x64xf32>, vector<12x64xf32> -> vector<12x64xf32>
    %478 = vector.extract_strided_slice %466 {offsets = [0, 32], sizes = [1, 64], strides = [1, 1]} : vector<1x96xf32> to vector<1x64xf32>
    %479 = vector.broadcast %478 : vector<1x64xf32> to vector<12x64xf32>
    %480 = arith.addf %477, %479 : vector<12x64xf32>
    %481 = vector.extract_strided_slice %480 {offsets = [0, 0], sizes = [12, 32], strides = [1, 1]} : vector<12x64xf32> to vector<12x32xf32>
    %482 = vector.extract_strided_slice %480 {offsets = [0, 32], sizes = [12, 32], strides = [1, 1]} : vector<12x64xf32> to vector<12x32xf32>
    %483 = vector.extract_strided_slice %475 {offsets = [0, 0], sizes = [8, 8], strides = [1, 1]} : vector<8x32xf32> to vector<8x8xf32>
    %484 = vector.extract_strided_slice %475 {offsets = [0, 8], sizes = [8, 8], strides = [1, 1]} : vector<8x32xf32> to vector<8x8xf32>
    %485 = vector.extract_strided_slice %475 {offsets = [0, 16], sizes = [8, 8], strides = [1, 1]} : vector<8x32xf32> to vector<8x8xf32>
    %486 = vector.extract_strided_slice %475 {offsets = [0, 24], sizes = [8, 8], strides = [1, 1]} : vector<8x32xf32> to vector<8x8xf32>
    %487 = vector.shape_cast %483 : vector<8x8xf32> to vector<1x8x8xf32>
    %488 = vector.shape_cast %484 : vector<8x8xf32> to vector<1x8x8xf32>
    %489 = vector.shape_cast %485 : vector<8x8xf32> to vector<1x8x8xf32>
    %490 = vector.shape_cast %486 : vector<8x8xf32> to vector<1x8x8xf32>
    %491 = tpu.concatenate %487, %488, %489, %490 in 0 : vector<1x8x8xf32>, vector<1x8x8xf32>, vector<1x8x8xf32>, vector<1x8x8xf32> -> vector<4x8x8xf32>
    %492 = vector.extract_strided_slice %481 {offsets = [0, 0], sizes = [12, 8], strides = [1, 1]} : vector<12x32xf32> to vector<12x8xf32>
    %493 = vector.extract_strided_slice %481 {offsets = [0, 8], sizes = [12, 8], strides = [1, 1]} : vector<12x32xf32> to vector<12x8xf32>
    %494 = vector.extract_strided_slice %481 {offsets = [0, 16], sizes = [12, 8], strides = [1, 1]} : vector<12x32xf32> to vector<12x8xf32>
    %495 = vector.extract_strided_slice %481 {offsets = [0, 24], sizes = [12, 8], strides = [1, 1]} : vector<12x32xf32> to vector<12x8xf32>
    %496 = vector.shape_cast %492 : vector<12x8xf32> to vector<1x12x8xf32>
    %497 = vector.shape_cast %493 : vector<12x8xf32> to vector<1x12x8xf32>
    %498 = vector.shape_cast %494 : vector<12x8xf32> to vector<1x12x8xf32>
    %499 = vector.shape_cast %495 : vector<12x8xf32> to vector<1x12x8xf32>
    %500 = tpu.concatenate %496, %497, %498, %499 in 0 : vector<1x12x8xf32>, vector<1x12x8xf32>, vector<1x12x8xf32>, vector<1x12x8xf32> -> vector<4x12x8xf32>
    %501 = vector.extract_strided_slice %482 {offsets = [0, 0], sizes = [12, 8], strides = [1, 1]} : vector<12x32xf32> to vector<12x8xf32>
    %502 = vector.extract_strided_slice %482 {offsets = [0, 8], sizes = [12, 8], strides = [1, 1]} : vector<12x32xf32> to vector<12x8xf32>
    %503 = vector.extract_strided_slice %482 {offsets = [0, 16], sizes = [12, 8], strides = [1, 1]} : vector<12x32xf32> to vector<12x8xf32>
    %504 = vector.extract_strided_slice %482 {offsets = [0, 24], sizes = [12, 8], strides = [1, 1]} : vector<12x32xf32> to vector<12x8xf32>
    %505 = vector.shape_cast %501 : vector<12x8xf32> to vector<1x12x8xf32>
    %506 = vector.shape_cast %502 : vector<12x8xf32> to vector<1x12x8xf32>
    %507 = vector.shape_cast %503 : vector<12x8xf32> to vector<1x12x8xf32>
    %508 = vector.shape_cast %504 : vector<12x8xf32> to vector<1x12x8xf32>
    %509 = tpu.concatenate %505, %506, %507, %508 in 0 : vector<1x12x8xf32>, vector<1x12x8xf32>, vector<1x12x8xf32>, vector<1x12x8xf32> -> vector<4x12x8xf32>
    "tpu.trace_start"() <{level = 10 : i32, message = "hqd,hkd->hqk"}> : () -> ()
    %cst_181 = arith.constant dense<0.000000e+00> : vector<4x8x12xf32>
    %510 = tpu.matmul %491, %500, %cst_181 {dimension_numbers = #tpu.dot_dimension_numbers<[2], [2], [1], [1], [0, 0, 0, 1, 1, 1], [0], [0]>} : vector<4x8x8xf32>, vector<4x12x8xf32>, vector<4x8x12xf32> -> vector<4x8x12xf32>
    "tpu.trace_stop"() : () -> ()
    %cst_182 = arith.constant 0.353553385 : f32
    %511 = vector.broadcast %cst_182 : f32 to vector<4x8x12xf32>
    %512 = arith.mulf %510, %511 : vector<4x8x12xf32>
    %cst_183 = arith.constant dense<0xFF800000> : vector<4x8xf32>
    %513 = vector.multi_reduction <maximumf>, %512, %cst_183 [2] : vector<4x8x12xf32> to vector<4x8xf32>
    %514 = vector.shape_cast %513 : vector<4x8xf32> to vector<4x8x1xf32>
    %515 = vector.broadcast %514 : vector<4x8x1xf32> to vector<4x8x12xf32>
    %516 = arith.subf %512, %515 : vector<4x8x12xf32>
    %517 = math.exp %516 : vector<4x8x12xf32>
    %cst_184 = arith.constant dense<0.000000e+00> : vector<4x8xf32>
    %518 = vector.multi_reduction <add>, %517, %cst_184 [2] : vector<4x8x12xf32> to vector<4x8xf32>
    %519 = vector.shape_cast %518 : vector<4x8xf32> to vector<4x8x1xf32>
    %520 = tpu.reciprocal %519 {approx = true} : vector<4x8x1xf32> -> vector<4x8x1xf32>
    %521 = vector.broadcast %520 : vector<4x8x1xf32> to vector<4x8x12xf32>
    %522 = arith.mulf %517, %521 : vector<4x8x12xf32>
    "tpu.trace_start"() <{level = 10 : i32, message = "hqk,hkd->hqd"}> : () -> ()
    %cst_185 = arith.constant dense<0.000000e+00> : vector<4x8x8xf32>
    %523 = tpu.matmul %522, %509, %cst_185 {dimension_numbers = #tpu.dot_dimension_numbers<[2], [1], [1], [2], [0, 0, 0, 1, 1, 2], [0], [0]>} : vector<4x8x12xf32>, vector<4x12x8xf32>, vector<4x8x8xf32> -> vector<4x8x8xf32>
    "tpu.trace_stop"() : () -> ()
    %524 = vector.extract_strided_slice %523 {offsets = [0, 0, 0], sizes = [1, 8, 8], strides = [1, 1, 1]} : vector<4x8x8xf32> to vector<1x8x8xf32>
    %525 = vector.shape_cast %524 : vector<1x8x8xf32> to vector<8x8xf32>
    %526 = vector.extract_strided_slice %523 {offsets = [1, 0, 0], sizes = [1, 8, 8], strides = [1, 1, 1]} : vector<4x8x8xf32> to vector<1x8x8xf32>
    %527 = vector.shape_cast %526 : vector<1x8x8xf32> to vector<8x8xf32>
    %528 = vector.extract_strided_slice %523 {offsets = [2, 0, 0], sizes = [1, 8, 8], strides = [1, 1, 1]} : vector<4x8x8xf32> to vector<1x8x8xf32>
    %529 = vector.shape_cast %528 : vector<1x8x8xf32> to vector<8x8xf32>
    %530 = vector.extract_strided_slice %523 {offsets = [3, 0, 0], sizes = [1, 8, 8], strides = [1, 1, 1]} : vector<4x8x8xf32> to vector<1x8x8xf32>
    %531 = vector.shape_cast %530 : vector<1x8x8xf32> to vector<8x8xf32>
    %532 = tpu.concatenate %525, %527, %529, %531 in 1 : vector<8x8xf32>, vector<8x8xf32>, vector<8x8xf32>, vector<8x8xf32> -> vector<8x32xf32>
    %cst_186 = arith.constant dense<0.000000e+00> : vector<8x32xf32>
    %533 = tpu.matmul %532, %468, %cst_186 {dimension_numbers = #tpu.dot_dimension_numbers<[1], [0], [0], [1], [0, 0, 1, 1], [], []>} : vector<8x32xf32>, vector<32x32xf32>, vector<8x32xf32> -> vector<8x32xf32>
    %534 = vector.broadcast %470 : vector<1x32xf32> to vector<8x32xf32>
    %535 = arith.addf %533, %534 : vector<8x32xf32>
    %536 = arith.addf %462, %535 : vector<8x32xf32>
    %cst_187 = arith.constant dense<0.000000e+00> : vector<8x32xf32>
    %537 = tpu.matmul %0, %536, %cst_187 {dimension_numbers = #tpu.dot_dimension_numbers<[1], [0], [0], [1], [0, 0, 1, 1], [], []>} : vector<8x8xf32>, vector<8x32xf32>, vector<8x32xf32> -> vector<8x32xf32>
    %538 = arith.subf %536, %537 : vector<8x32xf32>
    %c0_188 = arith.constant 0 : index
    %c0_189 = arith.constant 0 : index
    %c0_190 = arith.constant 0 : index
    %539 = vector.load %arg8[%c0_188, %c0_189, %c0_190] : memref<2x32x64xf32, #tpu.memory_space<vmem>>, vector<1x32x64xf32>
    %540 = vector.shape_cast %539 : vector<1x32x64xf32> to vector<32x64xf32>
    %cst_191 = arith.constant dense<0.000000e+00> : vector<8x64xf32>
    %541 = tpu.matmul %538, %540, %cst_191 {dimension_numbers = #tpu.dot_dimension_numbers<[1], [0], [0], [1], [0, 0, 1, 1], [], []>} : vector<8x32xf32>, vector<32x64xf32>, vector<8x64xf32> -> vector<8x64xf32>
    %cst_192 = arith.constant 0.000000e+00 : f32
    %542 = vector.broadcast %cst_192 : f32 to vector<8x64xf32>
    %543 = arith.maximumf %541, %542 : vector<8x64xf32>
    %c0_193 = arith.constant 0 : index
    %c0_194 = arith.constant 0 : index
    %c0_195 = arith.constant 0 : index
    %544 = vector.load %arg9[%c0_193, %c0_194, %c0_195] : memref<2x64x32xf32, #tpu.memory_space<vmem>>, vector<1x64x32xf32>
    %545 = vector.shape_cast %544 : vector<1x64x32xf32> to vector<64x32xf32>
    %cst_196 = arith.constant dense<0.000000e+00> : vector<8x32xf32>
    %546 = tpu.matmul %543, %545, %cst_196 {dimension_numbers = #tpu.dot_dimension_numbers<[1], [0], [0], [1], [0, 0, 1, 1], [], []>} : vector<8x64xf32>, vector<64x32xf32>, vector<8x32xf32> -> vector<8x32xf32>
    %547 = arith.addf %538, %546 : vector<8x32xf32>
    %cst_197 = arith.constant dense<0.000000e+00> : vector<8x32xf32>
    %548 = tpu.matmul %0, %547, %cst_197 {dimension_numbers = #tpu.dot_dimension_numbers<[1], [0], [0], [1], [0, 0, 1, 1], [], []>} : vector<8x8xf32>, vector<8x32xf32>, vector<8x32xf32> -> vector<8x32xf32>
    %549 = arith.subf %547, %548 : vector<8x32xf32>
    %550 = arith.addf %461, %537 : vector<8x32xf32>
    %551 = arith.addf %550, %548 : vector<8x32xf32>
    %c0_198 = arith.constant 0 : index
    %c0_199 = arith.constant 0 : index
    %c0_200 = arith.constant 0 : index
    %552 = vector.load %arg10[%c0_198, %c0_199, %c0_200] : memref<2x96x4xf32, #tpu.memory_space<vmem>>, vector<1x96x4xf32>
    %553 = vector.shape_cast %552 : vector<1x96x4xf32> to vector<96x4xf32>
    %c1_i32_201 = arith.constant 1 : i32
    %554 = tpu.dynamic_rotate %551 by %c1_i32_201 dim 0 : vector<8x32xf32>, i32 -> vector<8x32xf32>
    %c7_i32_202 = arith.constant 7 : i32
    %555 = tpu.dynamic_rotate %551 by %c7_i32_202 dim 0 : vector<8x32xf32>, i32 -> vector<8x32xf32>
    %556 = tpu.concatenate %554, %551, %555 in 1 : vector<8x32xf32>, vector<8x32xf32>, vector<8x32xf32> -> vector<8x96xf32>
    %cst_203 = arith.constant dense<0.000000e+00> : vector<8x4xf32>
    %557 = tpu.matmul %556, %553, %cst_203 {dimension_numbers = #tpu.dot_dimension_numbers<[1], [0], [0], [1], [0, 0, 1, 1], [], []>} : vector<8x96xf32>, vector<96x4xf32>, vector<8x4xf32> -> vector<8x4xf32>
    %558 = arith.addf %390, %557 : vector<8x4xf32>
    %c2_204 = arith.constant 2 : index
    %c0_205 = arith.constant 0 : index
    %c0_206 = arith.constant 0 : index
    %559 = vector.load %arg4[%c2_204, %c0_205, %c0_206] : memref<4x32x96xf32, #tpu.memory_space<vmem>>, vector<1x32x96xf32>
    %560 = vector.shape_cast %559 : vector<1x32x96xf32> to vector<32x96xf32>
    %c2_207 = arith.constant 2 : index
    %c0_208 = arith.constant 0 : index
    %c0_209 = arith.constant 0 : index
    %561 = vector.load %arg5[%c2_207, %c0_208, %c0_209] : memref<4x1x96xf32, #tpu.memory_space<vmem>>, vector<1x1x96xf32>
    %562 = vector.shape_cast %561 : vector<1x1x96xf32> to vector<1x96xf32>
    %c2_210 = arith.constant 2 : index
    %c0_211 = arith.constant 0 : index
    %c0_212 = arith.constant 0 : index
    %563 = vector.load %arg6[%c2_210, %c0_211, %c0_212] : memref<4x32x32xf32, #tpu.memory_space<vmem>>, vector<1x32x32xf32>
    %564 = vector.shape_cast %563 : vector<1x32x32xf32> to vector<32x32xf32>
    %c2_213 = arith.constant 2 : index
    %c0_214 = arith.constant 0 : index
    %c0_215 = arith.constant 0 : index
    %565 = vector.load %arg7[%c2_213, %c0_214, %c0_215] : memref<4x1x32xf32, #tpu.memory_space<vmem>>, vector<1x1x32xf32>
    %566 = vector.shape_cast %565 : vector<1x1x32xf32> to vector<1x32xf32>
    %cst_216 = arith.constant dense<0.000000e+00> : vector<8x96xf32>
    %567 = tpu.matmul %549, %560, %cst_216 {dimension_numbers = #tpu.dot_dimension_numbers<[1], [0], [0], [1], [0, 0, 1, 1], [], []>} : vector<8x32xf32>, vector<32x96xf32>, vector<8x96xf32> -> vector<8x96xf32>
    %568 = vector.broadcast %562 : vector<1x96xf32> to vector<8x96xf32>
    %569 = arith.addf %567, %568 : vector<8x96xf32>
    %570 = vector.extract_strided_slice %569 {offsets = [0, 0], sizes = [8, 32], strides = [1, 1]} : vector<8x96xf32> to vector<8x32xf32>
    %571 = vector.extract_strided_slice %569 {offsets = [0, 32], sizes = [8, 32], strides = [1, 1]} : vector<8x96xf32> to vector<8x32xf32>
    %572 = vector.extract_strided_slice %569 {offsets = [0, 64], sizes = [8, 32], strides = [1, 1]} : vector<8x96xf32> to vector<8x32xf32>
    %573 = vector.extract_strided_slice %570 {offsets = [0, 0], sizes = [8, 8], strides = [1, 1]} : vector<8x32xf32> to vector<8x8xf32>
    %574 = vector.extract_strided_slice %570 {offsets = [0, 8], sizes = [8, 8], strides = [1, 1]} : vector<8x32xf32> to vector<8x8xf32>
    %575 = vector.extract_strided_slice %570 {offsets = [0, 16], sizes = [8, 8], strides = [1, 1]} : vector<8x32xf32> to vector<8x8xf32>
    %576 = vector.extract_strided_slice %570 {offsets = [0, 24], sizes = [8, 8], strides = [1, 1]} : vector<8x32xf32> to vector<8x8xf32>
    %577 = vector.shape_cast %573 : vector<8x8xf32> to vector<1x8x8xf32>
    %578 = vector.shape_cast %574 : vector<8x8xf32> to vector<1x8x8xf32>
    %579 = vector.shape_cast %575 : vector<8x8xf32> to vector<1x8x8xf32>
    %580 = vector.shape_cast %576 : vector<8x8xf32> to vector<1x8x8xf32>
    %581 = tpu.concatenate %577, %578, %579, %580 in 0 : vector<1x8x8xf32>, vector<1x8x8xf32>, vector<1x8x8xf32>, vector<1x8x8xf32> -> vector<4x8x8xf32>
    %582 = vector.extract_strided_slice %571 {offsets = [0, 0], sizes = [8, 8], strides = [1, 1]} : vector<8x32xf32> to vector<8x8xf32>
    %583 = vector.extract_strided_slice %571 {offsets = [0, 8], sizes = [8, 8], strides = [1, 1]} : vector<8x32xf32> to vector<8x8xf32>
    %584 = vector.extract_strided_slice %571 {offsets = [0, 16], sizes = [8, 8], strides = [1, 1]} : vector<8x32xf32> to vector<8x8xf32>
    %585 = vector.extract_strided_slice %571 {offsets = [0, 24], sizes = [8, 8], strides = [1, 1]} : vector<8x32xf32> to vector<8x8xf32>
    %586 = vector.shape_cast %582 : vector<8x8xf32> to vector<1x8x8xf32>
    %587 = vector.shape_cast %583 : vector<8x8xf32> to vector<1x8x8xf32>
    %588 = vector.shape_cast %584 : vector<8x8xf32> to vector<1x8x8xf32>
    %589 = vector.shape_cast %585 : vector<8x8xf32> to vector<1x8x8xf32>
    %590 = tpu.concatenate %586, %587, %588, %589 in 0 : vector<1x8x8xf32>, vector<1x8x8xf32>, vector<1x8x8xf32>, vector<1x8x8xf32> -> vector<4x8x8xf32>
    %591 = vector.extract_strided_slice %572 {offsets = [0, 0], sizes = [8, 8], strides = [1, 1]} : vector<8x32xf32> to vector<8x8xf32>
    %592 = vector.extract_strided_slice %572 {offsets = [0, 8], sizes = [8, 8], strides = [1, 1]} : vector<8x32xf32> to vector<8x8xf32>
    %593 = vector.extract_strided_slice %572 {offsets = [0, 16], sizes = [8, 8], strides = [1, 1]} : vector<8x32xf32> to vector<8x8xf32>
    %594 = vector.extract_strided_slice %572 {offsets = [0, 24], sizes = [8, 8], strides = [1, 1]} : vector<8x32xf32> to vector<8x8xf32>
    %595 = vector.shape_cast %591 : vector<8x8xf32> to vector<1x8x8xf32>
    %596 = vector.shape_cast %592 : vector<8x8xf32> to vector<1x8x8xf32>
    %597 = vector.shape_cast %593 : vector<8x8xf32> to vector<1x8x8xf32>
    %598 = vector.shape_cast %594 : vector<8x8xf32> to vector<1x8x8xf32>
    %599 = tpu.concatenate %595, %596, %597, %598 in 0 : vector<1x8x8xf32>, vector<1x8x8xf32>, vector<1x8x8xf32>, vector<1x8x8xf32> -> vector<4x8x8xf32>
    "tpu.trace_start"() <{level = 10 : i32, message = "hqd,hkd->hqk"}> : () -> ()
    %cst_217 = arith.constant dense<0.000000e+00> : vector<4x8x8xf32>
    %600 = tpu.matmul %581, %590, %cst_217 {dimension_numbers = #tpu.dot_dimension_numbers<[2], [2], [1], [1], [0, 0, 0, 1, 1, 1], [0], [0]>} : vector<4x8x8xf32>, vector<4x8x8xf32>, vector<4x8x8xf32> -> vector<4x8x8xf32>
    "tpu.trace_stop"() : () -> ()
    %cst_218 = arith.constant 0.353553385 : f32
    %601 = vector.broadcast %cst_218 : f32 to vector<4x8x8xf32>
    %602 = arith.mulf %600, %601 : vector<4x8x8xf32>
    %cst_219 = arith.constant 0xFF800000 : f32
    %603 = vector.broadcast %cst_219 : f32 to vector<4x8x8xf32>
    %604 = arith.select %7, %602, %603 : vector<4x8x8xi1>, vector<4x8x8xf32>
    %cst_220 = arith.constant dense<0xFF800000> : vector<4x8xf32>
    %605 = vector.multi_reduction <maximumf>, %604, %cst_220 [2] : vector<4x8x8xf32> to vector<4x8xf32>
    %606 = vector.shape_cast %605 : vector<4x8xf32> to vector<4x8x1xf32>
    %607 = vector.broadcast %606 : vector<4x8x1xf32> to vector<4x8x8xf32>
    %608 = arith.subf %604, %607 : vector<4x8x8xf32>
    %609 = math.exp %608 : vector<4x8x8xf32>
    %cst_221 = arith.constant dense<0.000000e+00> : vector<4x8xf32>
    %610 = vector.multi_reduction <add>, %609, %cst_221 [2] : vector<4x8x8xf32> to vector<4x8xf32>
    %611 = vector.shape_cast %610 : vector<4x8xf32> to vector<4x8x1xf32>
    %612 = tpu.reciprocal %611 {approx = true} : vector<4x8x1xf32> -> vector<4x8x1xf32>
    %613 = vector.broadcast %612 : vector<4x8x1xf32> to vector<4x8x8xf32>
    %614 = arith.mulf %609, %613 : vector<4x8x8xf32>
    "tpu.trace_start"() <{level = 10 : i32, message = "hqk,hkd->hqd"}> : () -> ()
    %cst_222 = arith.constant dense<0.000000e+00> : vector<4x8x8xf32>
    %615 = tpu.matmul %614, %599, %cst_222 {dimension_numbers = #tpu.dot_dimension_numbers<[2], [1], [1], [2], [0, 0, 0, 1, 1, 2], [0], [0]>} : vector<4x8x8xf32>, vector<4x8x8xf32>, vector<4x8x8xf32> -> vector<4x8x8xf32>
    "tpu.trace_stop"() : () -> ()
    %616 = vector.extract_strided_slice %615 {offsets = [0, 0, 0], sizes = [1, 8, 8], strides = [1, 1, 1]} : vector<4x8x8xf32> to vector<1x8x8xf32>
    %617 = vector.shape_cast %616 : vector<1x8x8xf32> to vector<8x8xf32>
    %618 = vector.extract_strided_slice %615 {offsets = [1, 0, 0], sizes = [1, 8, 8], strides = [1, 1, 1]} : vector<4x8x8xf32> to vector<1x8x8xf32>
    %619 = vector.shape_cast %618 : vector<1x8x8xf32> to vector<8x8xf32>
    %620 = vector.extract_strided_slice %615 {offsets = [2, 0, 0], sizes = [1, 8, 8], strides = [1, 1, 1]} : vector<4x8x8xf32> to vector<1x8x8xf32>
    %621 = vector.shape_cast %620 : vector<1x8x8xf32> to vector<8x8xf32>
    %622 = vector.extract_strided_slice %615 {offsets = [3, 0, 0], sizes = [1, 8, 8], strides = [1, 1, 1]} : vector<4x8x8xf32> to vector<1x8x8xf32>
    %623 = vector.shape_cast %622 : vector<1x8x8xf32> to vector<8x8xf32>
    %624 = tpu.concatenate %617, %619, %621, %623 in 1 : vector<8x8xf32>, vector<8x8xf32>, vector<8x8xf32>, vector<8x8xf32> -> vector<8x32xf32>
    %cst_223 = arith.constant dense<0.000000e+00> : vector<8x32xf32>
    %625 = tpu.matmul %624, %564, %cst_223 {dimension_numbers = #tpu.dot_dimension_numbers<[1], [0], [0], [1], [0, 0, 1, 1], [], []>} : vector<8x32xf32>, vector<32x32xf32>, vector<8x32xf32> -> vector<8x32xf32>
    %626 = vector.broadcast %566 : vector<1x32xf32> to vector<8x32xf32>
    %627 = arith.addf %625, %626 : vector<8x32xf32>
    %628 = arith.addf %549, %627 : vector<8x32xf32>
    %cst_224 = arith.constant dense<0.000000e+00> : vector<8x32xf32>
    %629 = tpu.matmul %0, %628, %cst_224 {dimension_numbers = #tpu.dot_dimension_numbers<[1], [0], [0], [1], [0, 0, 1, 1], [], []>} : vector<8x8xf32>, vector<8x32xf32>, vector<8x32xf32> -> vector<8x32xf32>
    %630 = arith.subf %628, %629 : vector<8x32xf32>
    %c3_225 = arith.constant 3 : index
    %c0_226 = arith.constant 0 : index
    %c0_227 = arith.constant 0 : index
    %631 = vector.load %arg4[%c3_225, %c0_226, %c0_227] : memref<4x32x96xf32, #tpu.memory_space<vmem>>, vector<1x32x96xf32>
    %632 = vector.shape_cast %631 : vector<1x32x96xf32> to vector<32x96xf32>
    %c3_228 = arith.constant 3 : index
    %c0_229 = arith.constant 0 : index
    %c0_230 = arith.constant 0 : index
    %633 = vector.load %arg5[%c3_228, %c0_229, %c0_230] : memref<4x1x96xf32, #tpu.memory_space<vmem>>, vector<1x1x96xf32>
    %634 = vector.shape_cast %633 : vector<1x1x96xf32> to vector<1x96xf32>
    %c3_231 = arith.constant 3 : index
    %c0_232 = arith.constant 0 : index
    %c0_233 = arith.constant 0 : index
    %635 = vector.load %arg6[%c3_231, %c0_232, %c0_233] : memref<4x32x32xf32, #tpu.memory_space<vmem>>, vector<1x32x32xf32>
    %636 = vector.shape_cast %635 : vector<1x32x32xf32> to vector<32x32xf32>
    %c3_234 = arith.constant 3 : index
    %c0_235 = arith.constant 0 : index
    %c0_236 = arith.constant 0 : index
    %637 = vector.load %arg7[%c3_234, %c0_235, %c0_236] : memref<4x1x32xf32, #tpu.memory_space<vmem>>, vector<1x1x32xf32>
    %638 = vector.shape_cast %637 : vector<1x1x32xf32> to vector<1x32xf32>
    %639 = vector.extract_strided_slice %632 {offsets = [0, 0], sizes = [32, 32], strides = [1, 1]} : vector<32x96xf32> to vector<32x32xf32>
    %cst_237 = arith.constant dense<0.000000e+00> : vector<8x32xf32>
    %640 = tpu.matmul %630, %639, %cst_237 {dimension_numbers = #tpu.dot_dimension_numbers<[1], [0], [0], [1], [0, 0, 1, 1], [], []>} : vector<8x32xf32>, vector<32x32xf32>, vector<8x32xf32> -> vector<8x32xf32>
    %641 = vector.extract_strided_slice %634 {offsets = [0, 0], sizes = [1, 32], strides = [1, 1]} : vector<1x96xf32> to vector<1x32xf32>
    %642 = vector.broadcast %641 : vector<1x32xf32> to vector<8x32xf32>
    %643 = arith.addf %640, %642 : vector<8x32xf32>
    %644 = vector.extract_strided_slice %632 {offsets = [0, 32], sizes = [32, 64], strides = [1, 1]} : vector<32x96xf32> to vector<32x64xf32>
    %cst_238 = arith.constant dense<0.000000e+00> : vector<12x64xf32>
    %645 = tpu.matmul %388, %644, %cst_238 {dimension_numbers = #tpu.dot_dimension_numbers<[1], [0], [0], [1], [0, 0, 1, 1], [], []>} : vector<12x32xf32>, vector<32x64xf32>, vector<12x64xf32> -> vector<12x64xf32>
    %646 = vector.extract_strided_slice %634 {offsets = [0, 32], sizes = [1, 64], strides = [1, 1]} : vector<1x96xf32> to vector<1x64xf32>
    %647 = vector.broadcast %646 : vector<1x64xf32> to vector<12x64xf32>
    %648 = arith.addf %645, %647 : vector<12x64xf32>
    %649 = vector.extract_strided_slice %648 {offsets = [0, 0], sizes = [12, 32], strides = [1, 1]} : vector<12x64xf32> to vector<12x32xf32>
    %650 = vector.extract_strided_slice %648 {offsets = [0, 32], sizes = [12, 32], strides = [1, 1]} : vector<12x64xf32> to vector<12x32xf32>
    %651 = vector.extract_strided_slice %643 {offsets = [0, 0], sizes = [8, 8], strides = [1, 1]} : vector<8x32xf32> to vector<8x8xf32>
    %652 = vector.extract_strided_slice %643 {offsets = [0, 8], sizes = [8, 8], strides = [1, 1]} : vector<8x32xf32> to vector<8x8xf32>
    %653 = vector.extract_strided_slice %643 {offsets = [0, 16], sizes = [8, 8], strides = [1, 1]} : vector<8x32xf32> to vector<8x8xf32>
    %654 = vector.extract_strided_slice %643 {offsets = [0, 24], sizes = [8, 8], strides = [1, 1]} : vector<8x32xf32> to vector<8x8xf32>
    %655 = vector.shape_cast %651 : vector<8x8xf32> to vector<1x8x8xf32>
    %656 = vector.shape_cast %652 : vector<8x8xf32> to vector<1x8x8xf32>
    %657 = vector.shape_cast %653 : vector<8x8xf32> to vector<1x8x8xf32>
    %658 = vector.shape_cast %654 : vector<8x8xf32> to vector<1x8x8xf32>
    %659 = tpu.concatenate %655, %656, %657, %658 in 0 : vector<1x8x8xf32>, vector<1x8x8xf32>, vector<1x8x8xf32>, vector<1x8x8xf32> -> vector<4x8x8xf32>
    %660 = vector.extract_strided_slice %649 {offsets = [0, 0], sizes = [12, 8], strides = [1, 1]} : vector<12x32xf32> to vector<12x8xf32>
    %661 = vector.extract_strided_slice %649 {offsets = [0, 8], sizes = [12, 8], strides = [1, 1]} : vector<12x32xf32> to vector<12x8xf32>
    %662 = vector.extract_strided_slice %649 {offsets = [0, 16], sizes = [12, 8], strides = [1, 1]} : vector<12x32xf32> to vector<12x8xf32>
    %663 = vector.extract_strided_slice %649 {offsets = [0, 24], sizes = [12, 8], strides = [1, 1]} : vector<12x32xf32> to vector<12x8xf32>
    %664 = vector.shape_cast %660 : vector<12x8xf32> to vector<1x12x8xf32>
    %665 = vector.shape_cast %661 : vector<12x8xf32> to vector<1x12x8xf32>
    %666 = vector.shape_cast %662 : vector<12x8xf32> to vector<1x12x8xf32>
    %667 = vector.shape_cast %663 : vector<12x8xf32> to vector<1x12x8xf32>
    %668 = tpu.concatenate %664, %665, %666, %667 in 0 : vector<1x12x8xf32>, vector<1x12x8xf32>, vector<1x12x8xf32>, vector<1x12x8xf32> -> vector<4x12x8xf32>
    %669 = vector.extract_strided_slice %650 {offsets = [0, 0], sizes = [12, 8], strides = [1, 1]} : vector<12x32xf32> to vector<12x8xf32>
    %670 = vector.extract_strided_slice %650 {offsets = [0, 8], sizes = [12, 8], strides = [1, 1]} : vector<12x32xf32> to vector<12x8xf32>
    %671 = vector.extract_strided_slice %650 {offsets = [0, 16], sizes = [12, 8], strides = [1, 1]} : vector<12x32xf32> to vector<12x8xf32>
    %672 = vector.extract_strided_slice %650 {offsets = [0, 24], sizes = [12, 8], strides = [1, 1]} : vector<12x32xf32> to vector<12x8xf32>
    %673 = vector.shape_cast %669 : vector<12x8xf32> to vector<1x12x8xf32>
    %674 = vector.shape_cast %670 : vector<12x8xf32> to vector<1x12x8xf32>
    %675 = vector.shape_cast %671 : vector<12x8xf32> to vector<1x12x8xf32>
    %676 = vector.shape_cast %672 : vector<12x8xf32> to vector<1x12x8xf32>
    %677 = tpu.concatenate %673, %674, %675, %676 in 0 : vector<1x12x8xf32>, vector<1x12x8xf32>, vector<1x12x8xf32>, vector<1x12x8xf32> -> vector<4x12x8xf32>
    "tpu.trace_start"() <{level = 10 : i32, message = "hqd,hkd->hqk"}> : () -> ()
    %cst_239 = arith.constant dense<0.000000e+00> : vector<4x8x12xf32>
    %678 = tpu.matmul %659, %668, %cst_239 {dimension_numbers = #tpu.dot_dimension_numbers<[2], [2], [1], [1], [0, 0, 0, 1, 1, 1], [0], [0]>} : vector<4x8x8xf32>, vector<4x12x8xf32>, vector<4x8x12xf32> -> vector<4x8x12xf32>
    "tpu.trace_stop"() : () -> ()
    %cst_240 = arith.constant 0.353553385 : f32
    %679 = vector.broadcast %cst_240 : f32 to vector<4x8x12xf32>
    %680 = arith.mulf %678, %679 : vector<4x8x12xf32>
    %cst_241 = arith.constant dense<0xFF800000> : vector<4x8xf32>
    %681 = vector.multi_reduction <maximumf>, %680, %cst_241 [2] : vector<4x8x12xf32> to vector<4x8xf32>
    %682 = vector.shape_cast %681 : vector<4x8xf32> to vector<4x8x1xf32>
    %683 = vector.broadcast %682 : vector<4x8x1xf32> to vector<4x8x12xf32>
    %684 = arith.subf %680, %683 : vector<4x8x12xf32>
    %685 = math.exp %684 : vector<4x8x12xf32>
    %cst_242 = arith.constant dense<0.000000e+00> : vector<4x8xf32>
    %686 = vector.multi_reduction <add>, %685, %cst_242 [2] : vector<4x8x12xf32> to vector<4x8xf32>
    %687 = vector.shape_cast %686 : vector<4x8xf32> to vector<4x8x1xf32>
    %688 = tpu.reciprocal %687 {approx = true} : vector<4x8x1xf32> -> vector<4x8x1xf32>
    %689 = vector.broadcast %688 : vector<4x8x1xf32> to vector<4x8x12xf32>
    %690 = arith.mulf %685, %689 : vector<4x8x12xf32>
    "tpu.trace_start"() <{level = 10 : i32, message = "hqk,hkd->hqd"}> : () -> ()
    %cst_243 = arith.constant dense<0.000000e+00> : vector<4x8x8xf32>
    %691 = tpu.matmul %690, %677, %cst_243 {dimension_numbers = #tpu.dot_dimension_numbers<[2], [1], [1], [2], [0, 0, 0, 1, 1, 2], [0], [0]>} : vector<4x8x12xf32>, vector<4x12x8xf32>, vector<4x8x8xf32> -> vector<4x8x8xf32>
    "tpu.trace_stop"() : () -> ()
    %692 = vector.extract_strided_slice %691 {offsets = [0, 0, 0], sizes = [1, 8, 8], strides = [1, 1, 1]} : vector<4x8x8xf32> to vector<1x8x8xf32>
    %693 = vector.shape_cast %692 : vector<1x8x8xf32> to vector<8x8xf32>
    %694 = vector.extract_strided_slice %691 {offsets = [1, 0, 0], sizes = [1, 8, 8], strides = [1, 1, 1]} : vector<4x8x8xf32> to vector<1x8x8xf32>
    %695 = vector.shape_cast %694 : vector<1x8x8xf32> to vector<8x8xf32>
    %696 = vector.extract_strided_slice %691 {offsets = [2, 0, 0], sizes = [1, 8, 8], strides = [1, 1, 1]} : vector<4x8x8xf32> to vector<1x8x8xf32>
    %697 = vector.shape_cast %696 : vector<1x8x8xf32> to vector<8x8xf32>
    %698 = vector.extract_strided_slice %691 {offsets = [3, 0, 0], sizes = [1, 8, 8], strides = [1, 1, 1]} : vector<4x8x8xf32> to vector<1x8x8xf32>
    %699 = vector.shape_cast %698 : vector<1x8x8xf32> to vector<8x8xf32>
    %700 = tpu.concatenate %693, %695, %697, %699 in 1 : vector<8x8xf32>, vector<8x8xf32>, vector<8x8xf32>, vector<8x8xf32> -> vector<8x32xf32>
    %cst_244 = arith.constant dense<0.000000e+00> : vector<8x32xf32>
    %701 = tpu.matmul %700, %636, %cst_244 {dimension_numbers = #tpu.dot_dimension_numbers<[1], [0], [0], [1], [0, 0, 1, 1], [], []>} : vector<8x32xf32>, vector<32x32xf32>, vector<8x32xf32> -> vector<8x32xf32>
    %702 = vector.broadcast %638 : vector<1x32xf32> to vector<8x32xf32>
    %703 = arith.addf %701, %702 : vector<8x32xf32>
    %704 = arith.addf %630, %703 : vector<8x32xf32>
    %cst_245 = arith.constant dense<0.000000e+00> : vector<8x32xf32>
    %705 = tpu.matmul %0, %704, %cst_245 {dimension_numbers = #tpu.dot_dimension_numbers<[1], [0], [0], [1], [0, 0, 1, 1], [], []>} : vector<8x8xf32>, vector<8x32xf32>, vector<8x32xf32> -> vector<8x32xf32>
    %706 = arith.subf %704, %705 : vector<8x32xf32>
    %c1_246 = arith.constant 1 : index
    %c0_247 = arith.constant 0 : index
    %c0_248 = arith.constant 0 : index
    %707 = vector.load %arg8[%c1_246, %c0_247, %c0_248] : memref<2x32x64xf32, #tpu.memory_space<vmem>>, vector<1x32x64xf32>
    %708 = vector.shape_cast %707 : vector<1x32x64xf32> to vector<32x64xf32>
    %cst_249 = arith.constant dense<0.000000e+00> : vector<8x64xf32>
    %709 = tpu.matmul %706, %708, %cst_249 {dimension_numbers = #tpu.dot_dimension_numbers<[1], [0], [0], [1], [0, 0, 1, 1], [], []>} : vector<8x32xf32>, vector<32x64xf32>, vector<8x64xf32> -> vector<8x64xf32>
    %cst_250 = arith.constant 0.000000e+00 : f32
    %710 = vector.broadcast %cst_250 : f32 to vector<8x64xf32>
    %711 = arith.maximumf %709, %710 : vector<8x64xf32>
    %c1_251 = arith.constant 1 : index
    %c0_252 = arith.constant 0 : index
    %c0_253 = arith.constant 0 : index
    %712 = vector.load %arg9[%c1_251, %c0_252, %c0_253] : memref<2x64x32xf32, #tpu.memory_space<vmem>>, vector<1x64x32xf32>
    %713 = vector.shape_cast %712 : vector<1x64x32xf32> to vector<64x32xf32>
    %cst_254 = arith.constant dense<0.000000e+00> : vector<8x32xf32>
    %714 = tpu.matmul %711, %713, %cst_254 {dimension_numbers = #tpu.dot_dimension_numbers<[1], [0], [0], [1], [0, 0, 1, 1], [], []>} : vector<8x64xf32>, vector<64x32xf32>, vector<8x32xf32> -> vector<8x32xf32>
    %715 = arith.addf %706, %714 : vector<8x32xf32>
    %cst_255 = arith.constant dense<0.000000e+00> : vector<8x32xf32>
    %716 = tpu.matmul %0, %715, %cst_255 {dimension_numbers = #tpu.dot_dimension_numbers<[1], [0], [0], [1], [0, 0, 1, 1], [], []>} : vector<8x8xf32>, vector<8x32xf32>, vector<8x32xf32> -> vector<8x32xf32>
    %717 = arith.subf %715, %716 : vector<8x32xf32>
    %718 = arith.addf %629, %705 : vector<8x32xf32>
    %719 = arith.addf %718, %716 : vector<8x32xf32>
    %c1_256 = arith.constant 1 : index
    %c0_257 = arith.constant 0 : index
    %c0_258 = arith.constant 0 : index
    %720 = vector.load %arg10[%c1_256, %c0_257, %c0_258] : memref<2x96x4xf32, #tpu.memory_space<vmem>>, vector<1x96x4xf32>
    %721 = vector.shape_cast %720 : vector<1x96x4xf32> to vector<96x4xf32>
    %c1_i32_259 = arith.constant 1 : i32
    %722 = tpu.dynamic_rotate %719 by %c1_i32_259 dim 0 : vector<8x32xf32>, i32 -> vector<8x32xf32>
    %c7_i32_260 = arith.constant 7 : i32
    %723 = tpu.dynamic_rotate %719 by %c7_i32_260 dim 0 : vector<8x32xf32>, i32 -> vector<8x32xf32>
    %724 = tpu.concatenate %722, %719, %723 in 1 : vector<8x32xf32>, vector<8x32xf32>, vector<8x32xf32> -> vector<8x96xf32>
    %cst_261 = arith.constant dense<0.000000e+00> : vector<8x4xf32>
    %725 = tpu.matmul %724, %721, %cst_261 {dimension_numbers = #tpu.dot_dimension_numbers<[1], [0], [0], [1], [0, 0, 1, 1], [], []>} : vector<8x96xf32>, vector<96x4xf32>, vector<8x4xf32> -> vector<8x4xf32>
    %726 = arith.addf %558, %725 : vector<8x4xf32>
    %cst_262 = arith.constant dense<0.000000e+00> : vector<8xf32>
    %727 = vector.multi_reduction <add>, %717, %cst_262 [1] : vector<8x32xf32> to vector<8xf32>
    %728 = vector.shape_cast %727 : vector<8xf32> to vector<8x1xf32>
    %cst_263 = arith.constant 3.200000e+01 : f32
    %729 = vector.broadcast %cst_263 : f32 to vector<8x1xf32>
    %730 = arith.divf %728, %729 : vector<8x1xf32>
    %731 = vector.broadcast %730 : vector<8x1xf32> to vector<8x32xf32>
    %732 = arith.subf %717, %731 : vector<8x32xf32>
    %733 = arith.mulf %732, %732 : vector<8x32xf32>
    %cst_264 = arith.constant dense<0.000000e+00> : vector<8xf32>
    %734 = vector.multi_reduction <add>, %733, %cst_264 [1] : vector<8x32xf32> to vector<8xf32>
    %735 = vector.shape_cast %734 : vector<8xf32> to vector<8x1xf32>
    %cst_265 = arith.constant 3.200000e+01 : f32
    %736 = vector.broadcast %cst_265 : f32 to vector<8x1xf32>
    %737 = arith.divf %735, %736 : vector<8x1xf32>
    %738 = vector.broadcast %730 : vector<8x1xf32> to vector<8x32xf32>
    %739 = arith.subf %717, %738 : vector<8x32xf32>
    %cst_266 = arith.constant 9.99999974E-6 : f32
    %740 = vector.broadcast %cst_266 : f32 to vector<8x1xf32>
    %741 = arith.addf %737, %740 : vector<8x1xf32>
    %742 = math.rsqrt %741 : vector<8x1xf32>
    %743 = vector.broadcast %742 : vector<8x1xf32> to vector<8x32xf32>
    %744 = arith.mulf %739, %743 : vector<8x32xf32>
    %745 = vector.broadcast %1 : vector<1x32xf32> to vector<8x32xf32>
    %746 = arith.mulf %744, %745 : vector<8x32xf32>
    %747 = vector.broadcast %2 : vector<1x32xf32> to vector<8x32xf32>
    %748 = arith.addf %746, %747 : vector<8x32xf32>
    %cst_267 = arith.constant dense<0.000000e+00> : vector<32xf32>
    %749 = vector.multi_reduction <add>, %748, %cst_267 [0] : vector<8x32xf32> to vector<32xf32>
    %750 = vector.shape_cast %749 : vector<32xf32> to vector<1x32xf32>
    %cst_268 = arith.constant 8.000000e+00 : f32
    %751 = vector.broadcast %cst_268 : f32 to vector<1x32xf32>
    %752 = arith.divf %750, %751 : vector<1x32xf32>
    %753 = vector.broadcast %752 : vector<1x32xf32> to vector<8x32xf32>
    %754 = arith.subf %748, %753 : vector<8x32xf32>
    %cst_269 = arith.constant dense<0.000000e+00> : vector<8x4xf32>
    %755 = tpu.matmul %754, %4, %cst_269 {dimension_numbers = #tpu.dot_dimension_numbers<[1], [0], [0], [1], [0, 0, 1, 1], [], []>} : vector<8x32xf32>, vector<32x4xf32>, vector<8x4xf32> -> vector<8x4xf32>
    %756 = vector.broadcast %3 : vector<1x4xf32> to vector<8x4xf32>
    %757 = arith.addf %755, %756 : vector<8x4xf32>
    %758 = tpu.concatenate %757, %726 in 1 : vector<8x4xf32>, vector<8x4xf32> -> vector<8x8xf32>
    %c1_270 = arith.constant 1 : index
    %c0_271 = arith.constant 0 : index
    %c0_272 = arith.constant 0 : index
    %759 = vector.load %arg13[%c1_270, %c0_271, %c0_272] : memref<2x8x8xf32, #tpu.memory_space<vmem>>, vector<1x8x8xf32>
    %760 = vector.shape_cast %759 : vector<1x8x8xf32> to vector<8x8xf32>
    %761 = vector.shape_cast %758 : vector<8x8xf32> to vector<1x8x8xf32>
    tpu.vector_store %arg13[%c1_270, %c0_271, %c0_272], %761 {strides = array<i32>} : memref<2x8x8xf32, #tpu.memory_space<vmem>>, vector<1x8x8xf32>,
    return
  }
}

</mosaic_0001>

<bundles_post_ra>
// kernel: decoder_forward.1
= control target key start
LH: loop header
LB: loop body
LE: loop exit
PB: predicated region body
PF: predicated region fallthrough
CT: control target
= control target key end

     0   :  { %v11886_v0 = vmov 0.0|0.0   ;;  %vm11887_vm0 = vmmov 0   ;;  %v11888_v4 = vmov 0.0   ;;  %vm75_vm1 = vcmask 261120   ;;  %s11889_s20 = smov 104   ;;  %s11890_s21 = smov 120   ;;  %s13660_s4 = inlined_call_operand.vmem [shape: f32[4,32,96], index: 4, kind: input, shape index: {}]   ;;  %s13661_s0 = inlined_call_operand.vmem [shape: f32[2,8,32], index: 0, kind: input, shape index: {}]   ;;  %s13662_s5 = inlined_call_operand.vmem [shape: f32[4,1,96], index: 5, kind: input, shape index: {}]   ;;  %s13663_s6 = inlined_call_operand.vmem [shape: f32[4,32,32], index: 6, kind: input, shape index: {}]   ;;  %s13664_s1 = inlined_call_operand.vmem [shape: f32[2,12,32], index: 1, kind: input, shape index: {}]   ;;  %s13665_s7 = inlined_call_operand.vmem [shape: f32[4,1,32], index: 7, kind: input, shape index: {}]   ;;  %s13666_s3 = inlined_call_operand.vmem [shape: f32[8,8], index: 3, kind: input, shape index: {}]   ;;  %s13667_s8 = inlined_call_operand.vmem [shape: f32[2,32,64], index: 8, kind: input, shape index: {}]   ;;  %s13668_s9 = inlined_call_operand.vmem [shape: f32[2,64,32], index: 9, kind: input, shape index: {}]   ;;  %s13669_s10 = inlined_call_operand.vmem [shape: f32[2,96,4], index: 10, kind: input, shape index: {}]   ;;  %s13670_s12 = inlined_call_operand.vmem [shape: f32[1,68], index: 12, kind: input, shape index: {}]   ;;  %s13671_s11 = inlined_call_operand.vmem [shape: f32[32,4], index: 11, kind: input, shape index: {}]   ;;  %s13672_s2 = inlined_call_operand.vmem [shape: f32[2,8,4], index: 2, kind: input, shape index: {}]   ;;  %s13673_s13 = inlined_call_operand.vmem [shape: f32[2,8,8], index: 13, kind: output, shape index: {}]  }
   0x1   :  { %11138 = vmatprep.subr.bf16.mxu1 %v11886_v0  ;;  %v59_v1 = vld [vmem:[%s13660_s4] sm:$0xff]  ;;  %v60_v2 = vld [vmem:[%s13660_s4 + $0x8] sm:$0xff]  ;;  %v61_v3 = vld [vmem:[%s13660_s4 + $0x10] sm:$0xff]  ;;  %10232 = vmatprep.mubr.msk.f32.mxu1 %vm11887_vm0, %v11888_v4  ;;  %s11891_s22 = smov 96   ;;  %s11892_s23 = smov 112   ;;  %vm158_vm2 = vcmask 64512   ;;  %v50_v20 = vlaneseq }
   0x2   :  { %v11139_v5 = vpack.c.bf16 %v60_v2, %v59_v1  ;;  %v62_v6 = vld [vmem:[%s13660_s4 + $0x18] sm:$0xff]  ;;  %10255 = vmatprep.subr.mxu0 %v11888_v4  ;;  %10257 = vmatprep.mubr.msk.f32.mxu0 %vm11887_vm0, %v11888_v4  ;;  %v11992_v8 = vld [vmem:[%s13661_s0] sm:$0xff]  ;;  %s13674_s24 = smov 64   ;;  %s11894_s16 = smov 8   ;;  %vm830_vm4 = vcmask 130048   ;;  %vm832_vm5 = vcmask 195584   ;;  %vm12171_vm6 = vmpackc.low %vm158_vm2, %vm158_vm2 }
   0x3   :  { %v11142_v7 = vpack.c.bf16 %v62_v6, %v61_v3  ;;  %v9510_v9 = vld [vmem:[%s13662_s5] ss:$0 sm:$0xff]  ;;  %v51_v21 = vshrl.u32 %v50_v20, 7  ;;  %v53_v22 = vand.u32 127, %v50_v20  ;;  %s13678_s17 = smov 16   ;;  %s13676_s18 = smov 24  }
   0x4   :  { %11140 = vmatpush3.bf16.msra.mxu1 %v11139_v5  ;;  %vm1510_vm7 = vcmask 97280   ;;  %vm1563_vm8 = vcmask 1043456   ;;  %vm11897_vm9 = vmmov 1   ;;  %vm2128_vm11 = vcmask 523264   ;;  %s11898_s14 = smov 32   ;;  %s13686_s30 = smov 64  }
   0x5   :  { %11141 = vmatprep.subr.bf16.mxu1 %v11886_v0  ;;  %vm12044_vm3 = vcmp.le.s32.totalorder %v53_v22, %v51_v21  ;;  %v64_v21 = vld [vmem:[%s13663_s6] sm:$0xff]  ;;  %v65_v22 = vld [vmem:[%s13663_s6 + $0x8] sm:$0xff]  ;;  %vm12224_vm10 = vmpackc.low %vm1563_vm8, %vm11897_vm9  ;;  %vm2300_vm12 = vcmask 785408   ;;  %s13688_s25 = smov 24   ;;  %vm4796_vm13 = vcmask 31744  }
   0x8   :  { %11143 = vmatpush3.bf16.msra.mxu1 %v11142_v7 }
   0x9   :  { %10235 = vmatprep.subr.mxu1 %v11888_v4 }
   0xb   :  { %10233 = vmatmul.mubr.msk.f32.vlgmr.msra.gmra.mrb[0].mxu1 %vm75_vm1, %v11992_v8 }
   0xc   :  { %10237 = vmatprep.mubr.msk.f32.mxu1 %vm11887_vm0, %v11888_v4 }
  0xde   :  { %v145_v10 = vpop.f32.mrb[0].mxu1 }
  0xdf   :  { %v12002_v11 = vadd.f32 %v9510_v9, %v145_v10  ;;  %v10234_v12 = vpop.f32.mrb[1].mxu1 }
  0xe1   :  { %154 = vrot.lane.b32.xlu1 %v12002_v11, %s11889_s20  ;;  %150 = vrot.lane.b32.xlu0 %v12002_v11, %s11890_s21 }
  0xe5   :  { %156 = vrot.lane.b32.xlu1 %v12002_v11, %s11891_s22  ;;  %152 = vrot.lane.b32.xlu0 %v12002_v11, %s11892_s23 }
 0x153   :  { %v12012_v13 = vpop.permute.xlu1 %154  ;;  %v151_v14 = vpop.permute.xlu0 %150 }
 0x154   :  { %233 = vrot.lane.b32.xlu0 %v151_v14, %s11891_s22 }
 0x157   :  { %v157_v15 = vpop.permute.xlu1 %156  ;;  %v12015_v16 = vpop.permute.xlu0 %152 }
 0x158   :  { %10236 = vmatpush3.xpose.msk.msra.mxu1 %vm158_vm2, %v157_v15  ;;  %385 = vrot.lane.b32.xlu0 %v12012_v13, %s11891_s22 }
 0x159   :  { %309 = vrot.lane.b32.xlu1 %v12015_v16, %s11891_s22  ;;  %10240 = vmatprep.subr.mxu1 %v11888_v4 }
 0x15b   :  { %10238 = vmatmul.mubr.msk.f32.vlgmr.msra.gmra.mrb[2].mxu1 %vm158_vm2, %v12002_v11 }
 0x15c   :  { %10242 = vmatprep.mubr.msk.f32.mxu1 %vm11887_vm0, %v11888_v4 }
 0x1c6   :  { %v234_v17 = vpop.permute.xlu0 %233 }
 0x1c7   :  { %10241 = vmatpush3.xpose.msk.msra.mxu1 %vm158_vm2, %v234_v17 }
 0x1c8   :  { %10245 = vmatprep.subr.mxu1 %v11888_v4 }
 0x1ca   :  { %10243 = vmatmul.mubr.msk.f32.vlgmr.msra.gmra.mrb[4].mxu1 %vm158_vm2, %v151_v14  ;;  %v386_v19 = vpop.permute.xlu0 %385 }
 0x1cb   :  { %v310_v18 = vpop.permute.xlu1 %309  ;;  %10247 = vmatprep.mubr.msk.f32.mxu1 %vm11887_vm0, %v11888_v4 }
 0x1cc   :  { %10246 = vmatpush3.xpose.msk.msra.mxu1 %vm158_vm2, %v310_v18 }
 0x1cd   :  { %10250 = vmatprep.subr.mxu1 %v11888_v4 }
 0x1cf   :  { %10248 = vmatmul.mubr.msk.f32.vlgmr.msra.gmra.mrb[6].mxu1 %vm158_vm2, %v12015_v16 }
 0x1d0   :  { %10251 = vmatpush3.xpose.msk.msra.mxu1 %vm158_vm2, %v386_v19  ;;  %10252 = vmatprep.mubr.msk.f32.mxu1 %vm11887_vm0, %v11888_v4 }
 0x1d1   :  { %10260 = vmatprep.subr.mxu1 %v11888_v4 }
 0x1d3   :  { %10253 = vmatmul.mubr.msk.f32.vlgmr.msra.gmra.mrb[8].mxu1 %vm158_vm2, %v12012_v13 }
 0x1d4   :  { %10262 = vmatprep.mubr.msk.f32.mxu1 %vm11887_vm0, %v11888_v4 }
 0x22e   :  { %v229_v23 = vpop.f32.mrb[2].mxu1 }
 0x22f   :  { %v461_v25 = vmul.f32 0.35355338, %v229_v23  ;;  %v10239_v26 = vpop.f32.mrb[3].mxu1  ;;  %v11145_v23 = vpack.c.bf16 %v65_v22, %v64_v21 }
 0x230   :  { %v67_v26 = vld [vmem:[%s13663_s6 + $0x18] sm:$0xff] }
 0x231   :  { %v465_v27 = vsel %vm12044_vm3, %v461_v25, -inf  ;;  %v66_v25 = vld [vmem:[%s13663_s6 + $0x10] sm:$0xff] }
 0x232   :  { %v469_v28 = vsel %vm158_vm2, %v465_v27, -inf }
 0x233   :  { %470 = vmax.xlane.f32.xlu1 %v469_v28 }
 0x29d   :  { %v305_v29 = vpop.f32.mrb[4].mxu1 }
 0x29e   :  { %v462_v30 = vmul.f32 0.35355338, %v305_v29  ;;  %v10244_v31 = vpop.f32.mrb[5].mxu1 }
 0x2a0   :  { %v466_v32 = vsel %vm12044_vm3, %v462_v30, -inf }
 0x2a1   :  { %v472_v33 = vsel %vm158_vm2, %v466_v32, -inf }
 0x2a2   :  { %v381_v34 = vpop.f32.mrb[6].mxu1  ;;  %473 = vmax.xlane.f32.xlu0 %v472_v33 }
 0x2a3   :  { %v463_v35 = vmul.f32 0.35355338, %v381_v34  ;;  %v10249_v36 = vpop.f32.mrb[7].mxu1 }
 0x2a5   :  { %v467_v37 = vsel %vm12044_vm3, %v463_v35, -inf }
 0x2a6   :  { %v457_v38 = vpop.f32.mrb[8].mxu1  ;;  %v475_v39 = vsel %vm158_vm2, %v467_v37, -inf }
 0x2a7   :  { %v464_v40 = vmul.f32 0.35355338, %v457_v38  ;;  %476 = vmax.xlane.f32.xlu0 %v475_v39  ;;  %v10254_v41 = vpop.f32.mrb[9].mxu1 }
 0x2a8   :  { %v9528_v41 = vld [vmem:[%s13660_s4 + $0x28] sm:$0xff] }
 0x2a9   :  { %v468_v42 = vsel %vm12044_vm3, %v464_v40, -inf  ;;  %v9527_v40 = vld [vmem:[%s13660_s4 + $0x20] sm:$0xff] }
 0x2aa   :  { %v478_v43 = vsel %vm158_vm2, %v468_v42, -inf }
 0x2ab   :  { %479 = vmax.xlane.f32.xlu1 %v478_v43  ;;  %v11570_v43 = vpack.i.bf16 %v9528_v41, %v9527_v40 }
 0x2bc   :  { %589 = vrot.lane.b32.xlu1 %v151_v14, %s13674_s24 }
 0x2bd   :  { %513 = vrot.lane.b32.xlu0 %v12002_v11, %s13674_s24 }
 0x2c0   :  { %v471_v44 = vpop.xlane.xlu1 %470 }
 0x2c1   :  { %v481_v45 = vsub.f32 %v465_v27, %v471_v44  ;;  %v11148_v27 = vpack.c.bf16 %v67_v26, %v66_v25  ;;  %v11151_v44 = vpack.c.bf16 %v9528_v41, %v9527_v40 }
 0x2c3   :  { %v485_v46 = vmul.f32 1.442695, %v481_v45  ;;  %v9530_v45 = vld [vmem:[%s13660_s4 + $0x38] sm:$0xff] }
 0x2c5   :  { %11750 = vpow2.f32 %v485_v46  ;;  %v12122_v46 = vld [vmem:[%s13664_s1] sm:$0xff] }
 0x2cf   :  { %v11751_v47 = vpop.eup %11750 }
 0x2d0   :  { %v493_v48 = vsel %vm158_vm2, %v11751_v47, 0.0 }
 0x2dc   :  { %494 = vadd.xlane.f32.xlu0 %v493_v48 }
 0x32f   :  { %v474_v49 = vpop.xlane.xlu0 %473 }
 0x330   :  { %v482_v50 = vsub.f32 %v466_v32, %v474_v49 }
 0x332   :  { %v487_v51 = vmul.f32 1.442695, %v482_v50 }
 0x334   :  { %11752 = vpow2.f32 %v487_v51  ;;  %v477_v52 = vpop.xlane.xlu0 %476 }
 0x335   :  { %v483_v53 = vsub.f32 %v467_v37, %v477_v52 }
 0x337   :  { %v489_v54 = vmul.f32 1.442695, %v483_v53 }
 0x338   :  { %v514_v55 = vpop.permute.xlu0 %513  ;;  %v480_v56 = vpop.xlane.xlu1 %479 }
 0x339   :  { %11754 = vpow2.f32 %v489_v54  ;;  %v484_v57 = vsub.f32 %v468_v42, %v480_v56  ;;  %10256 = vmatpush3.msra.mxu0 %v514_v55  ;;  %v9529_v42 = vld [vmem:[%s13660_s4 + $0x30] sm:$0xff]  ;;  %v9524_v55 = vld [vmem:[%s13665_s7] ss:$0 sm:$0xff] }
 0x33a   :  { %10265 = vmatprep.subr.mxu0 %v11888_v4  ;;  %v11154_v48 = vpack.c.bf16 %v9530_v45, %v9529_v42 }
 0x33b   :  { %v491_v58 = vmul.f32 1.442695, %v484_v57 }
 0x33c   :  { %v590_v59 = vpop.permute.xlu1 %589 }
 0x33d   :  { %11756 = vpow2.f32 %v491_v58  ;;  %10261 = vmatpush3.msra.mxu1 %v590_v59 }
 0x33e   :  { %v11753_v60 = vpop.eup %11752  ;;  %10270 = vmatprep.subr.mxu1 %v11888_v4 }
 0x33f   :  { %v496_v61 = vsel %vm158_vm2, %v11753_v60, 0.0 }
 0x340   :  { %497 = vadd.xlane.f32.xlu1 %v496_v61 }
 0x343   :  { %v11755_v62 = vpop.eup %11754 }
 0x344   :  { %v499_v63 = vsel %vm158_vm2, %v11755_v62, 0.0 }
 0x345   :  { %500 = vadd.xlane.f32.xlu0 %v499_v63  ;;  %v12140_v63 = vld [vmem:[%s13664_s1 + $0x8] sm:$0xf] }
 0x347   :  { %v11757_v1 = vpop.eup %11756 }
 0x348   :  { %v502_v2 = vsel %vm158_vm2, %v11757_v1, 0.0 }
 0x349   :  { %503 = vadd.xlane.f32.xlu1 %v502_v2 }
 0x35a   :  { %665 = vrot.lane.b32.xlu1 %v12015_v16, %s13674_s24 }
 0x35b   :  { %741 = vrot.lane.b32.xlu0 %v12012_v13, %s13674_s24 }
 0x369   :  { %v495_v3 = vpop.xlane.xlu0 %494 }
 0x36a   :  { %11758 = vrcp.f32 %v495_v3 }
 0x374   :  { %v11759_v5 = vpop.eup %11758 }
 0x375   :  { %v509_v6 = vmul.f32 %v11759_v5, %v11751_v47  ;;  %v11575_v47 = vpack.i.bf16 %v9530_v45, %v9529_v42 }
 0x377   :  { %10258 = vmatmul.mubr.msk.f32.vlgmr.msra.gmra.mrb[0].mxu0 %vm158_vm2, %v509_v6 }
 0x378   :  { %10267 = vmatprep.mubr.msk.f32.mxu0 %vm11887_vm0, %v11888_v4 }
 0x3cd   :  { %v498_v7 = vpop.xlane.xlu1 %497 }
 0x3ce   :  { %11760 = vrcp.f32 %v498_v7 }
 0x3d2   :  { %v501_v9 = vpop.xlane.xlu0 %500 }
 0x3d3   :  { %11762 = vrcp.f32 %v501_v9 }
 0x3d6   :  { %v504_v10 = vpop.xlane.xlu1 %503  ;;  %v742_v15 = vpop.permute.xlu0 %741 }
 0x3d7   :  { %11764 = vrcp.f32 %v504_v10 }
 0x3d8   :  { %v11761_v11 = vpop.eup %11760 }
 0x3d9   :  { %v510_v12 = vmul.f32 %v11761_v11, %v11753_v60 }
 0x3da   :  { %v666_v14 = vpop.permute.xlu1 %665 }
 0x3db   :  { %10266 = vmatpush3.msra.mxu0 %v666_v14  ;;  %10263 = vmatmul.mubr.msk.f32.vlgmr.msra.gmra.mrb[10].mxu1 %vm158_vm2, %v510_v12 }
 0x3dc   :  { %10271 = vmatpush3.msra.mxu1 %v742_v15  ;;  %10272 = vmatprep.mubr.msk.f32.mxu1 %vm11887_vm0, %v11888_v4 }
 0x3dd   :  { %v11763_v13 = vpop.eup %11762  ;;  %11144 = vmatprep.subr.bf16.mxu0 %v11886_v0  ;;  %10286 = vmatprep.subr.mxu1 %v11888_v4 }
 0x3de   :  { %v511_v16 = vmul.f32 %v11763_v13, %v11755_v62  ;;  %v12135_v62 = vld [vmem:[%s13666_s3] sm:$0xff] }
 0x3e0   :  { %10268 = vmatmul.mubr.msk.f32.vlgmr.msra.gmra.mrb[2].mxu0 %vm158_vm2, %v511_v16 }
 0x3e1   :  { %v11765_v17 = vpop.eup %11764  ;;  %10283 = vmatprep.mubr.msk.f32.mxu0 %vm11887_vm0, %v11888_v4  ;;  %11146 = vmatpush3.bf16.msra.mxu0 %v11145_v23 }
 0x3e2   :  { %v512_v18 = vmul.f32 %v11765_v17, %v11757_v1  ;;  %11147 = vmatprep.subr.bf16.mxu0 %v11886_v0 }
 0x3e4   :  { %10273 = vmatmul.mubr.msk.f32.vlgmr.msra.gmra.mrb[12].mxu1 %vm158_vm2, %v512_v18 }
 0x3e5   :  { %10288 = vmatprep.mubr.msk.f32.mxu1 %vm11887_vm0, %v11888_v4  ;;  %11149 = vmatpush3.bf16.msra.mxu0 %v11148_v27 }
 0x44a   :  { %v585_v19 = vpop.f32.mrb[0].mxu0 }
 0x44b   :  { %v10259_v20 = vpop.f32.mrb[1].mxu0 }
 0x4ae   :  { %v661_v28 = vpop.f32.mrb[10].mxu1 }
 0x4af   :  { %818 = vrot.lane.b32.xlu1 %v661_v28, %s11894_s16  ;;  %v10264_v29 = vpop.f32.mrb[11].mxu1 }
 0x4b3   :  { %v737_v30 = vpop.f32.mrb[2].mxu0 }
 0x4b4   :  { %822 = vrot.lane.b32.xlu0 %v737_v30, %s13678_s17  ;;  %v10269_v31 = vpop.f32.mrb[3].mxu0 }
 0x4b7   :  { %v813_v32 = vpop.f32.mrb[12].mxu1 }
 0x4b8   :  { %826 = vrot.lane.b32.xlu1 %v813_v32, %s13676_s18  ;;  %v10274_v33 = vpop.f32.mrb[13].mxu1  ;;  %11571 = vrot.lane.b32.xlu0 %v11570_v43, %s11891_s22 }
 0x4bc   :  { %11576 = vrot.lane.b32.xlu1 %v11575_v47, %s11891_s22 }
 0x521   :  { %v819_v34 = vpop.permute.xlu1 %818 }
 0x522   :  { %v829_v36 = vsel %vm158_vm2, %v585_v19, %v819_v34 }
 0x526   :  { %v823_v35 = vpop.permute.xlu0 %822 }
 0x527   :  { %v831_v37 = vsel %vm830_vm4, %v829_v36, %v823_v35 }
 0x52a   :  { %v827_v38 = vpop.permute.xlu1 %826  ;;  %v11572_v49 = vpop.permute.xlu0 %11571 }
 0x52b   :  { %v833_v39 = vsel %vm832_vm5, %v831_v37, %v827_v38  ;;  %v11574_v50 = vunpack.i.h.bf16 %v11572_v49  ;;  %v11573_v51 = vunpack.i.l.bf16 %v11572_v49 }
 0x52c   :  { %10284 = vmatmul.mubr.msk.f32.vlgmr.msra.gmra.mrb[4].mxu0 %vm75_vm1, %v833_v39 }
 0x52d   :  { %10310 = vmatprep.mubr.msk.f32.mxu0 %vm75_vm1, %v12122_v46  ;;  %v11156_v56 = vpack.c.bf16 %v11574_v50, %v11573_v51 }
 0x52e   :  { %v11577_v52 = vpop.permute.xlu1 %11576 }
 0x52f   :  { %v11579_v53 = vunpack.i.h.bf16 %v11577_v52  ;;  %v11578_v54 = vunpack.i.l.bf16 %v11577_v52  ;;  %11157 = vmatprep.subr.bf16.mxu0 %v11156_v56 }
 0x530   :  { %11159 = vmatpush3.bf16.msra.mxu0 %v11156_v56 }
 0x531   :  { %v11160_v57 = vpack.c.bf16 %v11579_v53, %v11578_v54 }
 0x533   :  { %11161 = vmatprep.subr.bf16.mxu0 %v11160_v57 }
 0x534   :  { %11163 = vmatpush3.bf16.msra.mxu0 %v11160_v57 }
 0x535   :  { %11168 = vmatprep.subr.bf16.mxu0 %v11886_v0 }
 0x537   :  { %10311 = vmatmul.mubr.msk.f32.vlgmr.msra.gmra.mrb[6].mxu0 %vm75_vm1, %v12140_v63 }
 0x538   :  { %10324 = vmatprep.mubr.msk.f32.mxu0 %vm11887_vm0, %v11888_v4 }
 0x5ff   :  { %v909_v58 = vpop.f32.mrb[4].mxu0 }
 0x600   :  { %v910_v59 = vadd.f32 %v9524_v55, %v909_v58  ;;  %v10285_v60 = vpop.f32.mrb[5].mxu0 }
 0x602   :  { %v913_v61 = vadd.f32 %v910_v59, %v11992_v8  ;;  %v9537_v8 = vld [vmem:[%s13662_s5 + $0x1] ss:$0 sm:$0xff] }
 0x603   :  { %1097 = vrot.lane.b32.xlu0 %v9537_v8, %s11891_s22 }
 0x604   :  { %10287 = vmatpush3.msra.mxu1 %v913_v61 }
 0x605   :  { %10289 = vmatmul.mubr.msk.f32.vlgmr.msra.gmra.mrb[14].mxu1 %vm158_vm2, %v12135_v62  ;;  %11150 = vmatprep.subr.bf16.mxu1 %v11886_v0 }
 0x606   :  { %11152 = vmatpush3.bf16.msra.mxu1 %v11151_v44  ;;  %10299 = vmatprep.mubr.msk.f32.mxu1 %vm11887_vm0, %v11888_v4 }
 0x607   :  { %11153 = vmatprep.subr.bf16.mxu1 %v11886_v0 }
 0x60a   :  { %11155 = vmatpush3.bf16.msra.mxu1 %v11154_v48  ;;  %v10312_v6 = vpop.f32.mrb[6].mxu0 }
 0x60b   :  { %11164 = vmatprep.subr.bf16.mxu1 %v11886_v0  ;;  %v1172_v9 = vpop.f32.mrb[7].mxu0 }
 0x675   :  { %v1098_v2 = vpop.permute.xlu0 %1097 }
 0x676   :  { %v1178_v7 = vadd.f32 %v10312_v6, %v1098_v2  ;;  %v1173_v10 = vadd.f32 %v1172_v9, %v1098_v2 }
 0x678   :  { %v12167_v11 = vpack.i.bf16 %v1178_v7, %v1173_v10  ;;  %v11165_v12 = vpack.c.bf16 %v1178_v7, %v1173_v10  ;;  %v9757_v7 = vld [vmem:[%s13663_s6 + $0x68] sm:$0xff] }
 0x67a   :  { %11581 = vrot.lane.b32.xlu1 %v12167_v11, %s11890_s21  ;;  %11586 = vrot.lane.b32.xlu0 %v12167_v11, %s11892_s23 }
 0x67e   :  { %11591 = vrot.lane.b32.xlu1 %v12167_v11, %s11889_s20 }
 0x6d8   :  { %v12158_v1 = vpop.f32.mrb[14].mxu1 }
 0x6d9   :  { %v12161_v3 = vsub.f32 %v913_v61, %v12158_v1  ;;  %v10290_v5 = vpop.f32.mrb[15].mxu1 }
 0x6db   :  { %10300 = vmatmul.mubr.msk.f32.vlgmr.msra.gmra.mrb[16].mxu1 %vm75_vm1, %v12161_v3 }
 0x6dc   :  { %10317 = vmatprep.mubr.msk.f32.mxu1 %vm11887_vm0, %v11888_v4  ;;  %11167 = vmatpush3.bf16.xpose.msk.msra.mxu1 %vm12171_vm6, %v11165_v12 }
 0x6dd   :  { %11172 = vmatprep.subr.bf16.mxu1 %v11886_v0 }
 0x6ec   :  { %v11582_v15 = vpop.permute.xlu1 %11581  ;;  %v12187_v18 = vpop.permute.xlu0 %11586 }
 0x6ed   :  { %v11584_v13 = vunpack.i.h.bf16 %v11582_v15  ;;  %v11583_v16 = vunpack.i.l.bf16 %v11582_v15  ;;  %v11589_v19 = vunpack.i.h.bf16 %v12187_v18  ;;  %v11588_v20 = vunpack.i.l.bf16 %v12187_v18 }
 0x6ef   :  { %v11169_v17 = vpack.c.bf16 %v11584_v13, %v11583_v16  ;;  %v11173_v25 = vpack.c.bf16 %v11589_v19, %v11588_v20 }
 0x6f0   :  { %v12200_v26 = vpop.permute.xlu1 %11591 }
 0x6f1   :  { %11171 = vmatpush3.bf16.xpose.msk.msra.mxu0 %vm12171_vm6, %v11169_v17  ;;  %v11594_v27 = vunpack.i.h.bf16 %v12200_v26  ;;  %v11593_v28 = vunpack.i.l.bf16 %v12200_v26 }
 0x6f2   :  { %11176 = vmatprep.subr.bf16.mxu0 %v11886_v0 }
 0x6f3   :  { %v11177_v29 = vpack.c.bf16 %v11594_v27, %v11593_v28 }
 0x7ae   :  { %v1077_v21 = vpop.f32.mrb[16].mxu1 }
 0x7af   :  { %v1078_v22 = vadd.f32 %v9537_v8, %v1077_v21  ;;  %v10301_v23 = vpop.f32.mrb[17].mxu1 }
 0x7b1   :  { %1184 = vrot.lane.b32.xlu1 %v1078_v22, %s11892_s23  ;;  %1182 = vrot.lane.b32.xlu0 %v1078_v22, %s11890_s21 }
 0x7b2   :  { %10318 = vmatmul.mubr.msk.f32.vlgmr.msra.gmra.mrb[18].mxu1 %vm158_vm2, %v1078_v22 }
 0x7b3   :  { %11175 = vmatpush3.bf16.xpose.msk.msra.mxu1 %vm12171_vm6, %v11173_v25  ;;  %10331 = vmatprep.mubr.msk.f32.mxu1 %vm11887_vm0, %v11888_v4 }
 0x7b4   :  { %11180 = vmatprep.subr.bf16.mxu1 %v11886_v0 }
 0x7b5   :  { %1186 = vrot.lane.b32.xlu0 %v1078_v22, %s11889_s20 }
 0x823   :  { %v1185_v30 = vpop.permute.xlu1 %1184  ;;  %v1183_v31 = vpop.permute.xlu0 %1182 }
 0x824   :  { %10325 = vmatmul.mubr.msk.f32.vlgmr.msra.gmra.mrb[8].mxu0 %vm158_vm2, %v1183_v31  ;;  %10332 = vmatmul.mubr.msk.f32.vlgmr.msra.gmra.mrb[20].mxu1 %vm158_vm2, %v1185_v30 }
 0x825   :  { %11179 = vmatpush3.bf16.xpose.msk.msra.mxu0 %vm12171_vm6, %v11177_v29  ;;  %10338 = vmatprep.mubr.msk.f32.mxu0 %vm11887_vm0, %v11888_v4 }
 0x826   :  { %11184 = vmatprep.subr.bf16.mxu0 %v11886_v0  ;;  %10345 = vmatprep.mubr.msk.f32.mxu1 %vm11887_vm0, %v11888_v4 }
 0x827   :  { %v1187_v32 = vpop.permute.xlu0 %1186 }
 0x82c   :  { %10339 = vmatmul.mubr.msk.f32.vlgmr.msra.gmra.mrb[10].mxu0 %vm158_vm2, %v1187_v32 }
 0x82d   :  { %10352 = vmatprep.mubr.msk.f32.mxu0 %vm11887_vm0, %v11888_v4 }
 0x885   :  { %v1274_v33 = vpop.f32.mrb[18].mxu1 }
 0x886   :  { %v1506_v34 = vmul.f32 0.35355338, %v1274_v33  ;;  %v10319_v35 = vpop.f32.mrb[19].mxu1 }
 0x888   :  { %v1511_v36 = vsel %vm1510_vm7, %v1506_v34, -inf }
 0x889   :  { %1512 = vmax.xlane.f32.xlu1 %v1511_v36 }
 0x8f7   :  { %v1350_v37 = vpop.f32.mrb[8].mxu0  ;;  %v1426_v38 = vpop.f32.mrb[20].mxu1 }
 0x8f8   :  { %v1507_v39 = vmul.f32 0.35355338, %v1350_v37  ;;  %v10326_v40 = vpop.f32.mrb[9].mxu0  ;;  %v10333_v41 = vpop.f32.mrb[21].mxu1  ;;  %v1508_v42 = vmul.f32 0.35355338, %v1426_v38 }
 0x8fa   :  { %v1514_v43 = vsel %vm1510_vm7, %v1507_v39, -inf  ;;  %v1517_v44 = vsel %vm1510_vm7, %v1508_v42, -inf }
 0x8fb   :  { %1515 = vmax.xlane.f32.xlu0 %v1514_v43 }
 0x8ff   :  { %v1502_v45 = vpop.f32.mrb[10].mxu0  ;;  %1518 = vmax.xlane.f32.xlu0 %v1517_v44 }
 0x900   :  { %v1509_v47 = vmul.f32 0.35355338, %v1502_v45  ;;  %v10340_v48 = vpop.f32.mrb[11].mxu0  ;;  %v9532_v45 = vld [vmem:[%s13663_s6 + $0x20] sm:$0xff] }
 0x902   :  { %v1520_v49 = vsel %vm1510_vm7, %v1509_v47, -inf }
 0x903   :  { %1521 = vmax.xlane.f32.xlu1 %v1520_v49  ;;  %v9534_v49 = vld [vmem:[%s13663_s6 + $0x30] sm:$0xff] }
 0x914   :  { %11601 = vrot.lane.b32.xlu1 %v11582_v15, %s11891_s22 }
 0x915   :  { %11596 = vrot.lane.b32.xlu0 %v12167_v11, %s11891_s22 }
 0x916   :  { %v1513_v50 = vpop.xlane.xlu1 %1512 }
 0x917   :  { %v1523_v51 = vsub.f32 %v1506_v34, %v1513_v50  ;;  %v9535_v50 = vld [vmem:[%s13663_s6 + $0x38] sm:$0xff] }
 0x919   :  { %v1527_v52 = vmul.f32 1.442695, %v1523_v51  ;;  %v11200_v51 = vpack.c.bf16 %v9535_v50, %v9534_v49 }
 0x91b   :  { %11766 = vpow2.f32 %v1527_v52 }
 0x925   :  { %v11767_v53 = vpop.eup %11766 }
 0x926   :  { %v1535_v54 = vsel %vm1510_vm7, %v11767_v53, 0.0 }
 0x934   :  { %1536 = vadd.xlane.f32.xlu0 %v1535_v54 }
 0x988   :  { %v1516_v55 = vpop.xlane.xlu0 %1515 }
 0x989   :  { %v1524_v56 = vsub.f32 %v1507_v39, %v1516_v55 }
 0x98b   :  { %v1529_v57 = vmul.f32 1.442695, %v1524_v56 }
 0x98c   :  { %v1519_v58 = vpop.xlane.xlu0 %1518 }
 0x98d   :  { %11768 = vpow2.f32 %v1529_v57  ;;  %v1525_v59 = vsub.f32 %v1508_v42, %v1519_v58 }
 0x98f   :  { %v1531_v60 = vmul.f32 1.442695, %v1525_v59 }
 0x990   :  { %v1522_v61 = vpop.xlane.xlu1 %1521  ;;  %v11597_v8 = vpop.permute.xlu0 %11596 }
 0x991   :  { %11770 = vpow2.f32 %v1531_v60  ;;  %v1526_v2 = vsub.f32 %v1509_v47, %v1522_v61  ;;  %v11599_v5 = vunpack.i.h.bf16 %v11597_v8  ;;  %v11598_v6 = vunpack.i.l.bf16 %v11597_v8  ;;  %v9533_v47 = vld [vmem:[%s13663_s6 + $0x28] sm:$0xff] }
 0x992   :  { %v11197_v48 = vpack.c.bf16 %v9533_v47, %v9532_v45 }
 0x993   :  { %v1533_v9 = vmul.f32 1.442695, %v1526_v2  ;;  %v11181_v10 = vpack.c.bf16 %v11599_v5, %v11598_v6  ;;  %v9561_v5 = vld [vmem:[%s13665_s7 + $0x1] ss:$0 sm:$0xff] }
 0x994   :  { %v11602_v11 = vpop.permute.xlu1 %11601 }
 0x995   :  { %11772 = vpow2.f32 %v1533_v9  ;;  %v11604_v12 = vunpack.i.h.bf16 %v11602_v11  ;;  %v11603_v15 = vunpack.i.l.bf16 %v11602_v11  ;;  %11183 = vmatpush3.bf16.msk.msra.mxu1 %vm12224_vm10, %v11181_v10  ;;  %v2042_v9 = vld [vmem:[%s13667_s8] sm:$0xff]  ;;  %v2043_v10 = vld [vmem:[%s13667_s8 + $0x8] sm:$0xff] }
 0x996   :  { %11188 = vmatprep.subr.bf16.mxu1 %v11886_v0 }
 0x997   :  { %v11769_v13 = vpop.eup %11768  ;;  %v11185_v16 = vpack.c.bf16 %v11604_v12, %v11603_v15 }
 0x998   :  { %v1538_v17 = vsel %vm1510_vm7, %v11769_v13, 0.0 }
 0x999   :  { %11187 = vmatpush3.bf16.msk.msra.mxu0 %vm12224_vm10, %v11185_v16  ;;  %1539 = vadd.xlane.f32.xlu1 %v1538_v17  ;;  %v2044_v16 = vld [vmem:[%s13667_s8 + $0x10] sm:$0xff] }
 0x99a   :  { %11192 = vmatprep.subr.bf16.mxu0 %v11886_v0 }
 0x99b   :  { %v11771_v19 = vpop.eup %11770 }
 0x99c   :  { %v1541_v20 = vsel %vm1510_vm7, %v11771_v19, 0.0 }
 0x99d   :  { %1542 = vadd.xlane.f32.xlu0 %v1541_v20  ;;  %v2121_v20 = vld [vmem:[%s13668_s9 + $0x8] sm:$0xff] }
 0x99f   :  { %v11773_v21 = vpop.eup %11772 }
 0x9a0   :  { %v1544_v22 = vsel %vm1510_vm7, %v11773_v21, 0.0 }
 0x9a1   :  { %1545 = vadd.xlane.f32.xlu1 %v1544_v22 }
 0x9b2   :  { %11606 = vrot.lane.b32.xlu1 %v12187_v18, %s11891_s22 }
 0x9b3   :  { %11611 = vrot.lane.b32.xlu0 %v12200_v26, %s11891_s22 }
 0x9c1   :  { %v1537_v23 = vpop.xlane.xlu0 %1536 }
 0x9c2   :  { %11774 = vrcp.f32 %v1537_v23  ;;  %v2123_v23 = vld [vmem:[%s13668_s9 + $0x18] sm:$0xff] }
 0x9cc   :  { %v11775_v25 = vpop.eup %11774 }
 0x9cd   :  { %v1551_v27 = vmul.f32 %v11775_v25, %v11767_v53 }
 0x9cf   :  { %10346 = vmatmul.mubr.msk.f32.vlgmr.msra.gmra.mrb[22].mxu1 %vm1510_vm7, %v1551_v27  ;;  %v2124_v27 = vld [vmem:[%s13668_s9 + $0x20] sm:$0xff] }
 0x9d0   :  { %10359 = vmatprep.mubr.msk.f32.mxu1 %vm11887_vm0, %v11888_v4 }
 0xa26   :  { %v1540_v28 = vpop.xlane.xlu1 %1539 }
 0xa27   :  { %11776 = vrcp.f32 %v1540_v28  ;;  %v2125_v28 = vld [vmem:[%s13668_s9 + $0x28] sm:$0xff] }
 0xa2a   :  { %v1543_v29 = vpop.xlane.xlu0 %1542 }
 0xa2b   :  { %11778 = vrcp.f32 %v1543_v29  ;;  %v11215_v29 = vpack.c.bf16 %v2125_v28, %v2124_v27 }
 0xa2e   :  { %v1546_v30 = vpop.xlane.xlu1 %1545  ;;  %v11612_v31 = vpop.permute.xlu0 %11611 }
 0xa2f   :  { %11780 = vrcp.f32 %v1546_v30  ;;  %v11614_v18 = vunpack.i.h.bf16 %v11612_v31  ;;  %v11613_v32 = vunpack.i.l.bf16 %v11612_v31 }
 0xa31   :  { %v11777_v33 = vpop.eup %11776  ;;  %v11193_v26 = vpack.c.bf16 %v11614_v18, %v11613_v32 }
 0xa32   :  { %v11607_v34 = vpop.permute.xlu1 %11606  ;;  %v1552_v35 = vmul.f32 %v11777_v33, %v11769_v13  ;;  %v11203_v13 = vpack.c.bf16 %v2043_v10, %v2042_v9  ;;  %v2126_v33 = vld [vmem:[%s13668_s9 + $0x30] sm:$0xff]  ;;  %v2284_v10 = vld [vmem:[%s13669_s10 + $0x40] sm:$0xff] }
 0xa33   :  { %v11609_v36 = vunpack.i.h.bf16 %v11607_v34  ;;  %v11608_v37 = vunpack.i.l.bf16 %v11607_v34 }
 0xa34   :  { %10353 = vmatmul.mubr.msk.f32.vlgmr.msra.gmra.mrb[12].mxu0 %vm1510_vm7, %v1552_v35 }
 0xa35   :  { %v11779_v38 = vpop.eup %11778  ;;  %v11189_v39 = vpack.c.bf16 %v11609_v36, %v11608_v37  ;;  %11195 = vmatpush3.bf16.msk.msra.mxu0 %vm12224_vm10, %v11193_v26  ;;  %10366 = vmatprep.mubr.msk.f32.mxu0 %vm11887_vm0, %v11888_v4  ;;  %v2127_v26 = vld [vmem:[%s13668_s9 + $0x38] sm:$0xff]  ;;  %v9568_v37 = vld [vmem:[%s13660_s4 + $0x40] sm:$0xff] }
 0xa36   :  { %v1553_v40 = vmul.f32 %v11779_v38, %v11771_v19  ;;  %10380 = vmatprep.subr.mxu0 %v11888_v4  ;;  %v2120_v19 = vld [vmem:[%s13668_s9] sm:$0xff]  ;;  %v11218_v34 = vpack.c.bf16 %v2127_v26, %v2126_v33  ;;  %v9569_v38 = vld [vmem:[%s13660_s4 + $0x48] sm:$0xff] }
 0xa37   :  { %11191 = vmatpush3.bf16.msk.msra.mxu1 %vm12224_vm10, %v11189_v39  ;;  %v11209_v22 = vpack.c.bf16 %v2121_v20, %v2120_v19  ;;  %v11239_v39 = vpack.c.bf16 %v9569_v38, %v9568_v37 }
 0xa38   :  { %11196 = vmatprep.subr.bf16.mxu1 %v11886_v0 }
 0xa39   :  { %v11781_v41 = vpop.eup %11780 }
 0xa3a   :  { %10360 = vmatmul.mubr.msk.f32.vlgmr.msra.gmra.mrb[24].mxu1 %vm1510_vm7, %v1553_v40  ;;  %v1554_v42 = vmul.f32 %v11781_v41, %v11773_v21  ;;  %v2122_v21 = vld [vmem:[%s13668_s9 + $0x10] sm:$0xff] }
 0xa3b   :  { %10377 = vmatprep.mubr.msk.f32.mxu1 %vm11887_vm0, %v11888_v4  ;;  %11198 = vmatpush3.bf16.msra.mxu1 %v11197_v48  ;;  %v11212_v25 = vpack.c.bf16 %v2123_v23, %v2122_v21 }
 0xa3c   :  { %10367 = vmatmul.mubr.msk.f32.vlgmr.msra.gmra.mrb[14].mxu0 %vm1510_vm7, %v1554_v42  ;;  %11199 = vmatprep.subr.bf16.mxu1 %v11886_v0 }
 0xa3d   :  { %10382 = vmatprep.mubr.msk.f32.mxu0 %vm11887_vm0, %v11888_v4 }
 0xa3f   :  { %11201 = vmatpush3.bf16.msra.mxu1 %v11200_v51  ;;  %v9578_v51 = vld [vmem:[%s13662_s5 + $0x2] ss:$0 sm:$0xff] }
 0xa40   :  { %11208 = vmatprep.subr.bf16.mxu1 %v11886_v0 }
 0xaa2   :  { %v1632_v43 = vpop.f32.mrb[22].mxu1 }
 0xaa3   :  { %v10347_v44 = vpop.f32.mrb[23].mxu1 }
 0xaa4   :  { %v9571_v44 = vld [vmem:[%s13660_s4 + $0x58] sm:$0xff] }
 0xb07   :  { %v1712_v52 = vpop.f32.mrb[12].mxu0 }
 0xb08   :  { %1877 = vrot.lane.b32.xlu1 %v1712_v52, %s11894_s16  ;;  %v10354_v53 = vpop.f32.mrb[13].mxu0  ;;  %v2276_v52 = vld [vmem:[%s13669_s10] sm:$0xff] }
 0xb09   :  { %v2277_v53 = vld [vmem:[%s13669_s10 + $0x8] sm:$0xff] }
 0xb0d   :  { %v1792_v54 = vpop.f32.mrb[24].mxu1 }
 0xb0e   :  { %1881 = vrot.lane.b32.xlu0 %v1792_v54, %s13678_s17  ;;  %v10361_v55 = vpop.f32.mrb[25].mxu1  ;;  %v2278_v54 = vld [vmem:[%s13669_s10 + $0x10] sm:$0xff] }
 0xb0f   :  { %v1872_v56 = vpop.f32.mrb[14].mxu0 }
 0xb10   :  { %1885 = vrot.lane.b32.xlu1 %v1872_v56, %s13676_s18  ;;  %v10368_v57 = vpop.f32.mrb[15].mxu0  ;;  %v11221_v56 = vpack.c.bf16 %v2277_v53, %v2276_v52 }
 0xb11   :  { %v2279_v57 = vld [vmem:[%s13669_s10 + $0x18] sm:$0xff] }
 0xb7a   :  { %v1878_v58 = vpop.permute.xlu1 %1877 }
 0xb7b   :  { %v1888_v59 = vsel %vm158_vm2, %v1632_v43, %v1878_v58  ;;  %v9570_v43 = vld [vmem:[%s13660_s4 + $0x50] sm:$0xff] }
 0xb7c   :  { %v11242_v45 = vpack.c.bf16 %v9571_v44, %v9570_v43 }
 0xb80   :  { %v1882_v60 = vpop.permute.xlu0 %1881 }
 0xb81   :  { %v1889_v61 = vsel %vm830_vm4, %v1888_v59, %v1882_v60  ;;  %v11224_v60 = vpack.c.bf16 %v2279_v57, %v2278_v54 }
 0xb82   :  { %v1886_v8 = vpop.permute.xlu1 %1885 }
 0xb83   :  { %v1890_v2 = vsel %vm832_vm5, %v1889_v61, %v1886_v8  ;;  %v2280_v61 = vld [vmem:[%s13669_s10 + $0x20] sm:$0xff]  ;;  %v2281_v8 = vld [vmem:[%s13669_s10 + $0x28] sm:$0xff] }
 0xb84   :  { %10378 = vmatmul.mubr.msk.f32.vlgmr.msra.gmra.mrb[26].mxu1 %vm75_vm1, %v1890_v2  ;;  %v11227_v2 = vpack.c.bf16 %v2281_v8, %v2280_v61 }
 0xb85   :  { %10412 = vmatprep.mubr.msk.f32.mxu1 %vm11887_vm0, %v11888_v4  ;;  %11210 = vmatpush3.bf16.msra.mxu1 %v11209_v22 }
 0xb86   :  { %11211 = vmatprep.subr.bf16.mxu1 %v11886_v0 }
 0xb89   :  { %11213 = vmatpush3.bf16.msra.mxu1 %v11212_v25 }
 0xb8a   :  { %11214 = vmatprep.subr.bf16.mxu1 %v11886_v0 }
 0xb8d   :  { %11216 = vmatpush3.bf16.msra.mxu1 %v11215_v29 }
 0xb8e   :  { %11217 = vmatprep.subr.bf16.mxu1 %v11886_v0 }
 0xb91   :  { %11219 = vmatpush3.bf16.msra.mxu1 %v11218_v34 }
 0xb92   :  { %11238 = vmatprep.subr.bf16.mxu1 %v11886_v0 }
 0xc57   :  { %v1966_v6 = vpop.f32.mrb[26].mxu1 }
 0xc58   :  { %v1967_v11 = vadd.f32 %v9561_v5, %v1966_v6  ;;  %v10379_v12 = vpop.f32.mrb[27].mxu1  ;;  %v2282_v5 = vld [vmem:[%s13669_s10 + $0x30] sm:$0xff]  ;;  %v2283_v6 = vld [vmem:[%s13669_s10 + $0x38] sm:$0xff] }
 0xc59   :  { %v11230_v9 = vpack.c.bf16 %v2283_v6, %v2282_v5 }
 0xc5a   :  { %v1970_v15 = vadd.f32 %v1967_v11, %v12161_v3  ;;  %v2045_v3 = vld [vmem:[%s13667_s8 + $0x18] sm:$0xff]  ;;  %v2285_v11 = vld [vmem:[%s13669_s10 + $0x48] sm:$0xff] }
 0xc5b   :  { %v11206_v17 = vpack.c.bf16 %v2045_v3, %v2044_v16  ;;  %v11233_v12 = vpack.c.bf16 %v2285_v11, %v2284_v10 }
 0xc5c   :  { %10381 = vmatpush3.msra.mxu0 %v1970_v15 }
 0xc5d   :  { %10383 = vmatmul.mubr.msk.f32.vlgmr.msra.gmra.mrb[16].mxu0 %vm158_vm2, %v12135_v62  ;;  %11202 = vmatprep.subr.bf16.mxu0 %v11886_v0 }
 0xc5e   :  { %11204 = vmatpush3.bf16.msra.mxu0 %v11203_v13  ;;  %10393 = vmatprep.mubr.msk.f32.mxu0 %vm11887_vm0, %v11888_v4  ;;  %v2287_v13 = vld [vmem:[%s13669_s10 + $0x58] sm:$0xff] }
 0xc5f   :  { %11205 = vmatprep.subr.bf16.mxu0 %v11886_v0 }
 0xc62   :  { %11207 = vmatpush3.bf16.msra.mxu0 %v11206_v17 }
 0xc63   :  { %10415 = vmatprep.subr.mxu0 %v11888_v4 }
 0xd30   :  { %v2037_v30 = vpop.f32.mrb[16].mxu0 }
 0xd31   :  { %v2041_v31 = vsub.f32 %v1970_v15, %v2037_v30  ;;  %v2274_v18 = vadd.f32 %v2037_v30, %v12158_v1  ;;  %v10384_v32 = vpop.f32.mrb[17].mxu0  ;;  %v2286_v15 = vld [vmem:[%s13669_s10 + $0x50] sm:$0xff] }
 0xd32   :  { %v11236_v16 = vpack.c.bf16 %v2287_v13, %v2286_v15 }
 0xd33   :  { %10394 = vmatmul.mubr.msk.f32.vlgmr.msra.gmra.mrb[18].mxu0 %vm75_vm1, %v2041_v31 }
 0xd34   :  { %10417 = vmatprep.mubr.msk.f32.mxu0 %vm11887_vm0, %v11888_v4 }
 0xe06   :  { %v2115_v35 = vpop.f32.mrb[18].mxu0 }
 0xe07   :  { %v2119_v1 = vmax.f32 %v2115_v35, 0.0  ;;  %v10395_v36 = vpop.f32.mrb[19].mxu0 }
 0xe09   :  { %10413 = vmatmul.mubr.msk.f32.vlgmr.msra.gmra.mrb[28].mxu1 %vm2128_vm11, %v2119_v1 }
 0xe0a   :  { %10455 = vmatprep.mubr.msk.f32.mxu1 %vm11887_vm0, %v11888_v4  ;;  %11240 = vmatpush3.bf16.msra.mxu1 %v11239_v39 }
 0xe0b   :  { %11241 = vmatprep.subr.bf16.mxu1 %v11886_v0 }
 0xe0e   :  { %11243 = vmatpush3.bf16.msra.mxu1 %v11242_v45 }
 0xe0f   :  { %10458 = vmatprep.subr.mxu1 %v11888_v4 }
 0xedc   :  { %v2198_v40 = vpop.f32.mrb[28].mxu1 }
 0xedd   :  { %v2202_v41 = vadd.f32 %v2198_v40, %v2041_v31  ;;  %v10414_v42 = vpop.f32.mrb[29].mxu1 }
 0xedf   :  { %10416 = vmatpush3.msra.mxu0 %v2202_v41 }
 0xee0   :  { %10418 = vmatmul.mubr.msk.f32.vlgmr.msra.gmra.mrb[20].mxu0 %vm158_vm2, %v12135_v62  ;;  %11220 = vmatprep.subr.bf16.mxu0 %v11886_v0 }
 0xee1   :  { %10444 = vmatprep.mubr.msk.f32.mxu0 %vm11887_vm0, %v11888_v4  ;;  %11222 = vmatpush3.bf16.msra.mxu0 %v11221_v56 }
 0xee2   :  { %11223 = vmatprep.subr.bf16.mxu0 %v11886_v0 }
 0xee5   :  { %11225 = vmatpush3.bf16.msra.mxu0 %v11224_v60 }
 0xee6   :  { %11226 = vmatprep.subr.bf16.mxu0 %v11886_v0 }
 0xee9   :  { %11228 = vmatpush3.bf16.msra.mxu0 %v11227_v2 }
 0xeea   :  { %11229 = vmatprep.subr.bf16.mxu0 %v11886_v0 }
 0xeed   :  { %11231 = vmatpush3.bf16.msra.mxu0 %v11230_v9 }
 0xeee   :  { %11232 = vmatprep.subr.bf16.mxu0 %v11886_v0 }
 0xef1   :  { %11234 = vmatpush3.bf16.msra.mxu0 %v11233_v12 }
 0xef2   :  { %11235 = vmatprep.subr.bf16.mxu0 %v11886_v0 }
 0xef5   :  { %11237 = vmatpush3.bf16.msra.mxu0 %v11236_v16 }
 0xef6   :  { %10473 = vmatprep.subr.mxu0 %v11888_v4 }
 0xfb3   :  { %v2269_v47 = vpop.f32.mrb[20].mxu0 }
 0xfb4   :  { %v12359_v48 = vsub.f32 %v2202_v41, %v2269_v47  ;;  %v12361_v49 = vadd.f32 %v2274_v18, %v2269_v47  ;;  %v10419_v50 = vpop.f32.mrb[21].mxu0 }
 0xfb6   :  { %10456 = vmatmul.mubr.msk.f32.vlgmr.msra.gmra.mrb[30].mxu1 %vm75_vm1, %v12359_v48  ;;  %v2289_v19 = vrot.slane %v12361_v49, 1  ;;  %v2288_v25 = vrot.slane %v12361_v49, 7 }
 0xfb7   :  { %10460 = vmatprep.mubr.msk.f32.mxu1 %vm11887_vm0, %v11888_v4 }
0x1089   :  { %v2464_v55 = vpop.f32.mrb[30].mxu1 }
0x108a   :  { %v12382_v58 = vadd.f32 %v9578_v51, %v2464_v55  ;;  %v10457_v59 = vpop.f32.mrb[31].mxu1 }
0x108c   :  { %2471 = vrot.lane.b32.xlu1 %v12382_v58, %s11892_s23  ;;  %2469 = vrot.lane.b32.xlu0 %v12382_v58, %s11890_s21 }
0x1090   :  { %2475 = vrot.lane.b32.xlu1 %v12382_v58, %s11891_s22  ;;  %2473 = vrot.lane.b32.xlu0 %v12382_v58, %s11889_s20 }
0x1094   :  { %2291 = vrot.lane.b32.xlu1 %v12361_v49, %s11898_s14 }
0x10fe   :  { %v12424_v3 = vpop.permute.xlu1 %2471  ;;  %v2470_v17 = vpop.permute.xlu0 %2469 }
0x10ff   :  { %2627 = vrot.lane.b32.xlu1 %v12424_v3, %s11891_s22  ;;  %2551 = vrot.lane.b32.xlu0 %v2470_v17, %s11891_s22 }
0x1102   :  { %v2476_v20 = vpop.permute.xlu1 %2475  ;;  %v12433_v21 = vpop.permute.xlu0 %2473 }
0x1103   :  { %10459 = vmatpush3.xpose.msk.msra.mxu1 %vm158_vm2, %v2476_v20  ;;  %2295 = vrot.lane.b32.xlu0 %v2289_v19, %s13686_s30 }
0x1104   :  { %10463 = vmatprep.subr.mxu1 %v11888_v4 }
0x1106   :  { %10461 = vmatmul.mubr.msk.f32.vlgmr.msra.gmra.mrb[32].mxu1 %vm158_vm2, %v12382_v58  ;;  %v2292_v22 = vpop.permute.xlu1 %2291 }
0x1107   :  { %2703 = vrot.lane.b32.xlu0 %v12433_v21, %s11891_s22  ;;  %10465 = vmatprep.mubr.msk.f32.mxu1 %vm11887_vm0, %v11888_v4  ;;  %v2298_v27 = vsel %vm75_vm1, %v2288_v25, %v2292_v22 }
0x1171   :  { %v2552_v23 = vpop.permute.xlu0 %2551  ;;  %v2628_v28 = vpop.permute.xlu1 %2627 }
0x1172   :  { %10464 = vmatpush3.xpose.msk.msra.mxu1 %vm158_vm2, %v2552_v23 }
0x1173   :  { %10468 = vmatprep.subr.mxu1 %v11888_v4 }
0x1175   :  { %10466 = vmatmul.mubr.msk.f32.vlgmr.msra.gmra.mrb[34].mxu1 %vm158_vm2, %v2470_v17  ;;  %v2296_v29 = vpop.permute.xlu0 %2295 }
0x1176   :  { %v2299_v30 = vsel %vm2128_vm11, %v2298_v27, %v2296_v29  ;;  %10469 = vmatpush3.xpose.msk.msra.mxu1 %vm158_vm2, %v2628_v28  ;;  %10470 = vmatprep.mubr.msk.f32.mxu1 %vm11887_vm0, %v11888_v4 }
0x1177   :  { %10445 = vmatmul.mubr.msk.f32.vlgmr.msra.gmra.mrb[22].mxu0 %vm2300_vm12, %v2299_v30  ;;  %10478 = vmatprep.subr.mxu1 %v11888_v4 }
0x1178   :  { %10475 = vmatprep.mubr.msk.f32.mxu0 %vm11887_vm0, %v11888_v4 }
0x1179   :  { %10471 = vmatmul.mubr.msk.f32.vlgmr.msra.gmra.mrb[36].mxu1 %vm158_vm2, %v12424_v3  ;;  %v2704_v31 = vpop.permute.xlu0 %2703 }
0x117a   :  { %10474 = vmatpush3.xpose.msk.msra.mxu0 %vm158_vm2, %v2704_v31  ;;  %10480 = vmatprep.mubr.msk.f32.mxu1 %vm11887_vm0, %v11888_v4 }
0x117b   :  { %10483 = vmatprep.subr.mxu0 %v11888_v4 }
0x117d   :  { %10476 = vmatmul.mubr.msk.f32.vlgmr.msra.gmra.mrb[24].mxu0 %vm158_vm2, %v12433_v21 }
0x117e   :  { %10485 = vmatprep.mubr.msk.f32.mxu0 %vm11887_vm0, %v11888_v4 }
0x11d9   :  { %v2547_v18 = vpop.f32.mrb[32].mxu1 }
0x11da   :  { %v2779_v32 = vmul.f32 0.35355338, %v2547_v18  ;;  %v10462_v33 = vpop.f32.mrb[33].mxu1 }
0x11dc   :  { %v2783_v26 = vsel %vm12044_vm3, %v2779_v32, -inf }
0x11dd   :  { %v2787_v34 = vsel %vm158_vm2, %v2783_v26, -inf }
0x11de   :  { %2788 = vmax.xlane.f32.xlu1 %v2787_v34  ;;  %v9574_v34 = vld [vmem:[%s13663_s6 + $0x48] sm:$0xff] }
0x1248   :  { %v2623_v35 = vpop.f32.mrb[34].mxu1 }
0x1249   :  { %v2780_v1 = vmul.f32 0.35355338, %v2623_v35  ;;  %v10467_v36 = vpop.f32.mrb[35].mxu1 }
0x124a   :  { %v9576_v36 = vld [vmem:[%s13663_s6 + $0x58] sm:$0xff] }
0x124b   :  { %v2784_v37 = vsel %vm12044_vm3, %v2780_v1, -inf  ;;  %v9575_v1 = vld [vmem:[%s13663_s6 + $0x50] sm:$0xff] }
0x124c   :  { %v2699_v38 = vpop.f32.mrb[36].mxu1  ;;  %v2790_v39 = vsel %vm158_vm2, %v2784_v37, -inf }
0x124d   :  { %v2781_v40 = vmul.f32 0.35355338, %v2699_v38  ;;  %2791 = vmax.xlane.f32.xlu0 %v2790_v39  ;;  %v10472_v41 = vpop.f32.mrb[37].mxu1 }
0x124f   :  { %v2785_v42 = vsel %vm12044_vm3, %v2781_v40, -inf }
0x1250   :  { %v2775_v43 = vpop.f32.mrb[24].mxu0  ;;  %v2793_v44 = vsel %vm158_vm2, %v2785_v42, -inf }
0x1251   :  { %v2782_v45 = vmul.f32 0.35355338, %v2775_v43  ;;  %v10477_v47 = vpop.f32.mrb[25].mxu0  ;;  %2794 = vmax.xlane.f32.xlu0 %v2793_v44 }
0x1253   :  { %v2786_v49 = vsel %vm12044_vm3, %v2782_v45, -inf }
0x1254   :  { %v2796_v50 = vsel %vm158_vm2, %v2786_v49, -inf }
0x1255   :  { %2797 = vmax.xlane.f32.xlu1 %v2796_v50 }
0x1266   :  { %2907 = vrot.lane.b32.xlu1 %v2470_v17, %s13686_s30 }
0x1267   :  { %2831 = vrot.lane.b32.xlu0 %v12382_v58, %s13686_s30 }
0x126b   :  { %v2789_v51 = vpop.xlane.xlu1 %2788 }
0x126c   :  { %v2799_v52 = vsub.f32 %v2783_v26, %v2789_v51  ;;  %v9573_v26 = vld [vmem:[%s13663_s6 + $0x40] sm:$0xff] }
0x126d   :  { %v11245_v35 = vpack.c.bf16 %v9574_v34, %v9573_v26 }
0x126e   :  { %v2803_v53 = vmul.f32 1.442695, %v2799_v52  ;;  %v9595_v52 = vld [vmem:[%s13660_s4 + $0x60] sm:$0xff] }
0x1270   :  { %11782 = vpow2.f32 %v2803_v53  ;;  %v9596_v53 = vld [vmem:[%s13660_s4 + $0x68] sm:$0xff] }
0x127a   :  { %v11783_v54 = vpop.eup %11782 }
0x127b   :  { %v2811_v55 = vsel %vm158_vm2, %v11783_v54, 0.0 }
0x1286   :  { %2812 = vadd.xlane.f32.xlu0 %v2811_v55  ;;  %v11615_v55 = vpack.i.bf16 %v9596_v53, %v9595_v52 }
0x12da   :  { %v2792_v56 = vpop.xlane.xlu0 %2791 }
0x12db   :  { %v2800_v57 = vsub.f32 %v2784_v37, %v2792_v56  ;;  %v11248_v37 = vpack.c.bf16 %v9576_v36, %v9575_v1  ;;  %v11251_v56 = vpack.c.bf16 %v9596_v53, %v9595_v52 }
0x12dd   :  { %v2805_v59 = vmul.f32 1.442695, %v2800_v57  ;;  %v9598_v57 = vld [vmem:[%s13660_s4 + $0x78] sm:$0xff] }
0x12de   :  { %v2795_v60 = vpop.xlane.xlu0 %2794 }
0x12df   :  { %11784 = vpow2.f32 %v2805_v59  ;;  %v2801_v61 = vsub.f32 %v2785_v42, %v2795_v60 }
0x12e1   :  { %v2807_v8 = vmul.f32 1.442695, %v2801_v61 }
0x12e2   :  { %v2798_v2 = vpop.xlane.xlu1 %2797  ;;  %v2832_v5 = vpop.permute.xlu0 %2831 }
0x12e3   :  { %11786 = vpow2.f32 %v2807_v8  ;;  %v2802_v6 = vsub.f32 %v2786_v49, %v2798_v2  ;;  %10479 = vmatpush3.msra.mxu1 %v2832_v5 }
0x12e4   :  { %10488 = vmatprep.subr.mxu1 %v11888_v4 }
0x12e5   :  { %v2809_v58 = vmul.f32 1.442695, %v2802_v6 }
0x12e6   :  { %v2908_v9 = vpop.permute.xlu1 %2907 }
0x12e7   :  { %11788 = vpow2.f32 %v2809_v58  ;;  %10484 = vmatpush3.msra.mxu0 %v2908_v9  ;;  %v9592_v58 = vld [vmem:[%s13665_s7 + $0x2] ss:$0 sm:$0xff] }
0x12e8   :  { %10493 = vmatprep.subr.mxu0 %v11888_v4 }
0x12e9   :  { %v11785_v10 = vpop.eup %11784 }
0x12ea   :  { %v2814_v11 = vsel %vm158_vm2, %v11785_v10, 0.0 }
0x12eb   :  { %2815 = vadd.xlane.f32.xlu1 %v2814_v11 }
0x12ed   :  { %v11787_v12 = vpop.eup %11786 }
0x12ee   :  { %v2817_v15 = vsel %vm158_vm2, %v11787_v12, 0.0 }
0x12ef   :  { %2818 = vadd.xlane.f32.xlu0 %v2817_v15 }
0x12f1   :  { %v11789_v13 = vpop.eup %11788 }
0x12f2   :  { %v2820_v16 = vsel %vm158_vm2, %v11789_v13, 0.0 }
0x12f3   :  { %2821 = vadd.xlane.f32.xlu1 %v2820_v16 }
0x1304   :  { %2983 = vrot.lane.b32.xlu1 %v12424_v3, %s13686_s30 }
0x1305   :  { %3059 = vrot.lane.b32.xlu0 %v12433_v21, %s13686_s30 }
0x1313   :  { %v2813_v17 = vpop.xlane.xlu0 %2812 }
0x1314   :  { %11790 = vrcp.f32 %v2813_v17 }
0x131e   :  { %v11791_v19 = vpop.eup %11790 }
0x131f   :  { %v2827_v20 = vmul.f32 %v11791_v19, %v11783_v54  ;;  %v9597_v54 = vld [vmem:[%s13660_s4 + $0x70] sm:$0xff] }
0x1320   :  { %v11620_v59 = vpack.i.bf16 %v9598_v57, %v9597_v54 }
0x1321   :  { %10481 = vmatmul.mubr.msk.f32.vlgmr.msra.gmra.mrb[38].mxu1 %vm158_vm2, %v2827_v20 }
0x1322   :  { %10490 = vmatprep.mubr.msk.f32.mxu1 %vm11887_vm0, %v11888_v4 }
0x1378   :  { %v2816_v22 = vpop.xlane.xlu1 %2815 }
0x1379   :  { %11792 = vrcp.f32 %v2816_v22 }
0x137c   :  { %v2819_v23 = vpop.xlane.xlu0 %2818 }
0x137d   :  { %11794 = vrcp.f32 %v2819_v23 }
0x1380   :  { %v2822_v25 = vpop.xlane.xlu1 %2821  ;;  %v3060_v21 = vpop.permute.xlu0 %3059 }
0x1381   :  { %11796 = vrcp.f32 %v2822_v25 }
0x1383   :  { %v11793_v27 = vpop.eup %11792 }
0x1384   :  { %v2984_v3 = vpop.permute.xlu1 %2983  ;;  %v2828_v28 = vmul.f32 %v11793_v27, %v11785_v10 }
0x1385   :  { %10489 = vmatpush3.msra.mxu1 %v2984_v3 }
0x1386   :  { %10486 = vmatmul.mubr.msk.f32.vlgmr.msra.gmra.mrb[26].mxu0 %vm158_vm2, %v2828_v28  ;;  %11244 = vmatprep.subr.bf16.mxu1 %v11886_v0 }
0x1387   :  { %v11795_v29 = vpop.eup %11794  ;;  %10494 = vmatpush3.msra.mxu0 %v3060_v21  ;;  %10495 = vmatprep.mubr.msk.f32.mxu0 %vm11887_vm0, %v11888_v4 }
0x1388   :  { %v2829_v30 = vmul.f32 %v11795_v29, %v11787_v12  ;;  %10509 = vmatprep.subr.mxu0 %v11888_v4 }
0x138a   :  { %10491 = vmatmul.mubr.msk.f32.vlgmr.msra.gmra.mrb[40].mxu1 %vm158_vm2, %v2829_v30 }
0x138b   :  { %v11797_v31 = vpop.eup %11796  ;;  %10506 = vmatprep.mubr.msk.f32.mxu1 %vm11887_vm0, %v11888_v4  ;;  %11246 = vmatpush3.bf16.msra.mxu1 %v11245_v35 }
0x138c   :  { %v2830_v18 = vmul.f32 %v11797_v31, %v11789_v13  ;;  %11247 = vmatprep.subr.bf16.mxu1 %v11886_v0 }
0x138e   :  { %10496 = vmatmul.mubr.msk.f32.vlgmr.msra.gmra.mrb[28].mxu0 %vm158_vm2, %v2830_v18 }
0x138f   :  { %10511 = vmatprep.mubr.msk.f32.mxu0 %vm11887_vm0, %v11888_v4  ;;  %11249 = vmatpush3.bf16.msra.mxu1 %v11248_v37 }
0x13f4   :  { %v2903_v32 = vpop.f32.mrb[38].mxu1 }
0x13f5   :  { %v10482_v33 = vpop.f32.mrb[39].mxu1 }
0x1459   :  { %v2979_v38 = vpop.f32.mrb[26].mxu0 }
0x145a   :  { %3136 = vrot.lane.b32.xlu1 %v2979_v38, %s11894_s16  ;;  %v10487_v39 = vpop.f32.mrb[27].mxu0 }
0x145d   :  { %v3055_v40 = vpop.f32.mrb[40].mxu1 }
0x145e   :  { %3140 = vrot.lane.b32.xlu0 %v3055_v40, %s13678_s17  ;;  %v10492_v41 = vpop.f32.mrb[41].mxu1 }
0x1461   :  { %v3131_v42 = vpop.f32.mrb[28].mxu0 }
0x1462   :  { %3144 = vrot.lane.b32.xlu1 %v3131_v42, %s13676_s18  ;;  %v10497_v43 = vpop.f32.mrb[29].mxu0  ;;  %11616 = vrot.lane.b32.xlu0 %v11615_v55, %s11891_s22 }
0x1466   :  { %11621 = vrot.lane.b32.xlu1 %v11620_v59, %s11891_s22 }
0x14cc   :  { %v3137_v44 = vpop.permute.xlu1 %3136 }
0x14cd   :  { %v3147_v47 = vsel %vm158_vm2, %v2903_v32, %v3137_v44 }
0x14d0   :  { %v3141_v45 = vpop.permute.xlu0 %3140 }
0x14d1   :  { %v3148_v49 = vsel %vm830_vm4, %v3147_v47, %v3141_v45 }
0x14d4   :  { %v3145_v50 = vpop.permute.xlu1 %3144  ;;  %v11617_v60 = vpop.permute.xlu0 %11616 }
0x14d5   :  { %v3149_v51 = vsel %vm832_vm5, %v3148_v49, %v3145_v50  ;;  %v11619_v61 = vunpack.i.h.bf16 %v11617_v60  ;;  %v11618_v8 = vunpack.i.l.bf16 %v11617_v60 }
0x14d6   :  { %10507 = vmatmul.mubr.msk.f32.vlgmr.msra.gmra.mrb[42].mxu1 %vm75_vm1, %v3149_v51 }
0x14d7   :  { %10533 = vmatprep.mubr.msk.f32.mxu1 %vm75_vm1, %v12122_v46  ;;  %v11254_v46 = vpack.c.bf16 %v9598_v57, %v9597_v54  ;;  %v11256_v9 = vpack.c.bf16 %v11619_v61, %v11618_v8 }
0x14d8   :  { %v11622_v2 = vpop.permute.xlu1 %11621 }
0x14d9   :  { %v11624_v5 = vunpack.i.h.bf16 %v11622_v2  ;;  %v11623_v6 = vunpack.i.l.bf16 %v11622_v2  ;;  %11257 = vmatprep.subr.bf16.mxu1 %v11256_v9 }
0x14da   :  { %11259 = vmatpush3.bf16.msra.mxu1 %v11256_v9 }
0x14db   :  { %v11260_v10 = vpack.c.bf16 %v11624_v5, %v11623_v6 }
0x14dd   :  { %11261 = vmatprep.subr.bf16.mxu1 %v11260_v10 }
0x14de   :  { %11263 = vmatpush3.bf16.msra.mxu1 %v11260_v10 }
0x14df   :  { %11268 = vmatprep.subr.bf16.mxu1 %v11886_v0 }
0x14e1   :  { %10534 = vmatmul.mubr.msk.f32.vlgmr.msra.gmra.mrb[44].mxu1 %vm75_vm1, %v12140_v63 }
0x14e2   :  { %10547 = vmatprep.mubr.msk.f32.mxu1 %vm11887_vm0, %v11888_v4 }
0x15a9   :  { %v3225_v11 = vpop.f32.mrb[42].mxu1 }
0x15aa   :  { %v3226_v12 = vadd.f32 %v9592_v58, %v3225_v11  ;;  %v10508_v15 = vpop.f32.mrb[43].mxu1 }
0x15ac   :  { %v3229_v13 = vadd.f32 %v3226_v12, %v12359_v48 }
0x15ae   :  { %10510 = vmatpush3.msra.mxu0 %v3229_v13 }
0x15af   :  { %10512 = vmatmul.mubr.msk.f32.vlgmr.msra.gmra.mrb[30].mxu0 %vm158_vm2, %v12135_v62  ;;  %11250 = vmatprep.subr.bf16.mxu0 %v11886_v0  ;;  %v9605_v62 = vld [vmem:[%s13662_s5 + $0x3] ss:$0 sm:$0xff] }
0x15b0   :  { %11252 = vmatpush3.bf16.msra.mxu0 %v11251_v56  ;;  %10522 = vmatprep.mubr.msk.f32.mxu0 %vm11887_vm0, %v11888_v4 }
0x15b1   :  { %11253 = vmatprep.subr.bf16.mxu0 %v11886_v0  ;;  %3410 = vrot.lane.b32.xlu0 %v9605_v62, %s11891_s22 }
0x15b4   :  { %11255 = vmatpush3.bf16.msra.mxu0 %v11254_v46  ;;  %v10535_v19 = vpop.f32.mrb[44].mxu1 }
0x15b5   :  { %11264 = vmatprep.subr.bf16.mxu0 %v11886_v0  ;;  %v3479_v22 = vpop.f32.mrb[45].mxu1 }
0x1623   :  { %v3411_v16 = vpop.permute.xlu0 %3410 }
0x1624   :  { %v3485_v20 = vadd.f32 %v10535_v19, %v3411_v16  ;;  %v3480_v23 = vadd.f32 %v3479_v22, %v3411_v16 }
0x1626   :  { %v11625_v25 = vpack.i.bf16 %v3485_v20, %v3480_v23  ;;  %v11265_v27 = vpack.c.bf16 %v3485_v20, %v3480_v23 }
0x1628   :  { %11626 = vrot.lane.b32.xlu1 %v11625_v25, %s11890_s21  ;;  %11631 = vrot.lane.b32.xlu0 %v11625_v25, %s11892_s23 }
0x162c   :  { %11636 = vrot.lane.b32.xlu1 %v11625_v25, %s11889_s20 }
0x1682   :  { %v12559_v48 = vpop.f32.mrb[30].mxu0 }
0x1683   :  { %v12562_v63 = vsub.f32 %v3229_v13, %v12559_v48  ;;  %v10513_v17 = vpop.f32.mrb[31].mxu0 }
0x1685   :  { %10523 = vmatmul.mubr.msk.f32.vlgmr.msra.gmra.mrb[32].mxu0 %vm75_vm1, %v12562_v63 }
0x1686   :  { %10540 = vmatprep.mubr.msk.f32.mxu0 %vm11887_vm0, %v11888_v4  ;;  %11267 = vmatpush3.bf16.xpose.msk.msra.mxu0 %vm12171_vm6, %v11265_v27 }
0x1687   :  { %11272 = vmatprep.subr.bf16.mxu0 %v11886_v0 }
0x169a   :  { %v11627_v3 = vpop.permute.xlu1 %11626  ;;  %v12577_v30 = vpop.permute.xlu0 %11631 }
0x169b   :  { %v11629_v28 = vunpack.i.h.bf16 %v11627_v3  ;;  %v11628_v21 = vunpack.i.l.bf16 %v11627_v3  ;;  %v11634_v31 = vunpack.i.h.bf16 %v12577_v30  ;;  %v11633_v18 = vunpack.i.l.bf16 %v12577_v30 }
0x169d   :  { %v11269_v29 = vpack.c.bf16 %v11629_v28, %v11628_v21  ;;  %v11273_v34 = vpack.c.bf16 %v11634_v31, %v11633_v18 }
0x169e   :  { %v12590_v35 = vpop.permute.xlu1 %11636 }
0x169f   :  { %11271 = vmatpush3.bf16.xpose.msk.msra.mxu1 %vm12171_vm6, %v11269_v29  ;;  %v11639_v1 = vunpack.i.h.bf16 %v12590_v35  ;;  %v11638_v36 = vunpack.i.l.bf16 %v12590_v35 }
0x16a0   :  { %11276 = vmatprep.subr.bf16.mxu1 %v11886_v0 }
0x16a1   :  { %v11277_v37 = vpack.c.bf16 %v11639_v1, %v11638_v36 }
0x1758   :  { %v3390_v32 = vpop.f32.mrb[32].mxu0 }
0x1759   :  { %v3391_v33 = vadd.f32 %v9605_v62, %v3390_v32  ;;  %v10524_v26 = vpop.f32.mrb[33].mxu0 }
0x175b   :  { %3489 = vrot.lane.b32.xlu0 %v3391_v33, %s11890_s21  ;;  %3491 = vrot.lane.b32.xlu1 %v3391_v33, %s11892_s23 }
0x175c   :  { %10541 = vmatmul.mubr.msk.f32.vlgmr.msra.gmra.mrb[34].mxu0 %vm158_vm2, %v3391_v33 }
0x175d   :  { %11275 = vmatpush3.bf16.xpose.msk.msra.mxu0 %vm12171_vm6, %v11273_v34  ;;  %10554 = vmatprep.mubr.msk.f32.mxu0 %vm11887_vm0, %v11888_v4 }
0x175e   :  { %11280 = vmatprep.subr.bf16.mxu0 %v11886_v0 }
0x175f   :  { %3493 = vrot.lane.b32.xlu0 %v3391_v33, %s11889_s20 }
0x17cd   :  { %v3490_v38 = vpop.permute.xlu0 %3489  ;;  %v3492_v39 = vpop.permute.xlu1 %3491 }
0x17ce   :  { %10548 = vmatmul.mubr.msk.f32.vlgmr.msra.gmra.mrb[46].mxu1 %vm158_vm2, %v3490_v38  ;;  %10555 = vmatmul.mubr.msk.f32.vlgmr.msra.gmra.mrb[36].mxu0 %vm158_vm2, %v3492_v39 }
0x17cf   :  { %11279 = vmatpush3.bf16.xpose.msk.msra.mxu1 %vm12171_vm6, %v11277_v37  ;;  %10561 = vmatprep.mubr.msk.f32.mxu1 %vm11887_vm0, %v11888_v4 }
0x17d0   :  { %11284 = vmatprep.subr.bf16.mxu1 %v11886_v0  ;;  %10568 = vmatprep.mubr.msk.f32.mxu0 %vm11887_vm0, %v11888_v4 }
0x17d1   :  { %v3494_v40 = vpop.permute.xlu0 %3493 }
0x17d6   :  { %10562 = vmatmul.mubr.msk.f32.vlgmr.msra.gmra.mrb[48].mxu1 %vm158_vm2, %v3494_v40 }
0x17d7   :  { %10575 = vmatprep.mubr.msk.f32.mxu1 %vm11887_vm0, %v11888_v4 }
0x182f   :  { %v3581_v41 = vpop.f32.mrb[34].mxu0 }
0x1830   :  { %v3813_v42 = vmul.f32 0.35355338, %v3581_v41  ;;  %v10542_v43 = vpop.f32.mrb[35].mxu0 }
0x1832   :  { %v3817_v44 = vsel %vm1510_vm7, %v3813_v42, -inf }
0x1833   :  { %3818 = vmax.xlane.f32.xlu1 %v3817_v44 }
0x18a1   :  { %v3657_v45 = vpop.f32.mrb[46].mxu1  ;;  %v3733_v47 = vpop.f32.mrb[36].mxu0 }
0x18a2   :  { %v3814_v49 = vmul.f32 0.35355338, %v3657_v45  ;;  %v10549_v50 = vpop.f32.mrb[47].mxu1  ;;  %v10556_v51 = vpop.f32.mrb[37].mxu0  ;;  %v3815_v52 = vmul.f32 0.35355338, %v3733_v47 }
0x18a4   :  { %v3820_v53 = vsel %vm1510_vm7, %v3814_v49, -inf  ;;  %v3823_v54 = vsel %vm1510_vm7, %v3815_v52, -inf }
0x18a5   :  { %3821 = vmax.xlane.f32.xlu0 %v3820_v53  ;;  %v9601_v53 = vld [vmem:[%s13663_s6 + $0x68] sm:$0xff] }
0x18a9   :  { %v3809_v55 = vpop.f32.mrb[48].mxu1  ;;  %3824 = vmax.xlane.f32.xlu0 %v3823_v54 }
0x18aa   :  { %v3816_v56 = vmul.f32 0.35355338, %v3809_v55  ;;  %v10563_v57 = vpop.f32.mrb[49].mxu1  ;;  %v9602_v55 = vld [vmem:[%s13663_s6 + $0x70] sm:$0xff] }
0x18ac   :  { %v3826_v59 = vsel %vm1510_vm7, %v3816_v56, -inf }
0x18ad   :  { %3827 = vmax.xlane.f32.xlu1 %v3826_v59 }
0x18be   :  { %11646 = vrot.lane.b32.xlu1 %v11627_v3, %s11891_s22 }
0x18bf   :  { %11641 = vrot.lane.b32.xlu0 %v11625_v25, %s11891_s22 }
0x18c0   :  { %v3819_v46 = vpop.xlane.xlu1 %3818 }
0x18c1   :  { %v3829_v60 = vsub.f32 %v3813_v42, %v3819_v46 }
0x18c3   :  { %v3833_v61 = vmul.f32 1.442695, %v3829_v60 }
0x18c5   :  { %11798 = vpow2.f32 %v3833_v61 }
0x18cf   :  { %v11799_v8 = vpop.eup %11798 }
0x18d0   :  { %v3841_v2 = vsel %vm1510_vm7, %v11799_v8, 0.0 }
0x18de   :  { %3842 = vadd.xlane.f32.xlu0 %v3841_v2 }
0x1932   :  { %v3822_v5 = vpop.xlane.xlu0 %3821 }
0x1933   :  { %v3830_v6 = vsub.f32 %v3814_v49, %v3822_v5 }
0x1935   :  { %v3835_v58 = vmul.f32 1.442695, %v3830_v6 }
0x1936   :  { %v3825_v9 = vpop.xlane.xlu0 %3824 }
0x1937   :  { %11800 = vpow2.f32 %v3835_v58  ;;  %v3831_v10 = vsub.f32 %v3815_v52, %v3825_v9  ;;  %v9600_v52 = vld [vmem:[%s13663_s6 + $0x60] sm:$0xff] }
0x1938   :  { %v11297_v54 = vpack.c.bf16 %v9601_v53, %v9600_v52 }
0x1939   :  { %v3837_v11 = vmul.f32 1.442695, %v3831_v10 }
0x193a   :  { %v3828_v12 = vpop.xlane.xlu1 %3827  ;;  %v11642_v15 = vpop.permute.xlu0 %11641 }
0x193b   :  { %11802 = vpow2.f32 %v3837_v11  ;;  %v3832_v13 = vsub.f32 %v3816_v56, %v3828_v12  ;;  %v11644_v62 = vunpack.i.h.bf16 %v11642_v15  ;;  %v11643_v16 = vunpack.i.l.bf16 %v11642_v15  ;;  %v9603_v56 = vld [vmem:[%s13663_s6 + $0x78] sm:$0xff]  ;;  %v9629_v12 = vld [vmem:[%s13665_s7 + $0x3] ss:$0 sm:$0xff] }
0x193c   :  { %v11300_v57 = vpack.c.bf16 %v9603_v56, %v9602_v55  ;;  %v46_v56 = vld [vmem:[%s13671_s11] sm:$0xff] }
0x193d   :  { %v3839_v17 = vmul.f32 1.442695, %v3832_v13  ;;  %v11281_v19 = vpack.c.bf16 %v11644_v62, %v11643_v16  ;;  %v9632_v13 = vld [vmem:[%s13667_s8 + $0x20] sm:$0xff]  ;;  %v9633_v62 = vld [vmem:[%s13667_s8 + $0x28] sm:$0xff] }
0x193e   :  { %v11647_v20 = vpop.permute.xlu1 %11646 }
0x193f   :  { %11804 = vpow2.f32 %v3839_v17  ;;  %v11649_v22 = vunpack.i.h.bf16 %v11647_v20  ;;  %v11648_v23 = vunpack.i.l.bf16 %v11647_v20  ;;  %11283 = vmatpush3.bf16.msk.msra.mxu0 %vm12224_vm10, %v11281_v19  ;;  %v11303_v20 = vpack.c.bf16 %v9633_v62, %v9632_v13 }
0x1940   :  { %11288 = vmatprep.subr.bf16.mxu0 %v11886_v0 }
0x1941   :  { %v11801_v25 = vpop.eup %11800  ;;  %v11285_v27 = vpack.c.bf16 %v11649_v22, %v11648_v23  ;;  %v12680_v22 = vld [vmem:[%s13666_s3] sm:$0xff]  ;;  %v9635_v23 = vld [vmem:[%s13667_s8 + $0x38] sm:$0xff] }
0x1942   :  { %v3844_v3 = vsel %vm1510_vm7, %v11801_v25, 0.0 }
0x1943   :  { %11287 = vmatpush3.bf16.msk.msra.mxu1 %vm12224_vm10, %v11285_v27  ;;  %3845 = vadd.xlane.f32.xlu1 %v3844_v3  ;;  %v9637_v27 = vld [vmem:[%s13668_s9 + $0x40] sm:$0xff]  ;;  %v9638_v3 = vld [vmem:[%s13668_s9 + $0x48] sm:$0xff] }
0x1944   :  { %11292 = vmatprep.subr.bf16.mxu1 %v11886_v0 }
0x1945   :  { %v11803_v28 = vpop.eup %11802 }
0x1946   :  { %v3847_v21 = vsel %vm1510_vm7, %v11803_v28, 0.0 }
0x1947   :  { %3848 = vadd.xlane.f32.xlu0 %v3847_v21  ;;  %v11309_v21 = vpack.c.bf16 %v9638_v3, %v9637_v27  ;;  %v4808_v3 = vld [vmem:[%s13660_s4 + $0x10] sm:$0xff] }
0x1949   :  { %v11805_v29 = vpop.eup %11804 }
0x194a   :  { %v3850_v31 = vsel %vm1510_vm7, %v11805_v29, 0.0 }
0x194b   :  { %3851 = vadd.xlane.f32.xlu1 %v3850_v31 }
0x195c   :  { %11651 = vrot.lane.b32.xlu1 %v12577_v30, %s11891_s22 }
0x195d   :  { %11656 = vrot.lane.b32.xlu0 %v12590_v35, %s11891_s22 }
0x196b   :  { %v3843_v18 = vpop.xlane.xlu0 %3842 }
0x196c   :  { %11806 = vrcp.f32 %v3843_v18  ;;  %v9641_v18 = vld [vmem:[%s13668_s9 + $0x60] sm:$0xff] }
0x1976   :  { %v11807_v32 = vpop.eup %11806 }
0x1977   :  { %v3857_v33 = vmul.f32 %v11807_v32, %v11799_v8  ;;  %v9642_v32 = vld [vmem:[%s13668_s9 + $0x68] sm:$0xff] }
0x1979   :  { %10569 = vmatmul.mubr.msk.f32.vlgmr.msra.gmra.mrb[38].mxu0 %vm1510_vm7, %v3857_v33  ;;  %v11315_v33 = vpack.c.bf16 %v9642_v32, %v9641_v18  ;;  %v9666_v32 = vld [vmem:[%s13662_s5] ss:$0 sm:$0xff] }
0x197a   :  { %10582 = vmatprep.mubr.msk.f32.mxu0 %vm11887_vm0, %v11888_v4 }
0x19d0   :  { %v3846_v26 = vpop.xlane.xlu1 %3845 }
0x19d1   :  { %11808 = vrcp.f32 %v3846_v26 }
0x19d4   :  { %v3849_v34 = vpop.xlane.xlu0 %3848 }
0x19d5   :  { %11810 = vrcp.f32 %v3849_v34 }
0x19d8   :  { %v3852_v1 = vpop.xlane.xlu1 %3851  ;;  %v11657_v36 = vpop.permute.xlu0 %11656 }
0x19d9   :  { %11812 = vrcp.f32 %v3852_v1  ;;  %v11659_v30 = vunpack.i.h.bf16 %v11657_v36  ;;  %v11658_v37 = vunpack.i.l.bf16 %v11657_v36 }
0x19db   :  { %v11809_v38 = vpop.eup %11808  ;;  %v11293_v35 = vpack.c.bf16 %v11659_v30, %v11658_v37  ;;  %v9643_v30 = vld [vmem:[%s13668_s9 + $0x70] sm:$0xff]  ;;  %v9644_v37 = vld [vmem:[%s13668_s9 + $0x78] sm:$0xff] }
0x19dc   :  { %v11652_v39 = vpop.permute.xlu1 %11651  ;;  %v3858_v40 = vmul.f32 %v11809_v38, %v11801_v25  ;;  %v11318_v38 = vpack.c.bf16 %v9644_v37, %v9643_v30 }
0x19dd   :  { %v11654_v41 = vunpack.i.h.bf16 %v11652_v39  ;;  %v11653_v42 = vunpack.i.l.bf16 %v11652_v39 }
0x19de   :  { %10576 = vmatmul.mubr.msk.f32.vlgmr.msra.gmra.mrb[50].mxu1 %vm1510_vm7, %v3858_v40 }
0x19df   :  { %v11811_v43 = vpop.eup %11810  ;;  %v11289_v44 = vpack.c.bf16 %v11654_v41, %v11653_v42  ;;  %11295 = vmatpush3.bf16.msk.msra.mxu1 %vm12224_vm10, %v11293_v35  ;;  %10589 = vmatprep.mubr.msk.f32.mxu1 %vm11887_vm0, %v11888_v4 }
0x19e0   :  { %v3859_v45 = vmul.f32 %v11811_v43, %v11803_v28  ;;  %10603 = vmatprep.subr.mxu1 %v11888_v4  ;;  %v9639_v28 = vld [vmem:[%s13668_s9 + $0x50] sm:$0xff] }
0x19e1   :  { %11291 = vmatpush3.bf16.msk.msra.mxu0 %vm12224_vm10, %v11289_v44 }
0x19e2   :  { %11296 = vmatprep.subr.bf16.mxu0 %v11886_v0 }
0x19e3   :  { %v11813_v47 = vpop.eup %11812 }
0x19e4   :  { %10583 = vmatmul.mubr.msk.f32.vlgmr.msra.gmra.mrb[40].mxu0 %vm1510_vm7, %v3859_v45  ;;  %v3860_v49 = vmul.f32 %v11813_v47, %v11805_v29  ;;  %v9640_v29 = vld [vmem:[%s13668_s9 + $0x58] sm:$0xff] }
0x19e5   :  { %10600 = vmatprep.mubr.msk.f32.mxu0 %vm11887_vm0, %v11888_v4  ;;  %11298 = vmatpush3.bf16.msra.mxu0 %v11297_v54  ;;  %v11312_v31 = vpack.c.bf16 %v9640_v29, %v9639_v28  ;;  %v4809_v28 = vld [vmem:[%s13660_s4 + $0x18] sm:$0xff]  ;;  %v12786_v29 = vld [vmem:[%s13661_s0 + $0x8] sm:$0xff] }
0x19e6   :  { %10590 = vmatmul.mubr.msk.f32.vlgmr.msra.gmra.mrb[52].mxu1 %vm1510_vm7, %v3860_v49  ;;  %11299 = vmatprep.subr.bf16.mxu0 %v11886_v0 }
0x19e7   :  { %10605 = vmatprep.mubr.msk.f32.mxu1 %vm11887_vm0, %v11888_v4 }
0x19e9   :  { %11301 = vmatpush3.bf16.msra.mxu0 %v11300_v57  ;;  %v47_v57 = vld [vmem:[%s13671_s11 + $0x8] sm:$0xff] }
0x19ea   :  { %11308 = vmatprep.subr.bf16.mxu0 %v11886_v0 }
0x1a4c   :  { %v3937_v50 = vpop.f32.mrb[38].mxu0 }
0x1a4d   :  { %v10570_v51 = vpop.f32.mrb[39].mxu0 }
0x1ab1   :  { %v4017_v59 = vpop.f32.mrb[50].mxu1 }
0x1ab2   :  { %4182 = vrot.lane.b32.xlu1 %v4017_v59, %s11894_s16  ;;  %v10577_v46 = vpop.f32.mrb[51].mxu1  ;;  %v12749_v59 = vpack.c.bf16 %v47_v57, %v46_v56 }
0x1ab3   :  { %v48_v46 = vld [vmem:[%s13671_s11 + $0x10] sm:$0xff] }
0x1ab7   :  { %v4097_v60 = vpop.f32.mrb[40].mxu0 }
0x1ab8   :  { %4186 = vrot.lane.b32.xlu0 %v4097_v60, %s13678_s17  ;;  %v10584_v61 = vpop.f32.mrb[41].mxu0  ;;  %v49_v60 = vld [vmem:[%s13671_s11 + $0x18] sm:$0xff] }
0x1ab9   :  { %v4177_v8 = vpop.f32.mrb[52].mxu1  ;;  %v12759_v61 = vpack.c.bf16 %v49_v60, %v48_v46 }
0x1aba   :  { %4190 = vrot.lane.b32.xlu1 %v4177_v8, %s13676_s18  ;;  %v10591_v2 = vpop.f32.mrb[53].mxu1  ;;  %s13687_s18 = smov 16  }
0x1b24   :  { %v4183_v5 = vpop.permute.xlu1 %4182 }
0x1b25   :  { %v4193_v6 = vsel %vm158_vm2, %v3937_v50, %v4183_v5  ;;  %v9660_v50 = vld [vmem:[%s13670_s12] ss:$0 sm:$0xff] }
0x1b2a   :  { %v4187_v58 = vpop.permute.xlu0 %4186 }
0x1b2b   :  { %v4194_v9 = vsel %vm830_vm4, %v4193_v6, %v4187_v58 }
0x1b2c   :  { %v4191_v10 = vpop.permute.xlu1 %4190 }
0x1b2d   :  { %v4195_v11 = vsel %vm832_vm5, %v4194_v9, %v4191_v10 }
0x1b2e   :  { %10601 = vmatmul.mubr.msk.f32.vlgmr.msra.gmra.mrb[42].mxu0 %vm75_vm1, %v4195_v11 }
0x1b2f   :  { %10635 = vmatprep.mubr.msk.f32.mxu0 %vm11887_vm0, %v11888_v4  ;;  %11310 = vmatpush3.bf16.msra.mxu0 %v11309_v21  ;;  %v11348_v21 = vpack.c.bf16 %v4809_v28, %v4808_v3 }
0x1b30   :  { %11311 = vmatprep.subr.bf16.mxu0 %v11886_v0 }
0x1b33   :  { %11313 = vmatpush3.bf16.msra.mxu0 %v11312_v31 }
0x1b34   :  { %11314 = vmatprep.subr.bf16.mxu0 %v11886_v0 }
0x1b37   :  { %11316 = vmatpush3.bf16.msra.mxu0 %v11315_v33 }
0x1b38   :  { %11317 = vmatprep.subr.bf16.mxu0 %v11886_v0 }
0x1b3b   :  { %11319 = vmatpush3.bf16.msra.mxu0 %v11318_v38 }
0x1b3c   :  { %11320 = vmatprep.subr.bf16.mxu0 %v11886_v0 }
0x1c01   :  { %v4271_v15 = vpop.f32.mrb[42].mxu0 }
0x1c02   :  { %v4272_v16 = vadd.f32 %v9629_v12, %v4271_v15  ;;  %v10602_v17 = vpop.f32.mrb[43].mxu0 }
0x1c04   :  { %v4275_v19 = vadd.f32 %v4272_v16, %v12562_v63  ;;  %v9634_v63 = vld [vmem:[%s13667_s8 + $0x30] sm:$0xff] }
0x1c05   :  { %v11306_v25 = vpack.c.bf16 %v9635_v23, %v9634_v63  ;;  %v4807_v63 = vld [vmem:[%s13660_s4 + $0x8] sm:$0xff] }
0x1c06   :  { %10604 = vmatpush3.msra.mxu1 %v4275_v19 }
0x1c07   :  { %10606 = vmatmul.mubr.msk.f32.vlgmr.msra.gmra.mrb[54].mxu1 %vm158_vm2, %v12680_v22  ;;  %11302 = vmatprep.subr.bf16.mxu1 %v11886_v0 }
0x1c08   :  { %11304 = vmatpush3.bf16.msra.mxu1 %v11303_v20  ;;  %10616 = vmatprep.mubr.msk.f32.mxu1 %vm11887_vm0, %v11888_v4  ;;  %v4806_v20 = vld [vmem:[%s13660_s4] sm:$0xff] }
0x1c09   :  { %11305 = vmatprep.subr.bf16.mxu1 %v11886_v0 }
0x1c0c   :  { %11307 = vmatpush3.bf16.msra.mxu1 %v11306_v25  ;;  %v11345_v25 = vpack.c.bf16 %v4807_v63, %v4806_v20  ;;  %v9655_v20 = vld [vmem:[%s13669_s10 + $0xa0] sm:$0xff]  ;;  %v9656_v63 = vld [vmem:[%s13669_s10 + $0xa8] sm:$0xff] }
0x1c0d   :  { %10638 = vmatprep.subr.mxu1 %v11888_v4 }
0x1cda   :  { %v4342_v26 = vpop.f32.mrb[54].mxu1 }
0x1cdb   :  { %v4346_v34 = vsub.f32 %v4275_v19, %v4342_v26  ;;  %v4580_v1 = vadd.f32 %v4342_v26, %v12559_v48  ;;  %v10607_v36 = vpop.f32.mrb[55].mxu1 }
0x1cdd   :  { %10617 = vmatmul.mubr.msk.f32.vlgmr.msra.gmra.mrb[56].mxu1 %vm75_vm1, %v4346_v34 }
0x1cde   :  { %10640 = vmatprep.mubr.msk.f32.mxu1 %vm11887_vm0, %v11888_v4 }
0x1db0   :  { %v4421_v35 = vpop.f32.mrb[56].mxu1 }
0x1db1   :  { %v4425_v48 = vmax.f32 %v4421_v35, 0.0  ;;  %v10618_v39 = vpop.f32.mrb[57].mxu1 }
0x1db3   :  { %10636 = vmatmul.mubr.msk.f32.vlgmr.msra.gmra.mrb[44].mxu0 %vm2128_vm11, %v4425_v48 }
0x1db4   :  { %10667 = vmatprep.mubr.msk.f32.mxu0 %vm11887_vm0, %v11888_v4 }
0x1e86   :  { %v4504_v40 = vpop.f32.mrb[44].mxu0 }
0x1e87   :  { %v4508_v41 = vadd.f32 %v4504_v40, %v4346_v34  ;;  %v10637_v42 = vpop.f32.mrb[45].mxu0 }
0x1e89   :  { %10639 = vmatpush3.msra.mxu1 %v4508_v41 }
0x1e8a   :  { %10641 = vmatmul.mubr.msk.f32.vlgmr.msra.gmra.mrb[58].mxu1 %vm158_vm2, %v12680_v22  ;;  %11338 = vmatprep.subr.bf16.mxu1 %v11886_v0 }
0x1e8b   :  { %10678 = vmatprep.mubr.msk.f32.mxu1 %vm11887_vm0, %v11888_v4  ;;  %11340 = vmatpush3.bf16.msra.mxu1 %v12749_v59 }
0x1e8c   :  { %11341 = vmatprep.subr.bf16.mxu1 %v11886_v0 }
0x1e8f   :  { %11343 = vmatpush3.bf16.msra.mxu1 %v12759_v61 }
0x1e90   :  { %11344 = vmatprep.subr.bf16.mxu1 %v11886_v0 }
0x1f5d   :  { %v4575_v43 = vpop.f32.mrb[58].mxu1 }
0x1f5e   :  { %v4579_v44 = vsub.f32 %v4508_v41, %v4575_v43  ;;  %v12735_v45 = vadd.f32 %v4580_v1, %v4575_v43  ;;  %v10642_v47 = vpop.f32.mrb[59].mxu1 }
0x1f5f   :  { %v9648_v47 = vld [vmem:[%s13669_s10 + $0x68] sm:$0xff] }
0x1f60   :  { %v4681_v49 = vsel %vm75_vm1, %v4579_v44, 0.0  ;;  %v4596_v28 = vrot.slane %v12735_v45, 1 }
0x1f61   :  { %4682 = vadd.xlane.f32.xlu0 %v4681_v49  ;;  %v9649_v49 = vld [vmem:[%s13669_s10 + $0x70] sm:$0xff] }
0x1f77   :  { %4702 = vrot.lane.b32.xlu0 %v9660_v50, %s11891_s22 }
0x1fee   :  { %v4683_v51 = vpop.xlane.xlu0 %4682 }
0x1fef   :  { %v4685_v52 = vmul.f32 0.03125, %v4683_v51  ;;  %v9650_v51 = vld [vmem:[%s13669_s10 + $0x78] sm:$0xff] }
0x1ff1   :  { %v4686_v53 = vsub.f32 %v4579_v44, %v4685_v52  ;;  %v9647_v44 = vld [vmem:[%s13669_s10 + $0x60] sm:$0xff]  ;;  %v11324_v52 = vpack.c.bf16 %v9650_v51, %v9649_v49 }
0x1ff2   :  { %v12763_v9 = vpop.permute.xlu0 %4702 }
0x1ff3   :  { %v4687_v54 = vmul.f32 %v4686_v53, %v4686_v53 }
0x1ff5   :  { %v4688_v55 = vsel %vm75_vm1, %v4687_v54, 0.0  ;;  %v9652_v54 = vld [vmem:[%s13669_s10 + $0x88] sm:$0xff] }
0x1ff6   :  { %4689 = vadd.xlane.f32.xlu1 %v4688_v55 }
0x2083   :  { %v4690_v8 = vpop.xlane.xlu1 %4689 }
0x2084   :  { %v4691_v2 = vmul.f32 0.03125, %v4690_v8 }
0x2086   :  { %v4692_v5 = vadd.f32 1e-05, %v4691_v2 }
0x2088   :  { %11814 = vrsqrt.f32 %v4692_v5 }
0x2092   :  { %v11815_v6 = vpop.eup %11814 }
0x2093   :  { %v4694_v58 = vmul.f32 %v11815_v6, %v4686_v53  ;;  %v9651_v53 = vld [vmem:[%s13669_s10 + $0x80] sm:$0xff] }
0x2094   :  { %v11327_v55 = vpack.c.bf16 %v9652_v54, %v9651_v53 }
0x2095   :  { %v4701_v10 = vmul.f32 %v9660_v50, %v4694_v58  ;;  %v11321_v50 = vpack.c.bf16 %v9648_v47, %v9647_v44 }
0x2097   :  { %v4705_v11 = vadd.f32 %v12763_v9, %v4701_v10  ;;  %11322 = vmatpush3.bf16.msra.mxu0 %v11321_v50 }
0x2098   :  { %11323 = vmatprep.subr.bf16.mxu0 %v11886_v0 }
0x2099   :  { %v4706_v12 = vsel %vm75_vm1, %v4705_v11, 0.0 }
0x209a   :  { %v4707_v15 = vrot.slane %v4706_v12, 4 }
0x209b   :  { %11325 = vmatpush3.bf16.msra.mxu0 %v11324_v52 }
0x209c   :  { %v4708_v13 = vadd.f32 %v4707_v15, %v4706_v12  ;;  %11326 = vmatprep.subr.bf16.mxu0 %v11886_v0 }
0x209e   :  { %v4709_v62 = vrot.slane %v4708_v13, 2 }
0x209f   :  { %11328 = vmatpush3.bf16.msra.mxu0 %v11327_v55 }
0x20a0   :  { %v4710_v16 = vadd.f32 %v4709_v62, %v4708_v13  ;;  %11329 = vmatprep.subr.bf16.mxu0 %v11886_v0 }
0x20a2   :  { %v4711_v17 = vrot.slane %v4710_v16, 1 }
0x20a4   :  { %v4712_v19 = vadd.f32 %v4711_v17, %v4710_v16  ;;  %v9653_v16 = vld [vmem:[%s13669_s10 + $0x90] sm:$0xff]  ;;  %v9654_v17 = vld [vmem:[%s13669_s10 + $0x98] sm:$0xff] }
0x20a6   :  { %v4714_v23 = vmul.f32 0.125, %v4712_v19  ;;  %v11330_v19 = vpack.c.bf16 %v9654_v17, %v9653_v16 }
0x20a8   :  { %v4715_v27 = vsub.f32 %v4705_v11, %v4714_v23  ;;  %11331 = vmatpush3.bf16.msra.mxu0 %v11330_v19  ;;  %v11333_v23 = vpack.c.bf16 %v9656_v63, %v9655_v20  ;;  %v4811_v19 = vld [vmem:[%s13663_s6] sm:$0xff]  ;;  %v4812_v20 = vld [vmem:[%s13663_s6 + $0x8] sm:$0xff] }
0x20a9   :  { %11332 = vmatprep.subr.bf16.mxu0 %v11886_v0  ;;  %v11351_v63 = vpack.c.bf16 %v4812_v20, %v4811_v19 }
0x20aa   :  { %10679 = vmatmul.mubr.msk.f32.vlgmr.msra.gmra.mrb[60].mxu1 %vm75_vm1, %v4715_v27  ;;  %v9658_v27 = vld [vmem:[%s13669_s10 + $0xb8] sm:$0xff] }
0x20ab   :  { %11346 = vmatpush3.bf16.msra.mxu1 %v11345_v25  ;;  %10689 = vmatprep.mubr.msk.f32.mxu1 %vm11887_vm0, %v11888_v4  ;;  %v9657_v25 = vld [vmem:[%s13669_s10 + $0xb0] sm:$0xff] }
0x20ac   :  { %11347 = vmatprep.subr.bf16.mxu1 %v11886_v0  ;;  %11334 = vmatpush3.bf16.msra.mxu0 %v11333_v23  ;;  %v11336_v3 = vpack.c.bf16 %v9658_v27, %v9657_v25  ;;  %v4813_v23 = vld [vmem:[%s13663_s6 + $0x10] sm:$0xff]  ;;  %v4814_v25 = vld [vmem:[%s13663_s6 + $0x18] sm:$0xff] }
0x20ad   :  { %11335 = vmatprep.subr.bf16.mxu0 %v11886_v0  ;;  %v11354_v27 = vpack.c.bf16 %v4814_v25, %v4813_v23 }
0x20af   :  { %11349 = vmatpush3.bf16.msra.mxu1 %v11348_v21 }
0x20b0   :  { %10692 = vmatprep.subr.mxu1 %v11888_v4  ;;  %11337 = vmatpush3.bf16.msra.mxu0 %v11336_v3 }
0x20b1   :  { %10712 = vmatprep.subr.mxu0 %v11888_v4 }
0x20b2   :  { %10690 = vmatmul.mubr.msk.f32.vlgmr.msra.gmra.mrb[62].mxu1 %vm75_vm1, %v12786_v29 }
0x20b3   :  { %10694 = vmatprep.mubr.msk.f32.mxu1 %vm11887_vm0, %v11888_v4 }
0x217d   :  { %v12793_v31 = vpop.f32.mrb[60].mxu1 }
0x217e   :  { %v10680_v18 = vpop.f32.mrb[61].mxu1 }
0x2185   :  { %v4891_v33 = vpop.f32.mrb[62].mxu1 }
0x2186   :  { %v12798_v26 = vadd.f32 %v9666_v32, %v4891_v33  ;;  %v10691_v34 = vpop.f32.mrb[63].mxu1 }
0x2188   :  { %4898 = vrot.lane.b32.xlu0 %v12798_v26, %s11892_s23  ;;  %4896 = vrot.lane.b32.xlu1 %v12798_v26, %s11890_s21 }
0x218c   :  { %4902 = vrot.lane.b32.xlu0 %v12798_v26, %s11891_s22  ;;  %4900 = vrot.lane.b32.xlu1 %v12798_v26, %s11889_s20 }
0x21fa   :  { %v12808_v1 = vpop.permute.xlu0 %4898  ;;  %v12810_v36 = vpop.permute.xlu1 %4896 }
0x21fb   :  { %5054 = vrot.lane.b32.xlu0 %v12808_v1, %s11891_s22  ;;  %4978 = vrot.lane.b32.xlu1 %v12810_v36, %s11891_s22 }
0x21fe   :  { %v4903_v30 = vpop.permute.xlu0 %4902  ;;  %v12816_v37 = vpop.permute.xlu1 %4900 }
0x21ff   :  { %10693 = vmatpush3.xpose.msk.msra.mxu1 %vm158_vm2, %v4903_v30  ;;  %5130 = vrot.lane.b32.xlu1 %v12816_v37, %s11891_s22 }
0x2200   :  { %10697 = vmatprep.subr.mxu1 %v11888_v4 }
0x2202   :  { %10695 = vmatmul.mubr.msk.f32.vlgmr.msra.gmra.mrb[64].mxu1 %vm158_vm2, %v12798_v26 }
0x2203   :  { %10699 = vmatprep.mubr.msk.f32.mxu1 %vm11887_vm0, %v11888_v4 }
0x226d   :  { %v4979_v38 = vpop.permute.xlu1 %4978  ;;  %v5055_v35 = vpop.permute.xlu0 %5054 }
0x226e   :  { %10698 = vmatpush3.xpose.msk.msra.mxu1 %vm158_vm2, %v4979_v38 }
0x226f   :  { %10702 = vmatprep.subr.mxu1 %v11888_v4 }
0x2271   :  { %10700 = vmatmul.mubr.msk.f32.vlgmr.msra.gmra.mrb[66].mxu1 %vm158_vm2, %v12810_v36  ;;  %v5131_v48 = vpop.permute.xlu1 %5130 }
0x2272   :  { %10703 = vmatpush3.xpose.msk.msra.mxu1 %vm158_vm2, %v5055_v35  ;;  %10704 = vmatprep.mubr.msk.f32.mxu1 %vm11887_vm0, %v11888_v4 }
0x2273   :  { %10707 = vmatprep.subr.mxu1 %v11888_v4 }
0x2275   :  { %10705 = vmatmul.mubr.msk.f32.vlgmr.msra.gmra.mrb[68].mxu1 %vm158_vm2, %v12808_v1 }
0x2276   :  { %10708 = vmatpush3.xpose.msk.msra.mxu1 %vm158_vm2, %v5131_v48  ;;  %10709 = vmatprep.mubr.msk.f32.mxu1 %vm11887_vm0, %v11888_v4 }
0x2277   :  { %10717 = vmatprep.subr.mxu1 %v11888_v4 }
0x2279   :  { %10710 = vmatmul.mubr.msk.f32.vlgmr.msra.gmra.mrb[70].mxu1 %vm158_vm2, %v12816_v37 }
0x227a   :  { %10719 = vmatprep.mubr.msk.f32.mxu1 %vm11887_vm0, %v11888_v4 }
0x22d5   :  { %v4974_v39 = vpop.f32.mrb[64].mxu1 }
0x22d6   :  { %v5206_v40 = vmul.f32 0.35355338, %v4974_v39  ;;  %v10696_v41 = vpop.f32.mrb[65].mxu1 }
0x22d8   :  { %v5210_v42 = vsel %vm12044_vm3, %v5206_v40, -inf }
0x22d9   :  { %v5214_v43 = vsel %vm158_vm2, %v5210_v42, -inf }
0x22da   :  { %5215 = vmax.xlane.f32.xlu0 %v5214_v43 }
0x2344   :  { %v5050_v56 = vpop.f32.mrb[66].mxu1 }
0x2345   :  { %v5207_v57 = vmul.f32 0.35355338, %v5050_v56  ;;  %v10701_v46 = vpop.f32.mrb[67].mxu1 }
0x2347   :  { %v5211_v60 = vsel %vm12044_vm3, %v5207_v57, -inf }
0x2348   :  { %v5126_v8 = vpop.f32.mrb[68].mxu1  ;;  %v5217_v2 = vsel %vm158_vm2, %v5211_v60, -inf }
0x2349   :  { %v5208_v5 = vmul.f32 0.35355338, %v5126_v8  ;;  %5218 = vmax.xlane.f32.xlu1 %v5217_v2  ;;  %v10706_v6 = vpop.f32.mrb[69].mxu1 }
0x234b   :  { %v5212_v58 = vsel %vm12044_vm3, %v5208_v5, -inf }
0x234c   :  { %v5202_v10 = vpop.f32.mrb[70].mxu1  ;;  %v5220_v11 = vsel %vm158_vm2, %v5212_v58, -inf }
0x234d   :  { %v5209_v12 = vmul.f32 0.35355338, %v5202_v10  ;;  %5221 = vmax.xlane.f32.xlu0 %v5220_v11  ;;  %v10711_v15 = vpop.f32.mrb[71].mxu1 }
0x234f   :  { %v5213_v13 = vsel %vm12044_vm3, %v5209_v12, -inf }
0x2350   :  { %v5223_v62 = vsel %vm158_vm2, %v5213_v13, -inf }
0x2351   :  { %5224 = vmax.xlane.f32.xlu0 %v5223_v62 }
0x235a   :  { %4598 = vrot.lane.b32.xlu1 %v12735_v45, %s11898_s14 }
0x235e   :  { %5258 = vrot.lane.b32.xlu1 %v12798_v26, %s13686_s30 }
0x2362   :  { %5334 = vrot.lane.b32.xlu1 %v12810_v36, %s13686_s30 }
0x2367   :  { %4602 = vrot.lane.b32.xlu0 %v4596_v28, %s13686_s30  ;;  %v5216_v21 = vpop.xlane.xlu0 %5215 }
0x2368   :  { %v5226_v18 = vsub.f32 %v5210_v42, %v5216_v21  ;;  %v4595_v42 = vrot.slane %v12735_v45, 7 }
0x236a   :  { %v5230_v32 = vmul.f32 1.442695, %v5226_v18 }
0x236c   :  { %11816 = vpow2.f32 %v5230_v32 }
0x2376   :  { %v11817_v33 = vpop.eup %11816 }
0x2377   :  { %v5238_v34 = vsel %vm158_vm2, %v11817_v33, 0.0 }
0x2386   :  { %5239 = vadd.xlane.f32.xlu1 %v5238_v34 }
0x23d6   :  { %v5219_v26 = vpop.xlane.xlu1 %5218 }
0x23d7   :  { %v5227_v30 = vsub.f32 %v5211_v60, %v5219_v26 }
0x23d9   :  { %v5232_v38 = vmul.f32 1.442695, %v5227_v30 }
0x23da   :  { %v4599_v35 = vpop.permute.xlu1 %4598  ;;  %v5222_v48 = vpop.xlane.xlu0 %5221 }
0x23db   :  { %11818 = vpow2.f32 %v5232_v38  ;;  %v5228_v39 = vsub.f32 %v5212_v58, %v5222_v48  ;;  %v4605_v47 = vsel %vm75_vm1, %v4595_v42, %v4599_v35  ;;  %v12973_v42 = vld [vmem:[%s13664_s1 + $0x10] sm:$0xff] }
0x23dd   :  { %v5234_v36 = vmul.f32 1.442695, %v5228_v39  ;;  %v9683_v39 = vld [vmem:[%s13660_s4 + $0x20] sm:$0xff] }
0x23de   :  { %v5259_v40 = vpop.permute.xlu1 %5258  ;;  %v5225_v41 = vpop.xlane.xlu0 %5224 }
0x23df   :  { %11820 = vpow2.f32 %v5234_v36  ;;  %v5229_v43 = vsub.f32 %v5213_v13, %v5225_v41  ;;  %v9684_v36 = vld [vmem:[%s13660_s4 + $0x28] sm:$0xff] }
0x23e0   :  { %v11660_v41 = vpack.i.bf16 %v9684_v36, %v9683_v39 }
0x23e1   :  { %v5236_v44 = vmul.f32 1.442695, %v5229_v43  ;;  %v9686_v43 = vld [vmem:[%s13660_s4 + $0x38] sm:$0xff] }
0x23e2   :  { %v5335_v49 = vpop.permute.xlu1 %5334  ;;  %v4603_v50 = vpop.permute.xlu0 %4602 }
0x23e3   :  { %11822 = vpow2.f32 %v5236_v44  ;;  %v4606_v51 = vsel %vm2128_vm11, %v4605_v47, %v4603_v50  ;;  %10718 = vmatpush3.msra.mxu1 %v5335_v49  ;;  %v11357_v47 = vpack.c.bf16 %v9684_v36, %v9683_v39 }
0x23e4   :  { %10668 = vmatmul.mubr.msk.f32.vlgmr.msra.gmra.mrb[22].mxu0 %vm2300_vm12, %v4606_v51  ;;  %10727 = vmatprep.subr.mxu1 %v11888_v4 }
0x23e5   :  { %v11819_v52 = vpop.eup %11818  ;;  %10713 = vmatpush3.msra.mxu0 %v5259_v40  ;;  %10714 = vmatprep.mubr.msk.f32.mxu0 %vm11887_vm0, %v11888_v4  ;;  %v9685_v40 = vld [vmem:[%s13660_s4 + $0x30] sm:$0xff] }
0x23e6   :  { %v5241_v45 = vsel %vm158_vm2, %v11819_v52, 0.0  ;;  %10722 = vmatprep.subr.mxu0 %v11888_v4  ;;  %v11665_v44 = vpack.i.bf16 %v9686_v43, %v9685_v40 }
0x23e7   :  { %5242 = vadd.xlane.f32.xlu0 %v5241_v45 }
0x23e9   :  { %v11821_v53 = vpop.eup %11820 }
0x23ea   :  { %v5244_v54 = vsel %vm158_vm2, %v11821_v53, 0.0 }
0x23eb   :  { %5245 = vadd.xlane.f32.xlu1 %v5244_v54  ;;  %v9680_v54 = vld [vmem:[%s13665_s7] ss:$0 sm:$0xff] }
0x23ed   :  { %v11823_v55 = vpop.eup %11822 }
0x23ee   :  { %v5247_v56 = vsel %vm158_vm2, %v11823_v55, 0.0 }
0x23ef   :  { %5248 = vadd.xlane.f32.xlu0 %v5247_v56 }
0x23fc   :  { %5486 = vrot.lane.b32.xlu1 %v12816_v37, %s13686_s30 }
0x2405   :  { %5410 = vrot.lane.b32.xlu0 %v12808_v1, %s13686_s30 }
0x2413   :  { %v5240_v57 = vpop.xlane.xlu1 %5239 }
0x2414   :  { %11824 = vrcp.f32 %v5240_v57 }
0x241e   :  { %v11825_v46 = vpop.eup %11824 }
0x241f   :  { %v5254_v60 = vmul.f32 %v11825_v46, %v11817_v33 }
0x2421   :  { %10715 = vmatmul.mubr.msk.f32.vlgmr.msra.gmra.mrb[46].mxu0 %vm158_vm2, %v5254_v60 }
0x2422   :  { %10724 = vmatprep.mubr.msk.f32.mxu0 %vm11887_vm0, %v11888_v4 }
0x2474   :  { %v5243_v8 = vpop.xlane.xlu0 %5242 }
0x2475   :  { %11826 = vrcp.f32 %v5243_v8 }
0x2478   :  { %v5246_v2 = vpop.xlane.xlu1 %5245 }
0x2479   :  { %11828 = vrcp.f32 %v5246_v2  ;;  %v12986_v2 = vld [vmem:[%s13664_s1 + $0x18] sm:$0xf] }
0x247c   :  { %v5249_v5 = vpop.xlane.xlu0 %5248  ;;  %v5487_v1 = vpop.permute.xlu1 %5486 }
0x247d   :  { %11830 = vrcp.f32 %v5249_v5 }
0x247f   :  { %v11827_v6 = vpop.eup %11826 }
0x2480   :  { %v5255_v37 = vmul.f32 %v11827_v6, %v11819_v52  ;;  %v5411_v58 = vpop.permute.xlu0 %5410 }
0x2481   :  { %10723 = vmatpush3.msra.mxu0 %v5411_v58 }
0x2482   :  { %10720 = vmatmul.mubr.msk.f32.vlgmr.msra.gmra.mrb[72].mxu1 %vm158_vm2, %v5255_v37  ;;  %11350 = vmatprep.subr.bf16.mxu0 %v11886_v0 }
0x2483   :  { %v11829_v10 = vpop.eup %11828  ;;  %10728 = vmatpush3.msra.mxu1 %v5487_v1  ;;  %10729 = vmatprep.mubr.msk.f32.mxu1 %vm11887_vm0, %v11888_v4 }
0x2484   :  { %v5256_v11 = vmul.f32 %v11829_v10, %v11821_v53  ;;  %10743 = vmatprep.subr.mxu1 %v11888_v4 }
0x2486   :  { %10725 = vmatmul.mubr.msk.f32.vlgmr.msra.gmra.mrb[48].mxu0 %vm158_vm2, %v5256_v11 }
0x2487   :  { %v11831_v12 = vpop.eup %11830  ;;  %10740 = vmatprep.mubr.msk.f32.mxu0 %vm11887_vm0, %v11888_v4  ;;  %11352 = vmatpush3.bf16.msra.mxu0 %v11351_v63 }
0x2488   :  { %v5257_v15 = vmul.f32 %v11831_v12, %v11823_v55  ;;  %11353 = vmatprep.subr.bf16.mxu0 %v11886_v0 }
0x248a   :  { %10730 = vmatmul.mubr.msk.f32.vlgmr.msra.gmra.mrb[74].mxu1 %vm158_vm2, %v5257_v15 }
0x248b   :  { %10745 = vmatprep.mubr.msk.f32.mxu1 %vm11887_vm0, %v11888_v4  ;;  %11355 = vmatpush3.bf16.msra.mxu0 %v11354_v27 }
0x24b7   :  { %v12936_v13 = vpop.f32.mrb[22].mxu0 }
0x24b8   :  { %v10669_v62 = vpop.f32.mrb[23].mxu0 }
0x24f4   :  { %v5330_v16 = vpop.f32.mrb[46].mxu0 }
0x24f5   :  { %v10716_v17 = vpop.f32.mrb[47].mxu0 }
0x2555   :  { %v5406_v3 = vpop.f32.mrb[72].mxu1 }
0x2556   :  { %5563 = vrot.lane.b32.xlu0 %v5406_v3, %s11894_s16  ;;  %v10721_v28 = vpop.f32.mrb[73].mxu1 }
0x2559   :  { %v5482_v21 = vpop.f32.mrb[48].mxu0 }
0x255a   :  { %5567 = vrot.lane.b32.xlu1 %v5482_v21, %s13687_s18  ;;  %v10726_v18 = vpop.f32.mrb[49].mxu0 }
0x255d   :  { %v5558_v32 = vpop.f32.mrb[74].mxu1 }
0x255e   :  { %5571 = vrot.lane.b32.xlu0 %v5558_v32, %s13688_s25  ;;  %v10731_v33 = vpop.f32.mrb[75].mxu1  ;;  %11661 = vrot.lane.b32.xlu1 %v11660_v41, %s11891_s22 }
0x2562   :  { %11666 = vrot.lane.b32.xlu0 %v11665_v44, %s11891_s22 }
0x25c8   :  { %v5564_v34 = vpop.permute.xlu0 %5563 }
0x25c9   :  { %v5574_v30 = vsel %vm158_vm2, %v5330_v16, %v5564_v34 }
0x25cc   :  { %v5568_v26 = vpop.permute.xlu1 %5567 }
0x25cd   :  { %v5575_v38 = vsel %vm830_vm4, %v5574_v30, %v5568_v26 }
0x25d0   :  { %v5572_v35 = vpop.permute.xlu0 %5571  ;;  %v11662_v49 = vpop.permute.xlu1 %11661 }
0x25d1   :  { %v5576_v48 = vsel %vm832_vm5, %v5575_v38, %v5572_v35  ;;  %v11664_v50 = vunpack.i.h.bf16 %v11662_v49  ;;  %v11663_v51 = vunpack.i.l.bf16 %v11662_v49 }
0x25d2   :  { %10741 = vmatmul.mubr.msk.f32.vlgmr.msra.gmra.mrb[50].mxu0 %vm75_vm1, %v5576_v48 }
0x25d3   :  { %10767 = vmatprep.mubr.msk.f32.mxu0 %vm75_vm1, %v12973_v42  ;;  %v11362_v55 = vpack.c.bf16 %v11664_v50, %v11663_v51 }
0x25d4   :  { %v11667_v52 = vpop.permute.xlu0 %11666 }
0x25d5   :  { %v11669_v45 = vunpack.i.h.bf16 %v11667_v52  ;;  %v11668_v53 = vunpack.i.l.bf16 %v11667_v52  ;;  %11363 = vmatprep.subr.bf16.mxu0 %v11362_v55 }
0x25d6   :  { %11365 = vmatpush3.bf16.msra.mxu0 %v11362_v55 }
0x25d7   :  { %v11366_v56 = vpack.c.bf16 %v11669_v45, %v11668_v53 }
0x25d9   :  { %11367 = vmatprep.subr.bf16.mxu0 %v11366_v56 }
0x25da   :  { %11369 = vmatpush3.bf16.msra.mxu0 %v11366_v56 }
0x25db   :  { %11374 = vmatprep.subr.bf16.mxu0 %v11886_v0 }
0x25dd   :  { %10768 = vmatmul.mubr.msk.f32.vlgmr.msra.gmra.mrb[52].mxu0 %vm75_vm1, %v12986_v2 }
0x25de   :  { %10781 = vmatprep.mubr.msk.f32.mxu0 %vm11887_vm0, %v11888_v4 }
0x26a5   :  { %v5652_v57 = vpop.f32.mrb[50].mxu0 }
0x26a6   :  { %v5653_v46 = vadd.f32 %v9680_v54, %v5652_v57  ;;  %v10742_v60 = vpop.f32.mrb[51].mxu0 }
0x26a8   :  { %v5656_v8 = vadd.f32 %v12786_v29, %v5653_v46  ;;  %v11360_v29 = vpack.c.bf16 %v9686_v43, %v9685_v40 }
0x26aa   :  { %10744 = vmatpush3.msra.mxu1 %v5656_v8 }
0x26ab   :  { %10746 = vmatmul.mubr.msk.f32.vlgmr.msra.gmra.mrb[76].mxu1 %vm158_vm2, %v12680_v22  ;;  %11356 = vmatprep.subr.bf16.mxu1 %v11886_v0  ;;  %v9693_v22 = vld [vmem:[%s13662_s5 + $0x1] ss:$0 sm:$0xff] }
0x26ac   :  { %11358 = vmatpush3.bf16.msra.mxu1 %v11357_v47  ;;  %10756 = vmatprep.mubr.msk.f32.mxu1 %vm11887_vm0, %v11888_v4 }
0x26ad   :  { %11359 = vmatprep.subr.bf16.mxu1 %v11886_v0  ;;  %5833 = vrot.lane.b32.xlu1 %v9693_v22, %s11891_s22 }
0x26b0   :  { %11361 = vmatpush3.bf16.msra.mxu1 %v11360_v29  ;;  %v10769_v1 = vpop.f32.mrb[52].mxu0 }
0x26b1   :  { %11370 = vmatprep.subr.bf16.mxu1 %v11886_v0  ;;  %v5908_v11 = vpop.f32.mrb[53].mxu0 }
0x271f   :  { %v5834_v6 = vpop.permute.xlu1 %5833 }
0x2720   :  { %v5914_v10 = vadd.f32 %v10769_v1, %v5834_v6  ;;  %v5909_v12 = vadd.f32 %v5908_v11, %v5834_v6 }
0x2722   :  { %v11670_v15 = vpack.i.bf16 %v5914_v10, %v5909_v12  ;;  %v11371_v62 = vpack.c.bf16 %v5914_v10, %v5909_v12 }
0x2724   :  { %11671 = vrot.lane.b32.xlu0 %v11670_v15, %s11890_s21  ;;  %11676 = vrot.lane.b32.xlu1 %v11670_v15, %s11892_s23 }
0x2728   :  { %11681 = vrot.lane.b32.xlu0 %v11670_v15, %s11889_s20 }
0x277e   :  { %v13004_v5 = vpop.f32.mrb[76].mxu1 }
0x277f   :  { %v13007_v37 = vsub.f32 %v5656_v8, %v13004_v5  ;;  %v10747_v58 = vpop.f32.mrb[77].mxu1 }
0x2781   :  { %10757 = vmatmul.mubr.msk.f32.vlgmr.msra.gmra.mrb[78].mxu1 %vm75_vm1, %v13007_v37 }
0x2782   :  { %10774 = vmatprep.mubr.msk.f32.mxu1 %vm11887_vm0, %v11888_v4  ;;  %11373 = vmatpush3.bf16.xpose.msk.msra.mxu1 %vm12171_vm6, %v11371_v62 }
0x2783   :  { %11378 = vmatprep.subr.bf16.mxu1 %v11886_v0 }
0x2796   :  { %v13019_v16 = vpop.permute.xlu0 %11671  ;;  %v13021_v17 = vpop.permute.xlu1 %11676 }
0x2797   :  { %v11674_v19 = vunpack.i.h.bf16 %v13019_v16  ;;  %v11673_v20 = vunpack.i.l.bf16 %v13019_v16  ;;  %v11679_v63 = vunpack.i.h.bf16 %v13021_v17  ;;  %v11678_v23 = vunpack.i.l.bf16 %v13021_v17 }
0x2799   :  { %v11375_v25 = vpack.c.bf16 %v11674_v19, %v11673_v20  ;;  %v11379_v33 = vpack.c.bf16 %v11679_v63, %v11678_v23 }
0x279a   :  { %v13027_v27 = vpop.permute.xlu0 %11681 }
0x279b   :  { %v11684_v3 = vunpack.i.h.bf16 %v13027_v27  ;;  %v11683_v28 = vunpack.i.l.bf16 %v13027_v27  ;;  %11377 = vmatpush3.bf16.xpose.msk.msra.mxu0 %vm12171_vm6, %v11375_v25 }
0x279c   :  { %11382 = vmatprep.subr.bf16.mxu0 %v11886_v0 }
0x279d   :  { %v11383_v34 = vpack.c.bf16 %v11684_v3, %v11683_v28 }
0x2854   :  { %v5813_v21 = vpop.f32.mrb[78].mxu1 }
0x2855   :  { %v5814_v18 = vadd.f32 %v9693_v22, %v5813_v21  ;;  %v10758_v32 = vpop.f32.mrb[79].mxu1 }
0x2857   :  { %5918 = vrot.lane.b32.xlu1 %v5814_v18, %s11890_s21  ;;  %5920 = vrot.lane.b32.xlu0 %v5814_v18, %s11892_s23 }
0x2858   :  { %10775 = vmatmul.mubr.msk.f32.vlgmr.msra.gmra.mrb[80].mxu1 %vm158_vm2, %v5814_v18 }
0x2859   :  { %11381 = vmatpush3.bf16.xpose.msk.msra.mxu1 %vm12171_vm6, %v11379_v33  ;;  %10788 = vmatprep.mubr.msk.f32.mxu1 %vm11887_vm0, %v11888_v4 }
0x285a   :  { %11386 = vmatprep.subr.bf16.mxu1 %v11886_v0 }
0x285b   :  { %5922 = vrot.lane.b32.xlu1 %v5814_v18, %s11889_s20 }
0x28c9   :  { %v5919_v26 = vpop.permute.xlu1 %5918  ;;  %v5921_v30 = vpop.permute.xlu0 %5920 }
0x28ca   :  { %10782 = vmatmul.mubr.msk.f32.vlgmr.msra.gmra.mrb[54].mxu0 %vm158_vm2, %v5919_v26  ;;  %10789 = vmatmul.mubr.msk.f32.vlgmr.msra.gmra.mrb[82].mxu1 %vm158_vm2, %v5921_v30 }
0x28cb   :  { %11385 = vmatpush3.bf16.xpose.msk.msra.mxu0 %vm12171_vm6, %v11383_v34  ;;  %10795 = vmatprep.mubr.msk.f32.mxu0 %vm11887_vm0, %v11888_v4 }
0x28cc   :  { %10802 = vmatprep.mubr.msk.f32.mxu1 %vm11887_vm0, %v11888_v4  ;;  %11390 = vmatprep.subr.bf16.mxu0 %v11886_v0 }
0x28cd   :  { %v5923_v38 = vpop.permute.xlu1 %5922 }
0x28d2   :  { %10796 = vmatmul.mubr.msk.f32.vlgmr.msra.gmra.mrb[56].mxu0 %vm158_vm2, %v5923_v38 }
0x28d3   :  { %10809 = vmatprep.mubr.msk.f32.mxu0 %vm11887_vm0, %v11888_v4 }
0x292b   :  { %v6010_v35 = vpop.f32.mrb[80].mxu1 }
0x292c   :  { %v6242_v48 = vmul.f32 0.35355338, %v6010_v35  ;;  %v10776_v39 = vpop.f32.mrb[81].mxu1 }
0x292e   :  { %v6246_v36 = vsel %vm1510_vm7, %v6242_v48, -inf }
0x292f   :  { %6247 = vmax.xlane.f32.xlu0 %v6246_v36 }
0x299d   :  { %v6086_v40 = vpop.f32.mrb[54].mxu0  ;;  %v6162_v41 = vpop.f32.mrb[82].mxu1 }
0x299e   :  { %v6243_v43 = vmul.f32 0.35355338, %v6086_v40  ;;  %v6244_v44 = vmul.f32 0.35355338, %v6162_v41  ;;  %v10783_v47 = vpop.f32.mrb[55].mxu0  ;;  %v10790_v49 = vpop.f32.mrb[83].mxu1 }
0x29a0   :  { %v6249_v50 = vsel %vm1510_vm7, %v6243_v43, -inf  ;;  %v6252_v51 = vsel %vm1510_vm7, %v6244_v44, -inf }
0x29a1   :  { %6250 = vmax.xlane.f32.xlu1 %v6249_v50  ;;  %6253 = vmax.xlane.f32.xlu0 %v6252_v51 }
0x29a5   :  { %v6238_v52 = vpop.f32.mrb[56].mxu0 }
0x29a6   :  { %v6245_v45 = vmul.f32 0.35355338, %v6238_v52  ;;  %v10797_v53 = vpop.f32.mrb[57].mxu0 }
0x29a8   :  { %v6255_v54 = vsel %vm1510_vm7, %v6245_v45, -inf }
0x29a9   :  { %6256 = vmax.xlane.f32.xlu0 %v6255_v54 }
0x29b2   :  { %11686 = vrot.lane.b32.xlu1 %v11670_v15, %s11891_s22 }
0x29bc   :  { %v6248_v55 = vpop.xlane.xlu0 %6247 }
0x29bd   :  { %v6258_v56 = vsub.f32 %v6242_v48, %v6248_v55  ;;  %v9688_v55 = vld [vmem:[%s13663_s6 + $0x20] sm:$0xff] }
0x29bf   :  { %v6262_v57 = vmul.f32 1.442695, %v6258_v56  ;;  %v9689_v56 = vld [vmem:[%s13663_s6 + $0x28] sm:$0xff] }
0x29c1   :  { %11832 = vpow2.f32 %v6262_v57  ;;  %v11403_v57 = vpack.c.bf16 %v9689_v56, %v9688_v55 }
0x29cb   :  { %v11833_v46 = vpop.eup %11832 }
0x29cc   :  { %v6270_v60 = vsel %vm1510_vm7, %v11833_v46, 0.0 }
0x29d6   :  { %6271 = vadd.xlane.f32.xlu1 %v6270_v60  ;;  %v9691_v60 = vld [vmem:[%s13663_s6 + $0x38] sm:$0xff] }
0x2a2e   :  { %v6251_v8 = vpop.xlane.xlu1 %6250  ;;  %v6254_v29 = vpop.xlane.xlu0 %6253 }
0x2a2f   :  { %v6259_v22 = vsub.f32 %v6243_v43, %v6251_v8  ;;  %v6260_v6 = vsub.f32 %v6244_v44, %v6254_v29 }
0x2a31   :  { %v6264_v58 = vmul.f32 1.442695, %v6259_v22  ;;  %v6266_v1 = vmul.f32 1.442695, %v6260_v6 }
0x2a32   :  { %v11687_v10 = vpop.permute.xlu1 %11686 }
0x2a33   :  { %11834 = vpow2.f32 %v6264_v58  ;;  %v11689_v11 = vunpack.i.h.bf16 %v11687_v10  ;;  %v11688_v12 = vunpack.i.l.bf16 %v11687_v10 }
0x2a34   :  { %11836 = vpow2.f32 %v6266_v1 }
0x2a35   :  { %v11387_v15 = vpack.c.bf16 %v11689_v11, %v11688_v12 }
0x2a36   :  { %v6257_v62 = vpop.xlane.xlu0 %6256 }
0x2a37   :  { %v6261_v19 = vsub.f32 %v6245_v45, %v6257_v62  ;;  %11389 = vmatpush3.bf16.msk.msra.mxu1 %vm12224_vm10, %v11387_v15 }
0x2a38   :  { %11394 = vmatprep.subr.bf16.mxu1 %v11886_v0 }
0x2a39   :  { %v6268_v20 = vmul.f32 1.442695, %v6261_v19 }
0x2a3b   :  { %11838 = vpow2.f32 %v6268_v20 }
0x2a3d   :  { %v11835_v63 = vpop.eup %11834 }
0x2a3e   :  { %v11837_v23 = vpop.eup %11836  ;;  %v6273_v25 = vsel %vm1510_vm7, %v11835_v63, 0.0 }
0x2a3f   :  { %6274 = vadd.xlane.f32.xlu0 %v6273_v25  ;;  %v6276_v3 = vsel %vm1510_vm7, %v11837_v23, 0.0  ;;  %v6776_v25 = vld [vmem:[%s13667_s8] sm:$0xff] }
0x2a40   :  { %6277 = vadd.xlane.f32.xlu1 %v6276_v3  ;;  %v6777_v3 = vld [vmem:[%s13667_s8 + $0x8] sm:$0xff] }
0x2a45   :  { %v11839_v28 = vpop.eup %11838 }
0x2a46   :  { %v6279_v21 = vsel %vm1510_vm7, %v11839_v28, 0.0 }
0x2a47   :  { %6280 = vadd.xlane.f32.xlu0 %v6279_v21 }
0x2a51   :  { %11696 = vrot.lane.b32.xlu1 %v13021_v17, %s11891_s22 }
0x2a55   :  { %11701 = vrot.lane.b32.xlu1 %v13027_v27, %s11891_s22 }
0x2a5d   :  { %11691 = vrot.lane.b32.xlu0 %v13019_v16, %s11891_s22 }
0x2a63   :  { %v6272_v18 = vpop.xlane.xlu1 %6271 }
0x2a64   :  { %11840 = vrcp.f32 %v6272_v18 }
0x2a6e   :  { %v11841_v32 = vpop.eup %11840 }
0x2a6f   :  { %v6286_v33 = vmul.f32 %v11841_v32, %v11833_v46  ;;  %v9690_v46 = vld [vmem:[%s13663_s6 + $0x30] sm:$0xff]  ;;  %v11409_v32 = vpack.c.bf16 %v6777_v3, %v6776_v25  ;;  %v7013_v25 = vld [vmem:[%s13669_s10 + $0x20] sm:$0xff]  ;;  %v7014_v3 = vld [vmem:[%s13669_s10 + $0x28] sm:$0xff] }
0x2a70   :  { %v11406_v8 = vpack.c.bf16 %v9691_v60, %v9690_v46  ;;  %v9726_v46 = vld [vmem:[%s13660_s4 + $0x50] sm:$0xff]  ;;  %v9727_v60 = vld [vmem:[%s13660_s4 + $0x58] sm:$0xff] }
0x2a71   :  { %10803 = vmatmul.mubr.msk.f32.vlgmr.msra.gmra.mrb[84].mxu1 %vm1510_vm7, %v6286_v33  ;;  %v13130_v33 = vld [vmem:[%s13666_s3] sm:$0xff] }
0x2a72   :  { %10816 = vmatprep.mubr.msk.f32.mxu1 %vm11887_vm0, %v11888_v4 }
0x2acc   :  { %v6275_v26 = vpop.xlane.xlu0 %6274 }
0x2acd   :  { %v6278_v34 = vpop.xlane.xlu1 %6277 }
0x2ace   :  { %11842 = vrcp.f32 %v6278_v34  ;;  %v6779_v34 = vld [vmem:[%s13667_s8 + $0x18] sm:$0xff] }
0x2acf   :  { %11844 = vrcp.f32 %v6275_v26 }
0x2ad1   :  { %v11697_v17 = vpop.permute.xlu1 %11696 }
0x2ad2   :  { %v11699_v30 = vunpack.i.h.bf16 %v11697_v17  ;;  %v11698_v38 = vunpack.i.l.bf16 %v11697_v17  ;;  %v6854_v17 = vld [vmem:[%s13668_s9] sm:$0xff] }
0x2ad4   :  { %v11395_v27 = vpack.c.bf16 %v11699_v30, %v11698_v38  ;;  %v6281_v35 = vpop.xlane.xlu0 %6280  ;;  %v6855_v30 = vld [vmem:[%s13668_s9 + $0x8] sm:$0xff]  ;;  %v6856_v38 = vld [vmem:[%s13668_s9 + $0x10] sm:$0xff] }
0x2ad5   :  { %11846 = vrcp.f32 %v6281_v35  ;;  %v11702_v48 = vpop.permute.xlu1 %11701  ;;  %v6857_v35 = vld [vmem:[%s13668_s9 + $0x18] sm:$0xff] }
0x2ad6   :  { %11397 = vmatpush3.bf16.msk.msra.mxu1 %vm12224_vm10, %v11395_v27  ;;  %v11704_v44 = vunpack.i.h.bf16 %v11702_v48  ;;  %v11703_v47 = vunpack.i.l.bf16 %v11702_v48  ;;  %v11415_v27 = vpack.c.bf16 %v6855_v30, %v6854_v17  ;;  %v6858_v48 = vld [vmem:[%s13668_s9 + $0x20] sm:$0xff]  ;;  %v7019_v17 = vld [vmem:[%s13669_s10 + $0x50] sm:$0xff]  ;;  %v7020_v30 = vld [vmem:[%s13669_s10 + $0x58] sm:$0xff] }
0x2ad7   :  { %11402 = vmatprep.subr.bf16.mxu1 %v11886_v0 }
0x2ad8   :  { %v11843_v16 = vpop.eup %11842  ;;  %v11692_v39 = vpop.permute.xlu0 %11691  ;;  %v11399_v52 = vpack.c.bf16 %v11704_v44, %v11703_v47  ;;  %v6860_v47 = vld [vmem:[%s13668_s9 + $0x30] sm:$0xff] }
0x2ad9   :  { %v6288_v36 = vmul.f32 %v11843_v16, %v11837_v23  ;;  %v11694_v40 = vunpack.i.h.bf16 %v11692_v39  ;;  %v11693_v41 = vunpack.i.l.bf16 %v11692_v39  ;;  %v11845_v43 = vpop.eup %11844  ;;  %v11418_v16 = vpack.c.bf16 %v6857_v35, %v6856_v38  ;;  %v6859_v39 = vld [vmem:[%s13668_s9 + $0x28] sm:$0xff] }
0x2ada   :  { %v6287_v50 = vmul.f32 %v11845_v43, %v11835_v63  ;;  %v9717_v63 = vld [vmem:[%s13665_s7 + $0x1] ss:$0 sm:$0xff]  ;;  %v11442_v38 = vpack.c.bf16 %v7020_v30, %v7019_v17 }
0x2adb   :  { %v11391_v49 = vpack.c.bf16 %v11694_v40, %v11693_v41  ;;  %10817 = vmatmul.mubr.msk.f32.vlgmr.msra.gmra.mrb[86].mxu1 %vm1510_vm7, %v6288_v36  ;;  %v11421_v36 = vpack.c.bf16 %v6859_v39, %v6858_v48 }
0x2adc   :  { %10834 = vmatprep.mubr.msk.f32.mxu1 %vm11887_vm0, %v11888_v4  ;;  %11404 = vmatpush3.bf16.msra.mxu1 %v11403_v57 }
0x2add   :  { %11393 = vmatpush3.bf16.msk.msra.mxu0 %vm12224_vm10, %v11391_v49  ;;  %11405 = vmatprep.subr.bf16.mxu1 %v11886_v0  ;;  %v6861_v49 = vld [vmem:[%s13668_s9 + $0x38] sm:$0xff] }
0x2ade   :  { %11398 = vmatprep.subr.bf16.mxu0 %v11886_v0 }
0x2adf   :  { %v11847_v51 = vpop.eup %11846 }
0x2ae0   :  { %10810 = vmatmul.mubr.msk.f32.vlgmr.msra.gmra.mrb[58].mxu0 %vm1510_vm7, %v6287_v50  ;;  %v6289_v45 = vmul.f32 %v11847_v51, %v11839_v28  ;;  %11407 = vmatpush3.bf16.msra.mxu1 %v11406_v8  ;;  %v11424_v50 = vpack.c.bf16 %v6861_v49, %v6860_v47  ;;  %v11448_v8 = vpack.c.bf16 %v9727_v60, %v9726_v46 }
0x2ae1   :  { %11401 = vmatpush3.bf16.msk.msra.mxu0 %vm12224_vm10, %v11399_v52  ;;  %10823 = vmatprep.mubr.msk.f32.mxu0 %vm11887_vm0, %v11888_v4 }
0x2ae2   :  { %10837 = vmatprep.subr.mxu0 %v11888_v4  ;;  %11414 = vmatprep.subr.bf16.mxu1 %v11886_v0 }
0x2ae4   :  { %10824 = vmatmul.mubr.msk.f32.vlgmr.msra.gmra.mrb[60].mxu0 %vm1510_vm7, %v6289_v45  ;;  %v9724_v45 = vld [vmem:[%s13660_s4 + $0x40] sm:$0xff] }
0x2ae5   :  { %10839 = vmatprep.mubr.msk.f32.mxu0 %vm11887_vm0, %v11888_v4 }
0x2b44   :  { %v6366_v53 = vpop.f32.mrb[84].mxu1 }
0x2b45   :  { %v10804_v54 = vpop.f32.mrb[85].mxu1 }
0x2bae   :  { %v6526_v29 = vpop.f32.mrb[86].mxu1 }
0x2baf   :  { %6615 = vrot.lane.b32.xlu1 %v6526_v29, %s13687_s18  ;;  %v10818_v22 = vpop.f32.mrb[87].mxu1 }
0x2bb3   :  { %v6446_v6 = vpop.f32.mrb[58].mxu0 }
0x2bb4   :  { %6611 = vrot.lane.b32.xlu0 %v6446_v6, %s11894_s16  ;;  %v10811_v58 = vpop.f32.mrb[59].mxu0 }
0x2bb7   :  { %v6606_v1 = vpop.f32.mrb[60].mxu0 }
0x2bb8   :  { %6619 = vrot.lane.b32.xlu0 %v6606_v1, %s13688_s25  ;;  %v10825_v10 = vpop.f32.mrb[61].mxu0  ;;  %v9734_v1 = vld [vmem:[%s13662_s5 + $0x2] ss:$0 sm:$0xff] }
0x2bb9   :  { %v7009_v10 = vld [vmem:[%s13669_s10] sm:$0xff] }
0x2c21   :  { %v6616_v15 = vpop.permute.xlu1 %6615 }
0x2c26   :  { %v6612_v11 = vpop.permute.xlu0 %6611 }
0x2c27   :  { %v6622_v12 = vsel %vm158_vm2, %v6366_v53, %v6612_v11  ;;  %v9725_v53 = vld [vmem:[%s13660_s4 + $0x48] sm:$0xff] }
0x2c28   :  { %v6623_v19 = vsel %vm830_vm4, %v6622_v12, %v6616_v15  ;;  %v11445_v54 = vpack.c.bf16 %v9725_v53, %v9724_v45  ;;  %v7010_v11 = vld [vmem:[%s13669_s10 + $0x8] sm:$0xff]  ;;  %v7011_v12 = vld [vmem:[%s13669_s10 + $0x10] sm:$0xff] }
0x2c29   :  { %v11427_v15 = vpack.c.bf16 %v7010_v11, %v7009_v10 }
0x2c2a   :  { %v6620_v62 = vpop.permute.xlu0 %6619 }
0x2c2b   :  { %v6624_v20 = vsel %vm832_vm5, %v6623_v19, %v6620_v62  ;;  %v7012_v62 = vld [vmem:[%s13669_s10 + $0x18] sm:$0xff] }
0x2c2c   :  { %10835 = vmatmul.mubr.msk.f32.vlgmr.msra.gmra.mrb[88].mxu1 %vm75_vm1, %v6624_v20 }
0x2c2d   :  { %10869 = vmatprep.mubr.msk.f32.mxu1 %vm11887_vm0, %v11888_v4  ;;  %11416 = vmatpush3.bf16.msra.mxu1 %v11415_v27 }
0x2c2e   :  { %11417 = vmatprep.subr.bf16.mxu1 %v11886_v0 }
0x2c31   :  { %11419 = vmatpush3.bf16.msra.mxu1 %v11418_v16 }
0x2c32   :  { %11420 = vmatprep.subr.bf16.mxu1 %v11886_v0 }
0x2c35   :  { %11422 = vmatpush3.bf16.msra.mxu1 %v11421_v36 }
0x2c36   :  { %11423 = vmatprep.subr.bf16.mxu1 %v11886_v0 }
0x2c39   :  { %11425 = vmatpush3.bf16.msra.mxu1 %v11424_v50 }
0x2c3a   :  { %11444 = vmatprep.subr.bf16.mxu1 %v11886_v0 }
0x2cff   :  { %v6700_v23 = vpop.f32.mrb[88].mxu1 }
0x2d00   :  { %v6701_v28 = vadd.f32 %v9717_v63, %v6700_v23  ;;  %v10836_v21 = vpop.f32.mrb[89].mxu1  ;;  %v11430_v23 = vpack.c.bf16 %v7012_v62, %v7011_v12 }
0x2d01   :  { %v7015_v21 = vld [vmem:[%s13669_s10 + $0x30] sm:$0xff] }
0x2d02   :  { %v6704_v18 = vadd.f32 %v6701_v28, %v13007_v37  ;;  %v6778_v37 = vld [vmem:[%s13667_s8 + $0x10] sm:$0xff]  ;;  %v11433_v28 = vpack.c.bf16 %v7014_v3, %v7013_v25 }
0x2d03   :  { %v11412_v26 = vpack.c.bf16 %v6779_v34, %v6778_v37  ;;  %v7017_v37 = vld [vmem:[%s13669_s10 + $0x40] sm:$0xff]  ;;  %v7018_v34 = vld [vmem:[%s13669_s10 + $0x48] sm:$0xff] }
0x2d04   :  { %10838 = vmatpush3.msra.mxu0 %v6704_v18 }
0x2d05   :  { %10840 = vmatmul.mubr.msk.f32.vlgmr.msra.gmra.mrb[62].mxu0 %vm158_vm2, %v13130_v33  ;;  %11408 = vmatprep.subr.bf16.mxu0 %v11886_v0 }
0x2d06   :  { %11410 = vmatpush3.bf16.msra.mxu0 %v11409_v32  ;;  %10850 = vmatprep.mubr.msk.f32.mxu0 %vm11887_vm0, %v11888_v4 }
0x2d07   :  { %11411 = vmatprep.subr.bf16.mxu0 %v11886_v0 }
0x2d0a   :  { %11413 = vmatpush3.bf16.msra.mxu0 %v11412_v26  ;;  %v11439_v26 = vpack.c.bf16 %v7018_v34, %v7017_v37 }
0x2d0b   :  { %10872 = vmatprep.subr.mxu0 %v11888_v4 }
0x2dd8   :  { %v6771_v40 = vpop.f32.mrb[62].mxu0 }
0x2dd9   :  { %v6775_v41 = vsub.f32 %v6704_v18, %v6771_v40  ;;  %v7007_v43 = vadd.f32 %v6771_v40, %v13004_v5  ;;  %v10841_v44 = vpop.f32.mrb[63].mxu0  ;;  %v7016_v18 = vld [vmem:[%s13669_s10 + $0x38] sm:$0xff] }
0x2dda   :  { %v11436_v32 = vpack.c.bf16 %v7016_v18, %v7015_v21 }
0x2ddb   :  { %10851 = vmatmul.mubr.msk.f32.vlgmr.msra.gmra.mrb[64].mxu0 %vm75_vm1, %v6775_v41 }
0x2ddc   :  { %10874 = vmatprep.mubr.msk.f32.mxu0 %vm11887_vm0, %v11888_v4 }
0x2eae   :  { %v6849_v51 = vpop.f32.mrb[64].mxu0 }
0x2eaf   :  { %v6853_v5 = vmax.f32 %v6849_v51, 0.0  ;;  %v10852_v52 = vpop.f32.mrb[65].mxu0 }
0x2eb1   :  { %10870 = vmatmul.mubr.msk.f32.vlgmr.msra.gmra.mrb[90].mxu1 %vm2128_vm11, %v6853_v5 }
0x2eb2   :  { %10912 = vmatprep.mubr.msk.f32.mxu1 %vm11887_vm0, %v11888_v4  ;;  %11446 = vmatpush3.bf16.msra.mxu1 %v11445_v54 }
0x2eb3   :  { %11447 = vmatprep.subr.bf16.mxu1 %v11886_v0 }
0x2eb6   :  { %11449 = vmatpush3.bf16.msra.mxu1 %v11448_v8 }
0x2eb7   :  { %10915 = vmatprep.subr.mxu1 %v11888_v4 }
0x2f84   :  { %v6931_v55 = vpop.f32.mrb[90].mxu1 }
0x2f85   :  { %v6935_v56 = vadd.f32 %v6931_v55, %v6775_v41  ;;  %v10871_v57 = vpop.f32.mrb[91].mxu1 }
0x2f87   :  { %10873 = vmatpush3.msra.mxu0 %v6935_v56 }
0x2f88   :  { %10875 = vmatmul.mubr.msk.f32.vlgmr.msra.gmra.mrb[66].mxu0 %vm158_vm2, %v13130_v33  ;;  %11426 = vmatprep.subr.bf16.mxu0 %v11886_v0 }
0x2f89   :  { %10901 = vmatprep.mubr.msk.f32.mxu0 %vm11887_vm0, %v11888_v4  ;;  %11428 = vmatpush3.bf16.msra.mxu0 %v11427_v15 }
0x2f8a   :  { %11429 = vmatprep.subr.bf16.mxu0 %v11886_v0 }
0x2f8d   :  { %11431 = vmatpush3.bf16.msra.mxu0 %v11430_v23 }
0x2f8e   :  { %11432 = vmatprep.subr.bf16.mxu0 %v11886_v0 }
0x2f91   :  { %11434 = vmatpush3.bf16.msra.mxu0 %v11433_v28 }
0x2f92   :  { %11435 = vmatprep.subr.bf16.mxu0 %v11886_v0 }
0x2f95   :  { %11437 = vmatpush3.bf16.msra.mxu0 %v11436_v32 }
0x2f96   :  { %11438 = vmatprep.subr.bf16.mxu0 %v11886_v0 }
0x2f99   :  { %11440 = vmatpush3.bf16.msra.mxu0 %v11439_v26 }
0x2f9a   :  { %11441 = vmatprep.subr.bf16.mxu0 %v11886_v0 }
0x2f9d   :  { %11443 = vmatpush3.bf16.msra.mxu0 %v11442_v38 }
0x2f9e   :  { %10930 = vmatprep.subr.mxu0 %v11888_v4 }
0x305b   :  { %v7002_v29 = vpop.f32.mrb[66].mxu0 }
0x305c   :  { %v13199_v22 = vsub.f32 %v6935_v56, %v7002_v29  ;;  %v13201_v6 = vadd.f32 %v7007_v43, %v7002_v29  ;;  %v10876_v58 = vpop.f32.mrb[67].mxu0 }
0x305e   :  { %10913 = vmatmul.mubr.msk.f32.vlgmr.msra.gmra.mrb[92].mxu1 %vm75_vm1, %v13199_v22  ;;  %v7022_v16 = vrot.slane %v13201_v6, 1  ;;  %v7021_v41 = vrot.slane %v13201_v6, 7 }
0x305f   :  { %10917 = vmatprep.mubr.msk.f32.mxu1 %vm11887_vm0, %v11888_v4 }
0x3131   :  { %v7192_v19 = vpop.f32.mrb[92].mxu1 }
0x3132   :  { %v13222_v20 = vadd.f32 %v9734_v1, %v7192_v19  ;;  %v10914_v63 = vpop.f32.mrb[93].mxu1 }
0x3134   :  { %7199 = vrot.lane.b32.xlu0 %v13222_v20, %s11892_s23  ;;  %7197 = vrot.lane.b32.xlu1 %v13222_v20, %s11890_s21 }
0x3138   :  { %7203 = vrot.lane.b32.xlu0 %v13222_v20, %s11891_s22  ;;  %7201 = vrot.lane.b32.xlu1 %v13222_v20, %s11889_s20 }
0x313c   :  { %7024 = vrot.lane.b32.xlu0 %v13201_v6, %s11898_s14 }
0x31a6   :  { %v13264_v27 = vpop.permute.xlu0 %7199  ;;  %v13266_v35 = vpop.permute.xlu1 %7197 }
0x31a7   :  { %7355 = vrot.lane.b32.xlu0 %v13264_v27, %s11891_s22  ;;  %7279 = vrot.lane.b32.xlu1 %v13266_v35, %s11891_s22 }
0x31aa   :  { %v7204_v48 = vpop.permute.xlu0 %7203  ;;  %v13276_v39 = vpop.permute.xlu1 %7201 }
0x31ab   :  { %10916 = vmatpush3.xpose.msk.msra.mxu1 %vm158_vm2, %v7204_v48  ;;  %7028 = vrot.lane.b32.xlu1 %v7022_v16, %s13686_s30 }
0x31ac   :  { %10920 = vmatprep.subr.mxu1 %v11888_v4 }
0x31ae   :  { %10918 = vmatmul.mubr.msk.f32.vlgmr.msra.gmra.mrb[94].mxu1 %vm158_vm2, %v13222_v20  ;;  %v7025_v36 = vpop.permute.xlu0 %7024 }
0x31af   :  { %7431 = vrot.lane.b32.xlu1 %v13276_v39, %s11891_s22  ;;  %10922 = vmatprep.mubr.msk.f32.mxu1 %vm11887_vm0, %v11888_v4  ;;  %v7031_v43 = vsel %vm75_vm1, %v7021_v41, %v7025_v36 }
0x3219   :  { %v7280_v40 = vpop.permute.xlu1 %7279  ;;  %v7356_v44 = vpop.permute.xlu0 %7355 }
0x321a   :  { %10921 = vmatpush3.xpose.msk.msra.mxu1 %vm158_vm2, %v7280_v40 }
0x321b   :  { %10925 = vmatprep.subr.mxu1 %v11888_v4 }
0x321d   :  { %10923 = vmatmul.mubr.msk.f32.vlgmr.msra.gmra.mrb[96].mxu1 %vm158_vm2, %v13266_v35  ;;  %v7029_v47 = vpop.permute.xlu1 %7028 }
0x321e   :  { %v7032_v49 = vsel %vm2128_vm11, %v7031_v43, %v7029_v47  ;;  %10926 = vmatpush3.xpose.msk.msra.mxu1 %vm158_vm2, %v7356_v44  ;;  %10927 = vmatprep.mubr.msk.f32.mxu1 %vm11887_vm0, %v11888_v4 }
0x321f   :  { %10902 = vmatmul.mubr.msk.f32.vlgmr.msra.gmra.mrb[68].mxu0 %vm2300_vm12, %v7032_v49  ;;  %10935 = vmatprep.subr.mxu1 %v11888_v4 }
0x3220   :  { %10932 = vmatprep.mubr.msk.f32.mxu0 %vm11887_vm0, %v11888_v4 }
0x3221   :  { %10928 = vmatmul.mubr.msk.f32.vlgmr.msra.gmra.mrb[98].mxu1 %vm158_vm2, %v13264_v27  ;;  %v7432_v50 = vpop.permute.xlu1 %7431 }
0x3222   :  { %10931 = vmatpush3.xpose.msk.msra.mxu0 %vm158_vm2, %v7432_v50  ;;  %10937 = vmatprep.mubr.msk.f32.mxu1 %vm11887_vm0, %v11888_v4 }
0x3223   :  { %10940 = vmatprep.subr.mxu0 %v11888_v4 }
0x3225   :  { %10933 = vmatmul.mubr.msk.f32.vlgmr.msra.gmra.mrb[70].mxu0 %vm158_vm2, %v13276_v39 }
0x3226   :  { %10942 = vmatprep.mubr.msk.f32.mxu0 %vm11887_vm0, %v11888_v4 }
0x3281   :  { %v7275_v51 = vpop.f32.mrb[94].mxu1 }
0x3282   :  { %v7507_v5 = vmul.f32 0.35355338, %v7275_v51  ;;  %v10919_v52 = vpop.f32.mrb[95].mxu1 }
0x3284   :  { %v7511_v45 = vsel %vm12044_vm3, %v7507_v5, -inf }
0x3285   :  { %v7515_v53 = vsel %vm158_vm2, %v7511_v45, -inf }
0x3286   :  { %7516 = vmax.xlane.f32.xlu0 %v7515_v53 }
0x32f0   :  { %v7351_v54 = vpop.f32.mrb[96].mxu1 }
0x32f1   :  { %v7508_v55 = vmul.f32 0.35355338, %v7351_v54  ;;  %v10924_v56 = vpop.f32.mrb[97].mxu1 }
0x32f2   :  { %v9729_v56 = vld [vmem:[%s13663_s6 + $0x40] sm:$0xff] }
0x32f3   :  { %v7512_v57 = vsel %vm12044_vm3, %v7508_v55, -inf }
0x32f4   :  { %v7427_v46 = vpop.f32.mrb[98].mxu1  ;;  %v7518_v60 = vsel %vm158_vm2, %v7512_v57, -inf }
0x32f5   :  { %v7509_v8 = vmul.f32 0.35355338, %v7427_v46  ;;  %7519 = vmax.xlane.f32.xlu1 %v7518_v60  ;;  %v10929_v29 = vpop.f32.mrb[99].mxu1  ;;  %v9731_v60 = vld [vmem:[%s13663_s6 + $0x50] sm:$0xff] }
0x32f7   :  { %v7513_v6 = vsel %vm12044_vm3, %v7509_v8, -inf  ;;  %v9732_v8 = vld [vmem:[%s13663_s6 + $0x58] sm:$0xff] }
0x32f8   :  { %v7503_v58 = vpop.f32.mrb[70].mxu0  ;;  %v7521_v1 = vsel %vm158_vm2, %v7513_v6, -inf  ;;  %v11454_v29 = vpack.c.bf16 %v9732_v8, %v9731_v60 }
0x32f9   :  { %v7510_v10 = vmul.f32 0.35355338, %v7503_v58  ;;  %v10934_v11 = vpop.f32.mrb[71].mxu0  ;;  %7522 = vmax.xlane.f32.xlu0 %v7521_v1 }
0x32fb   :  { %v7514_v12 = vsel %vm12044_vm3, %v7510_v10, -inf }
0x32fc   :  { %v7524_v15 = vsel %vm158_vm2, %v7514_v12, -inf }
0x32fd   :  { %7525 = vmax.xlane.f32.xlu0 %v7524_v15 }
0x3306   :  { %7559 = vrot.lane.b32.xlu1 %v13222_v20, %s13686_s30 }
0x3313   :  { %v7517_v62 = vpop.xlane.xlu0 %7516 }
0x3314   :  { %v7527_v19 = vsub.f32 %v7511_v45, %v7517_v62 }
0x3316   :  { %v7531_v63 = vmul.f32 1.442695, %v7527_v19 }
0x3318   :  { %11848 = vpow2.f32 %v7531_v63 }
0x3322   :  { %v11849_v23 = vpop.eup %11848 }
0x3323   :  { %v7539_v25 = vsel %vm158_vm2, %v11849_v23, 0.0 }
0x332a   :  { %7540 = vadd.xlane.f32.xlu1 %v7539_v25 }
0x333b   :  { %7711 = vrot.lane.b32.xlu1 %v13264_v27, %s13686_s30 }
0x3382   :  { %v7520_v3 = vpop.xlane.xlu1 %7519 }
0x3383   :  { %v7528_v24 = vsub.f32 %v7512_v57, %v7520_v3  ;;  %v9730_v57 = vld [vmem:[%s13663_s6 + $0x48] sm:$0xff]  ;;  %v9751_v3 = vld [vmem:[%s13660_s4 + $0x60] sm:$0xff] }
0x3384   :  { %v11451_v46 = vpack.c.bf16 %v9730_v57, %v9729_v56 }
0x3385   :  { %v7533_v28 = vmul.f32 1.442695, %v7528_v24  ;;  %v9752_v24 = vld [vmem:[%s13660_s4 + $0x68] sm:$0xff] }
0x3386   :  { %v7560_v21 = vpop.permute.xlu1 %7559  ;;  %v7523_v18 = vpop.xlane.xlu0 %7522 }
0x3387   :  { %11850 = vpow2.f32 %v7533_v28  ;;  %v7529_v32 = vsub.f32 %v7513_v6, %v7523_v18  ;;  %10936 = vmatpush3.msra.mxu1 %v7560_v21  ;;  %v9753_v28 = vld [vmem:[%s13660_s4 + $0x70] sm:$0xff]  ;;  %v11705_v21 = vpack.i.bf16 %v9752_v24, %v9751_v3  ;;  %v9754_v18 = vld [vmem:[%s13660_s4 + $0x78] sm:$0xff] }
0x3388   :  { %10945 = vmatprep.subr.mxu1 %v11888_v4 }
0x3389   :  { %v7535_v20 = vmul.f32 1.442695, %v7529_v32  ;;  %v11710_v32 = vpack.i.bf16 %v9754_v18, %v9753_v28 }
0x338a   :  { %v7526_v37 = vpop.xlane.xlu0 %7525 }
0x338b   :  { %11852 = vpow2.f32 %v7535_v20  ;;  %v7530_v34 = vsub.f32 %v7514_v12, %v7526_v37  ;;  %v11457_v20 = vpack.c.bf16 %v9752_v24, %v9751_v3 }
0x338d   :  { %v7537_v26 = vmul.f32 1.442695, %v7530_v34 }
0x338f   :  { %11854 = vpow2.f32 %v7537_v26 }
0x3391   :  { %v11851_v17 = vpop.eup %11850 }
0x3392   :  { %v7542_v30 = vsel %vm158_vm2, %v11851_v17, 0.0 }
0x3393   :  { %7543 = vadd.xlane.f32.xlu0 %v7542_v30 }
0x3395   :  { %v11853_v38 = vpop.eup %11852 }
0x3396   :  { %v7545_v27 = vsel %vm158_vm2, %v11853_v38, 0.0 }
0x3397   :  { %7546 = vadd.xlane.f32.xlu1 %v7545_v27 }
0x3399   :  { %v11855_v16 = vpop.eup %11854 }
0x339a   :  { %v7548_v48 = vsel %vm158_vm2, %v11855_v16, 0.0 }
0x339b   :  { %7549 = vadd.xlane.f32.xlu0 %v7548_v48 }
0x33a8   :  { %7787 = vrot.lane.b32.xlu1 %v13276_v39, %s13686_s30 }
0x33b1   :  { %7635 = vrot.lane.b32.xlu0 %v13266_v35, %s13686_s30 }
0x33b7   :  { %v7541_v36 = vpop.xlane.xlu1 %7540 }
0x33b8   :  { %11856 = vrcp.f32 %v7541_v36 }
0x33bb   :  { %v7712_v43 = vpop.permute.xlu1 %7711 }
0x33c2   :  { %v11857_v40 = vpop.eup %11856 }
0x33c3   :  { %v7555_v41 = vmul.f32 %v11857_v40, %v11849_v23 }
0x33c5   :  { %10938 = vmatmul.mubr.msk.f32.vlgmr.msra.gmra.mrb[100].mxu1 %vm158_vm2, %v7555_v41 }
0x33c6   :  { %10946 = vmatpush3.msra.mxu1 %v7712_v43  ;;  %10947 = vmatprep.mubr.msk.f32.mxu1 %vm11887_vm0, %v11888_v4  ;;  %v9761_v43 = vld [vmem:[%s13662_s5 + $0x3] ss:$0 sm:$0xff] }
0x33c7   :  { %11450 = vmatprep.subr.bf16.mxu1 %v11886_v0 }
0x3420   :  { %v7544_v44 = vpop.xlane.xlu0 %7543 }
0x3421   :  { %11858 = vrcp.f32 %v7544_v44 }
0x3424   :  { %v7547_v47 = vpop.xlane.xlu1 %7546 }
0x3425   :  { %11860 = vrcp.f32 %v7547_v47 }
0x3428   :  { %v7550_v39 = vpop.xlane.xlu0 %7549  ;;  %v7788_v51 = vpop.permute.xlu1 %7787 }
0x3429   :  { %11862 = vrcp.f32 %v7550_v39 }
0x342b   :  { %v11859_v35 = vpop.eup %11858 }
0x342c   :  { %v7556_v49 = vmul.f32 %v11859_v35, %v11851_v17  ;;  %v7636_v50 = vpop.permute.xlu0 %7635 }
0x342d   :  { %10941 = vmatpush3.msra.mxu0 %v7636_v50 }
0x342e   :  { %10943 = vmatmul.mubr.msk.f32.vlgmr.msra.gmra.mrb[72].mxu0 %vm158_vm2, %v7556_v49  ;;  %10950 = vmatprep.subr.mxu0 %v11888_v4 }
0x342f   :  { %v11861_v5 = vpop.eup %11860  ;;  %10951 = vmatpush3.msra.mxu0 %v7788_v51  ;;  %10952 = vmatprep.mubr.msk.f32.mxu0 %vm11887_vm0, %v11888_v4 }
0x3430   :  { %v7557_v52 = vmul.f32 %v11861_v5, %v11853_v38  ;;  %10966 = vmatprep.subr.mxu0 %v11888_v4  ;;  %v9748_v38 = vld [vmem:[%s13665_s7 + $0x2] ss:$0 sm:$0xff] }
0x3432   :  { %10948 = vmatmul.mubr.msk.f32.vlgmr.msra.gmra.mrb[102].mxu1 %vm158_vm2, %v7557_v52 }
0x3433   :  { %v11863_v45 = vpop.eup %11862  ;;  %10963 = vmatprep.mubr.msk.f32.mxu1 %vm11887_vm0, %v11888_v4  ;;  %11452 = vmatpush3.bf16.msra.mxu1 %v11451_v46 }
0x3434   :  { %v7558_v53 = vmul.f32 %v11863_v45, %v11855_v16  ;;  %11453 = vmatprep.subr.bf16.mxu1 %v11886_v0 }
0x3436   :  { %10953 = vmatmul.mubr.msk.f32.vlgmr.msra.gmra.mrb[74].mxu0 %vm158_vm2, %v7558_v53 }
0x3437   :  { %10968 = vmatprep.mubr.msk.f32.mxu0 %vm11887_vm0, %v11888_v4  ;;  %11455 = vmatpush3.bf16.msra.mxu1 %v11454_v29 }
0x3498   :  { %v7631_v54 = vpop.f32.mrb[100].mxu1 }
0x3499   :  { %v10939_v55 = vpop.f32.mrb[101].mxu1 }
0x3501   :  { %v7707_v6 = vpop.f32.mrb[72].mxu0 }
0x3502   :  { %7864 = vrot.lane.b32.xlu0 %v7707_v6, %s11894_s16  ;;  %v10944_v58 = vpop.f32.mrb[73].mxu0 }
0x3505   :  { %v7783_v1 = vpop.f32.mrb[102].mxu1 }
0x3506   :  { %7868 = vrot.lane.b32.xlu1 %v7783_v1, %s13687_s18  ;;  %v10949_v10 = vpop.f32.mrb[103].mxu1 }
0x3509   :  { %v7859_v11 = vpop.f32.mrb[74].mxu0 }
0x350a   :  { %7872 = vrot.lane.b32.xlu0 %v7859_v11, %s13688_s25  ;;  %v10954_v12 = vpop.f32.mrb[75].mxu0  ;;  %11706 = vrot.lane.b32.xlu1 %v11705_v21, %s11891_s22 }
0x350e   :  { %11711 = vrot.lane.b32.xlu0 %v11710_v32, %s11891_s22  ;;  %8134 = vrot.lane.b32.xlu1 %v9761_v43, %s11891_s22 }
0x3574   :  { %v7865_v15 = vpop.permute.xlu0 %7864 }
0x3575   :  { %v7875_v19 = vsel %vm158_vm2, %v7631_v54, %v7865_v15 }
0x3578   :  { %v7869_v62 = vpop.permute.xlu1 %7868 }
0x3579   :  { %v7876_v63 = vsel %vm830_vm4, %v7875_v19, %v7869_v62 }
0x357c   :  { %v7873_v23 = vpop.permute.xlu0 %7872 }
0x357d   :  { %v7877_v25 = vsel %vm832_vm5, %v7876_v63, %v7873_v23 }
0x357e   :  { %10964 = vmatmul.mubr.msk.f32.vlgmr.msra.gmra.mrb[104].mxu1 %vm75_vm1, %v7877_v25 }
0x357f   :  { %10990 = vmatprep.mubr.msk.f32.mxu1 %vm75_vm1, %v12973_v42  ;;  %v11707_v42 = vpop.permute.xlu1 %11706 }
0x3580   :  { %v11709_v37 = vunpack.i.h.bf16 %v11707_v42  ;;  %v11708_v34 = vunpack.i.l.bf16 %v11707_v42  ;;  %v11712_v26 = vpop.permute.xlu0 %11711 }
0x3581   :  { %v11714_v17 = vunpack.i.h.bf16 %v11712_v26  ;;  %v11713_v30 = vunpack.i.l.bf16 %v11712_v26 }
0x3582   :  { %v11462_v27 = vpack.c.bf16 %v11709_v37, %v11708_v34 }
0x3583   :  { %v11466_v16 = vpack.c.bf16 %v11714_v17, %v11713_v30 }
0x3584   :  { %11463 = vmatprep.subr.bf16.mxu1 %v11462_v27 }
0x3585   :  { %11465 = vmatpush3.bf16.msra.mxu1 %v11462_v27 }
0x3586   :  { %11467 = vmatprep.subr.bf16.mxu1 %v11466_v16 }
0x3589   :  { %11469 = vmatpush3.bf16.msra.mxu1 %v11466_v16 }
0x358a   :  { %11474 = vmatprep.subr.bf16.mxu1 %v11886_v0 }
0x358c   :  { %10991 = vmatmul.mubr.msk.f32.vlgmr.msra.gmra.mrb[106].mxu1 %vm75_vm1, %v12986_v2  ;;  %v8135_v2 = vpop.permute.xlu1 %8134 }
0x358d   :  { %11004 = vmatprep.mubr.msk.f32.mxu1 %vm11887_vm0, %v11888_v4 }
0x3651   :  { %v7953_v48 = vpop.f32.mrb[104].mxu1 }
0x3652   :  { %v7954_v36 = vadd.f32 %v9748_v38, %v7953_v48  ;;  %v10965_v40 = vpop.f32.mrb[105].mxu1 }
0x3654   :  { %v7957_v41 = vadd.f32 %v7954_v36, %v13199_v22  ;;  %v11460_v22 = vpack.c.bf16 %v9754_v18, %v9753_v28 }
0x3656   :  { %10967 = vmatpush3.msra.mxu0 %v7957_v41 }
0x3657   :  { %10969 = vmatmul.mubr.msk.f32.vlgmr.msra.gmra.mrb[76].mxu0 %vm158_vm2, %v13130_v33  ;;  %11456 = vmatprep.subr.bf16.mxu0 %v11886_v0 }
0x3658   :  { %11458 = vmatpush3.bf16.msra.mxu0 %v11457_v20  ;;  %10979 = vmatprep.mubr.msk.f32.mxu0 %vm11887_vm0, %v11888_v4 }
0x3659   :  { %11459 = vmatprep.subr.bf16.mxu0 %v11886_v0 }
0x365c   :  { %11461 = vmatpush3.bf16.msra.mxu0 %v11460_v22 }
0x365d   :  { %11470 = vmatprep.subr.bf16.mxu0 %v11886_v0 }
0x365f   :  { %v10992_v35 = vpop.f32.mrb[106].mxu1 }
0x3660   :  { %v8209_v49 = vadd.f32 %v10992_v35, %v8135_v2  ;;  %v8203_v50 = vpop.f32.mrb[107].mxu1 }
0x3661   :  { %v8204_v51 = vadd.f32 %v8203_v50, %v8135_v2 }
0x3663   :  { %v11715_v5 = vpack.i.bf16 %v8209_v49, %v8204_v51  ;;  %v11471_v52 = vpack.c.bf16 %v8209_v49, %v8204_v51 }
0x3665   :  { %11716 = vrot.lane.b32.xlu0 %v11715_v5, %s11890_s21  ;;  %11721 = vrot.lane.b32.xlu1 %v11715_v5, %s11892_s23 }
0x3669   :  { %11726 = vrot.lane.b32.xlu0 %v11715_v5, %s11889_s20 }
0x36d7   :  { %v13419_v45 = vpop.permute.xlu0 %11716  ;;  %v13421_v53 = vpop.permute.xlu1 %11721 }
0x36d8   :  { %v11719_v54 = vunpack.i.h.bf16 %v13419_v45  ;;  %v11718_v55 = vunpack.i.l.bf16 %v13419_v45  ;;  %v11724_v56 = vunpack.i.h.bf16 %v13421_v53  ;;  %v11723_v57 = vunpack.i.l.bf16 %v13421_v53 }
0x36da   :  { %v11475_v46 = vpack.c.bf16 %v11719_v54, %v11718_v55  ;;  %v11479_v10 = vpack.c.bf16 %v11724_v56, %v11723_v57 }
0x36db   :  { %v13427_v60 = vpop.permute.xlu0 %11726 }
0x36dc   :  { %v11729_v8 = vunpack.i.h.bf16 %v13427_v60  ;;  %v11728_v29 = vunpack.i.l.bf16 %v13427_v60  ;;  %11477 = vmatpush3.bf16.xpose.msk.msra.mxu1 %vm12171_vm6, %v11475_v46 }
0x36dd   :  { %11482 = vmatprep.subr.bf16.mxu1 %v11886_v0 }
0x36de   :  { %v11483_v11 = vpack.c.bf16 %v11729_v8, %v11728_v29 }
0x372a   :  { %v13404_v44 = vpop.f32.mrb[76].mxu0 }
0x372b   :  { %v13407_v47 = vsub.f32 %v7957_v41, %v13404_v44  ;;  %v10970_v39 = vpop.f32.mrb[77].mxu0 }
0x372d   :  { %10980 = vmatmul.mubr.msk.f32.vlgmr.msra.gmra.mrb[78].mxu0 %vm75_vm1, %v13407_v47 }
0x372e   :  { %10997 = vmatprep.mubr.msk.f32.mxu0 %vm11887_vm0, %v11888_v4  ;;  %11473 = vmatpush3.bf16.xpose.msk.msra.mxu0 %vm12171_vm6, %v11471_v52 }
0x372f   :  { %11478 = vmatprep.subr.bf16.mxu0 %v11886_v0 }
0x3800   :  { %v8114_v6 = vpop.f32.mrb[78].mxu0 }
0x3801   :  { %v8115_v58 = vadd.f32 %v9761_v43, %v8114_v6  ;;  %v10981_v1 = vpop.f32.mrb[79].mxu0 }
0x3803   :  { %8213 = vrot.lane.b32.xlu1 %v8115_v58, %s11890_s21  ;;  %8215 = vrot.lane.b32.xlu0 %v8115_v58, %s11892_s23 }
0x3804   :  { %10998 = vmatmul.mubr.msk.f32.vlgmr.msra.gmra.mrb[80].mxu0 %vm158_vm2, %v8115_v58 }
0x3805   :  { %11481 = vmatpush3.bf16.xpose.msk.msra.mxu0 %vm12171_vm6, %v11479_v10  ;;  %11011 = vmatprep.mubr.msk.f32.mxu0 %vm11887_vm0, %v11888_v4 }
0x3806   :  { %11486 = vmatprep.subr.bf16.mxu0 %v11886_v0 }
0x3807   :  { %8217 = vrot.lane.b32.xlu1 %v8115_v58, %s11889_s20 }
0x3875   :  { %v8214_v12 = vpop.permute.xlu1 %8213  ;;  %v8216_v15 = vpop.permute.xlu0 %8215 }
0x3876   :  { %11005 = vmatmul.mubr.msk.f32.vlgmr.msra.gmra.mrb[108].mxu1 %vm158_vm2, %v8214_v12  ;;  %11012 = vmatmul.mubr.msk.f32.vlgmr.msra.gmra.mrb[82].mxu0 %vm158_vm2, %v8216_v15 }
0x3877   :  { %11485 = vmatpush3.bf16.xpose.msk.msra.mxu1 %vm12171_vm6, %v11483_v11  ;;  %11018 = vmatprep.mubr.msk.f32.mxu1 %vm11887_vm0, %v11888_v4 }
0x3878   :  { %11025 = vmatprep.mubr.msk.f32.mxu0 %vm11887_vm0, %v11888_v4  ;;  %11490 = vmatprep.subr.bf16.mxu1 %v11886_v0 }
0x3879   :  { %v8218_v62 = vpop.permute.xlu1 %8217 }
0x387e   :  { %11019 = vmatmul.mubr.msk.f32.vlgmr.msra.gmra.mrb[110].mxu1 %vm158_vm2, %v8218_v62 }
0x387f   :  { %11032 = vmatprep.mubr.msk.f32.mxu1 %vm11887_vm0, %v11888_v4 }
0x38d7   :  { %v8305_v19 = vpop.f32.mrb[80].mxu0 }
0x38d8   :  { %v8537_v63 = vmul.f32 0.35355338, %v8305_v19  ;;  %v10999_v23 = vpop.f32.mrb[81].mxu0 }
0x38da   :  { %v8541_v14 = vsel %vm1510_vm7, %v8537_v63, -inf }
0x38db   :  { %8542 = vmax.xlane.f32.xlu0 %v8541_v14 }
0x3949   :  { %v8381_v25 = vpop.f32.mrb[108].mxu1  ;;  %v8457_v3 = vpop.f32.mrb[82].mxu0 }
0x394a   :  { %v8538_v24 = vmul.f32 0.35355338, %v8381_v25  ;;  %v8539_v28 = vmul.f32 0.35355338, %v8457_v3  ;;  %v11006_v21 = vpop.f32.mrb[109].mxu1  ;;  %v11013_v18 = vpop.f32.mrb[83].mxu0 }
0x394c   :  { %v8544_v32 = vsel %vm1510_vm7, %v8538_v24, -inf  ;;  %v8547_v20 = vsel %vm1510_vm7, %v8539_v28, -inf }
0x394d   :  { %8545 = vmax.xlane.f32.xlu1 %v8544_v32  ;;  %8548 = vmax.xlane.f32.xlu0 %v8547_v20 }
0x3951   :  { %v8533_v42 = vpop.f32.mrb[110].mxu1 }
0x3952   :  { %v8540_v37 = vmul.f32 0.35355338, %v8533_v42  ;;  %v11020_v34 = vpop.f32.mrb[111].mxu1 }
0x3954   :  { %v8550_v26 = vsel %vm1510_vm7, %v8540_v37, -inf }
0x3955   :  { %8551 = vmax.xlane.f32.xlu0 %v8550_v26  ;;  %v9758_v26 = vld [vmem:[%s13663_s6 + $0x70] sm:$0xff] }
0x395e   :  { %11731 = vrot.lane.b32.xlu1 %v11715_v5, %s11891_s22 }
0x3968   :  { %v8543_v17 = vpop.xlane.xlu0 %8542 }
0x3969   :  { %v8553_v30 = vsub.f32 %v8537_v63, %v8543_v17  ;;  %v9759_v17 = vld [vmem:[%s13663_s6 + $0x78] sm:$0xff] }
0x396b   :  { %v8557_v38 = vmul.f32 1.442695, %v8553_v30  ;;  %v11506_v30 = vpack.c.bf16 %v9759_v17, %v9758_v26  ;;  %v9811_v17 = vld [vmem:[%s13669_s10 + $0xa0] sm:$0xff] }
0x396d   :  { %11864 = vpow2.f32 %v8557_v38 }
0x3977   :  { %v11865_v27 = vpop.eup %11864 }
0x3978   :  { %v8565_v16 = vsel %vm1510_vm7, %v11865_v27, 0.0 }
0x3982   :  { %8566 = vadd.xlane.f32.xlu1 %v8565_v16 }
0x39da   :  { %v8546_v48 = vpop.xlane.xlu1 %8545  ;;  %v8549_v36 = vpop.xlane.xlu0 %8548 }
0x39db   :  { %v8554_v40 = vsub.f32 %v8538_v24, %v8546_v48  ;;  %v8555_v41 = vsub.f32 %v8539_v28, %v8549_v36 }
0x39dd   :  { %v8559_v22 = vmul.f32 1.442695, %v8554_v40  ;;  %v8561_v43 = vmul.f32 1.442695, %v8555_v41 }
0x39de   :  { %v11732_v2 = vpop.permute.xlu1 %11731 }
0x39df   :  { %11866 = vpow2.f32 %v8559_v22  ;;  %v11734_v39 = vunpack.i.h.bf16 %v11732_v2  ;;  %v11733_v35 = vunpack.i.l.bf16 %v11732_v2 }
0x39e0   :  { %11868 = vpow2.f32 %v8561_v43 }
0x39e1   :  { %v11487_v49 = vpack.c.bf16 %v11734_v39, %v11733_v35 }
0x39e2   :  { %v8552_v50 = vpop.xlane.xlu0 %8551 }
0x39e3   :  { %v8556_v51 = vsub.f32 %v8540_v37, %v8552_v50  ;;  %11489 = vmatpush3.bf16.msk.msra.mxu0 %vm12224_vm10, %v11487_v49  ;;  %v9756_v37 = vld [vmem:[%s13663_s6 + $0x60] sm:$0xff] }
0x39e4   :  { %11494 = vmatprep.subr.bf16.mxu0 %v11886_v0  ;;  %v11503_v34 = vpack.c.bf16 %v9757_v7, %v9756_v37  ;;  %v9785_v49 = vld [vmem:[%s13665_s7 + $0x3] ss:$0 sm:$0xff]  ;;  %v9809_v7 = vld [vmem:[%s13669_s10 + $0x90] sm:$0xff] }
0x39e5   :  { %v8563_v5 = vmul.f32 1.442695, %v8556_v51  ;;  %v9788_v51 = vld [vmem:[%s13667_s8 + $0x20] sm:$0xff] }
0x39e7   :  { %11870 = vpow2.f32 %v8563_v5  ;;  %v9789_v5 = vld [vmem:[%s13667_s8 + $0x28] sm:$0xff] }
0x39e9   :  { %v11867_v52 = vpop.eup %11866 }
0x39ea   :  { %v11869_v54 = vpop.eup %11868  ;;  %v8568_v55 = vsel %vm1510_vm7, %v11867_v52, 0.0 }
0x39eb   :  { %8569 = vadd.xlane.f32.xlu0 %v8568_v55  ;;  %v8571_v56 = vsel %vm1510_vm7, %v11869_v54, 0.0 }
0x39ec   :  { %8572 = vadd.xlane.f32.xlu1 %v8571_v56  ;;  %v11509_v56 = vpack.c.bf16 %v9789_v5, %v9788_v51 }
0x39f1   :  { %v11871_v57 = vpop.eup %11870 }
0x39f2   :  { %v8574_v46 = vsel %vm1510_vm7, %v11871_v57, 0.0 }
0x39f3   :  { %8575 = vadd.xlane.f32.xlu0 %v8574_v46 }
0x39fd   :  { %11741 = vrot.lane.b32.xlu1 %v13421_v53, %s11891_s22 }
0x3a01   :  { %11746 = vrot.lane.b32.xlu1 %v13427_v60, %s11891_s22 }
0x3a09   :  { %11736 = vrot.lane.b32.xlu0 %v13419_v45, %s11891_s22 }
0x3a0f   :  { %v8567_v8 = vpop.xlane.xlu1 %8566 }
0x3a10   :  { %11872 = vrcp.f32 %v8567_v8  ;;  %v9794_v8 = vld [vmem:[%s13668_s9 + $0x48] sm:$0xff] }
0x3a1a   :  { %v11873_v29 = vpop.eup %11872 }
0x3a1b   :  { %v8581_v6 = vmul.f32 %v11873_v29, %v11865_v27  ;;  %v9795_v29 = vld [vmem:[%s13668_s9 + $0x50] sm:$0xff] }
0x3a1d   :  { %11026 = vmatmul.mubr.msk.f32.vlgmr.msra.gmra.mrb[84].mxu0 %vm1510_vm7, %v8581_v6 }
0x3a1e   :  { %11039 = vmatprep.mubr.msk.f32.mxu0 %vm11887_vm0, %v11888_v4 }
0x3a78   :  { %v8570_v1 = vpop.xlane.xlu0 %8569 }
0x3a79   :  { %v8573_v58 = vpop.xlane.xlu1 %8572 }
0x3a7a   :  { %11874 = vrcp.f32 %v8573_v58  ;;  %v9796_v58 = vld [vmem:[%s13668_s9 + $0x58] sm:$0xff] }
0x3a7b   :  { %11876 = vrcp.f32 %v8570_v1  ;;  %v11518_v1 = vpack.c.bf16 %v9796_v58, %v9795_v29 }
0x3a7d   :  { %v11742_v53 = vpop.permute.xlu1 %11741 }
0x3a7e   :  { %v11744_v10 = vunpack.i.h.bf16 %v11742_v53  ;;  %v11743_v11 = vunpack.i.l.bf16 %v11742_v53  ;;  %v9797_v53 = vld [vmem:[%s13668_s9 + $0x60] sm:$0xff] }
0x3a80   :  { %v11495_v60 = vpack.c.bf16 %v11744_v10, %v11743_v11  ;;  %v8576_v12 = vpop.xlane.xlu0 %8575  ;;  %v9798_v10 = vld [vmem:[%s13668_s9 + $0x68] sm:$0xff] }
0x3a81   :  { %11878 = vrcp.f32 %v8576_v12  ;;  %v11747_v15 = vpop.permute.xlu1 %11746  ;;  %v11521_v11 = vpack.c.bf16 %v9798_v10, %v9797_v53 }
0x3a82   :  { %11497 = vmatpush3.bf16.msk.msra.mxu0 %vm12224_vm10, %v11495_v60  ;;  %v11749_v25 = vunpack.i.h.bf16 %v11747_v15  ;;  %v11748_v3 = vunpack.i.l.bf16 %v11747_v15 }
0x3a83   :  { %11502 = vmatprep.subr.bf16.mxu0 %v11886_v0 }
0x3a84   :  { %v11875_v45 = vpop.eup %11874  ;;  %v11737_v62 = vpop.permute.xlu0 %11736  ;;  %v11499_v18 = vpack.c.bf16 %v11749_v25, %v11748_v3 }
0x3a85   :  { %v8583_v19 = vmul.f32 %v11875_v45, %v11869_v54  ;;  %v11739_v63 = vunpack.i.h.bf16 %v11737_v62  ;;  %v11738_v23 = vunpack.i.l.bf16 %v11737_v62  ;;  %v11877_v14 = vpop.eup %11876  ;;  %v9799_v62 = vld [vmem:[%s13668_s9 + $0x70] sm:$0xff] }
0x3a86   :  { %v8582_v28 = vmul.f32 %v11877_v14, %v11867_v52 }
0x3a87   :  { %v11491_v24 = vpack.c.bf16 %v11739_v63, %v11738_v23  ;;  %11040 = vmatmul.mubr.msk.f32.vlgmr.msra.gmra.mrb[86].mxu0 %vm1510_vm7, %v8583_v19  ;;  %v9800_v19 = vld [vmem:[%s13668_s9 + $0x78] sm:$0xff] }
0x3a88   :  { %11057 = vmatprep.mubr.msk.f32.mxu0 %vm11887_vm0, %v11888_v4  ;;  %11504 = vmatpush3.bf16.msra.mxu0 %v11503_v34  ;;  %v11524_v63 = vpack.c.bf16 %v9800_v19, %v9799_v62  ;;  %v9810_v34 = vld [vmem:[%s13669_s10 + $0x98] sm:$0xff] }
0x3a89   :  { %11493 = vmatpush3.bf16.msk.msra.mxu1 %vm12224_vm10, %v11491_v24  ;;  %11505 = vmatprep.subr.bf16.mxu0 %v11886_v0  ;;  %v11536_v26 = vpack.c.bf16 %v9810_v34, %v9809_v7 }
0x3a8a   :  { %11498 = vmatprep.subr.bf16.mxu1 %v11886_v0 }
0x3a8b   :  { %v11879_v21 = vpop.eup %11878 }
0x3a8c   :  { %11033 = vmatmul.mubr.msk.f32.vlgmr.msra.gmra.mrb[112].mxu1 %vm1510_vm7, %v8582_v28  ;;  %v8584_v32 = vmul.f32 %v11879_v21, %v11871_v57  ;;  %11507 = vmatpush3.bf16.msra.mxu0 %v11506_v30  ;;  %v9790_v57 = vld [vmem:[%s13667_s8 + $0x30] sm:$0xff]  ;;  %v11884_v28 = vld [vmem:[%s13666_s3] sm:$0xff]  ;;  %v9812_v30 = vld [vmem:[%s13669_s10 + $0xa8] sm:$0xff] }
0x3a8d   :  { %11501 = vmatpush3.bf16.msk.msra.mxu1 %vm12224_vm10, %v11499_v18  ;;  %11046 = vmatprep.mubr.msk.f32.mxu1 %vm11887_vm0, %v11888_v4  ;;  %v9803_v21 = vld [vmem:[%s13669_s10 + $0x60] sm:$0xff]  ;;  %v9804_v18 = vld [vmem:[%s13669_s10 + $0x68] sm:$0xff] }
0x3a8e   :  { %11060 = vmatprep.subr.mxu1 %v11888_v4  ;;  %11514 = vmatprep.subr.bf16.mxu0 %v11886_v0 }
0x3a90   :  { %11047 = vmatmul.mubr.msk.f32.vlgmr.msra.gmra.mrb[114].mxu1 %vm1510_vm7, %v8584_v32  ;;  %v9805_v32 = vld [vmem:[%s13669_s10 + $0x70] sm:$0xff] }
0x3a91   :  { %11062 = vmatprep.mubr.msk.f32.mxu1 %vm11887_vm0, %v11888_v4 }
0x3af0   :  { %v8661_v20 = vpop.f32.mrb[84].mxu0 }
0x3af1   :  { %v11027_v42 = vpop.f32.mrb[85].mxu0 }
0x3af2   :  { %v9808_v42 = vld [vmem:[%s13669_s10 + $0x88] sm:$0xff] }
0x3b5a   :  { %v8821_v38 = vpop.f32.mrb[86].mxu0 }
0x3b5b   :  { %8910 = vrot.lane.b32.xlu1 %v8821_v38, %s13687_s18  ;;  %v11041_v27 = vpop.f32.mrb[87].mxu0  ;;  %v11539_v38 = vpack.c.bf16 %v9812_v30, %v9811_v17 }
0x3b5c   :  { %v9813_v27 = vld [vmem:[%s13669_s10 + $0xb0] sm:$0xff] }
0x3b5f   :  { %v8741_v16 = vpop.f32.mrb[112].mxu1 }
0x3b60   :  { %8906 = vrot.lane.b32.xlu0 %v8741_v16, %s11894_s16  ;;  %v11034_v48 = vpop.f32.mrb[113].mxu1  ;;  %v9814_v16 = vld [vmem:[%s13669_s10 + $0xb8] sm:$0xff] }
0x3b61   :  { %v11542_v48 = vpack.c.bf16 %v9814_v16, %v9813_v27 }
0x3b63   :  { %v8901_v36 = vpop.f32.mrb[114].mxu1 }
0x3b64   :  { %8914 = vrot.lane.b32.xlu0 %v8901_v36, %s13688_s25  ;;  %v11048_v40 = vpop.f32.mrb[115].mxu1 }
0x3bcd   :  { %v8911_v43 = vpop.permute.xlu1 %8910 }
0x3bd2   :  { %v8907_v41 = vpop.permute.xlu0 %8906 }
0x3bd3   :  { %v8917_v22 = vsel %vm158_vm2, %v8661_v20, %v8907_v41 }
0x3bd4   :  { %v8918_v39 = vsel %vm830_vm4, %v8917_v22, %v8911_v43 }
0x3bd6   :  { %v8915_v2 = vpop.permute.xlu0 %8914 }
0x3bd7   :  { %v8919_v35 = vsel %vm832_vm5, %v8918_v39, %v8915_v2  ;;  %v11885_v2 = vld [vmem:[%s13670_s12] ss:$0 sm:$0xff] }
0x3bd8   :  { %11058 = vmatmul.mubr.msk.f32.vlgmr.msra.gmra.mrb[88].mxu0 %vm75_vm1, %v8919_v35 }
0x3bd9   :  { %11092 = vmatprep.mubr.msk.f32.mxu0 %vm11887_vm0, %v11888_v4 }
0x3cab   :  { %v8995_v50 = vpop.f32.mrb[88].mxu0 }
0x3cac   :  { %v8996_v52 = vadd.f32 %v9785_v49, %v8995_v50  ;;  %v11059_v54 = vpop.f32.mrb[89].mxu0 }
0x3cae   :  { %v8999_v55 = vadd.f32 %v8996_v52, %v13407_v47  ;;  %v9791_v47 = vld [vmem:[%s13667_s8 + $0x38] sm:$0xff] }
0x3caf   :  { %v11512_v46 = vpack.c.bf16 %v9791_v47, %v9790_v57  ;;  %v58_v57 = vld [vmem:[%s13672_s2] sm:$0xff] }
0x3cb0   :  { %11061 = vmatpush3.msra.mxu1 %v8999_v55  ;;  %v11550_v47 = vadd.f32 %v12936_v13, %v58_v57 }
0x3cb1   :  { %11063 = vmatmul.mubr.msk.f32.vlgmr.msra.gmra.mrb[116].mxu1 %vm158_vm2, %v13130_v33  ;;  %11508 = vmatprep.subr.bf16.mxu1 %v11886_v0  ;;  %v9793_v33 = vld [vmem:[%s13668_s9 + $0x40] sm:$0xff] }
0x3cb2   :  { %11510 = vmatpush3.bf16.msra.mxu1 %v11509_v56  ;;  %11073 = vmatprep.mubr.msk.f32.mxu1 %vm11887_vm0, %v11888_v4  ;;  %v11515_v6 = vpack.c.bf16 %v9794_v8, %v9793_v33 }
0x3cb3   :  { %11511 = vmatprep.subr.bf16.mxu1 %v11886_v0 }
0x3cb4   :  { %11516 = vmatpush3.bf16.msra.mxu0 %v11515_v6 }
0x3cb5   :  { %11517 = vmatprep.subr.bf16.mxu0 %v11886_v0 }
0x3cb6   :  { %11513 = vmatpush3.bf16.msra.mxu1 %v11512_v46 }
0x3cb7   :  { %11095 = vmatprep.subr.mxu1 %v11888_v4 }
0x3cb8   :  { %11519 = vmatpush3.bf16.msra.mxu0 %v11518_v1 }
0x3cb9   :  { %11520 = vmatprep.subr.bf16.mxu0 %v11886_v0 }
0x3cbc   :  { %11522 = vmatpush3.bf16.msra.mxu0 %v11521_v11 }
0x3cbd   :  { %11523 = vmatprep.subr.bf16.mxu0 %v11886_v0 }
0x3cc0   :  { %11525 = vmatpush3.bf16.msra.mxu0 %v11524_v63 }
0x3cc1   :  { %11526 = vmatprep.subr.bf16.mxu0 %v11886_v0 }
0x3d84   :  { %v9066_v60 = vpop.f32.mrb[116].mxu1 }
0x3d85   :  { %v9070_v12 = vsub.f32 %v8999_v55, %v9066_v60  ;;  %v9302_v45 = vadd.f32 %v9066_v60, %v13404_v44  ;;  %v11064_v15 = vpop.f32.mrb[117].mxu1 }
0x3d87   :  { %11074 = vmatmul.mubr.msk.f32.vlgmr.msra.gmra.mrb[118].mxu1 %vm75_vm1, %v9070_v12 }
0x3d88   :  { %11097 = vmatprep.mubr.msk.f32.mxu1 %vm11887_vm0, %v11888_v4 }
0x3e5a   :  { %v9144_v23 = vpop.f32.mrb[118].mxu1 }
0x3e5b   :  { %v9148_v44 = vmax.f32 %v9144_v23, 0.0  ;;  %v11075_v14 = vpop.f32.mrb[119].mxu1 }
0x3e5d   :  { %11093 = vmatmul.mubr.msk.f32.vlgmr.msra.gmra.mrb[90].mxu0 %vm2128_vm11, %v9148_v44  ;;  %v9665_v44 = vld [vmem:[%s13672_s2 + $0x8] sm:$0xff] }
0x3e5e   :  { %11124 = vmatprep.mubr.msk.f32.mxu0 %vm11887_vm0, %v11888_v4 }
0x3f30   :  { %v9226_v25 = vpop.f32.mrb[90].mxu0 }
0x3f31   :  { %v9230_v3 = vadd.f32 %v9226_v25, %v9070_v12  ;;  %v11094_v24 = vpop.f32.mrb[91].mxu0 }
0x3f33   :  { %11096 = vmatpush3.msra.mxu1 %v9230_v3 }
0x3f34   :  { %11098 = vmatmul.mubr.msk.f32.vlgmr.msra.gmra.mrb[120].mxu1 %vm158_vm2, %v11884_v28  ;;  %11544 = vmatprep.subr.bf16.mxu1 %v11886_v0 }
0x3f35   :  { %11546 = vmatpush3.bf16.msra.mxu1 %v12749_v59  ;;  %11135 = vmatprep.mubr.msk.f32.mxu1 %vm11887_vm0, %v11888_v4  ;;  %v11527_v59 = vpack.c.bf16 %v9804_v18, %v9803_v21  ;;  %v9806_v4 = vld [vmem:[%s13669_s10 + $0x78] sm:$0xff] }
0x3f36   :  { %11547 = vmatprep.subr.bf16.mxu1 %v11886_v0  ;;  %v11530_v20 = vpack.c.bf16 %v9806_v4, %v9805_v32 }
0x3f37   :  { %11528 = vmatpush3.bf16.msra.mxu0 %v11527_v59 }
0x3f38   :  { %11529 = vmatprep.subr.bf16.mxu0 %v11886_v0 }
0x3f39   :  { %11549 = vmatpush3.bf16.msra.mxu1 %v12759_v61  ;;  %v9807_v61 = vld [vmem:[%s13669_s10 + $0x80] sm:$0xff] }
0x3f3a   :  { %v11533_v37 = vpack.c.bf16 %v9808_v42, %v9807_v61 }
0x3f3b   :  { %11531 = vmatpush3.bf16.msra.mxu0 %v11530_v20 }
0x3f3c   :  { %11532 = vmatprep.subr.bf16.mxu0 %v11886_v0 }
0x3f3f   :  { %11534 = vmatpush3.bf16.msra.mxu0 %v11533_v37 }
0x3f40   :  { %11535 = vmatprep.subr.bf16.mxu0 %v11886_v0 }
0x3f43   :  { %11537 = vmatpush3.bf16.msra.mxu0 %v11536_v26 }
0x3f44   :  { %11538 = vmatprep.subr.bf16.mxu0 %v11886_v0 }
0x3f47   :  { %11540 = vmatpush3.bf16.msra.mxu0 %v11539_v38 }
0x3f48   :  { %11541 = vmatprep.subr.bf16.mxu0 %v11886_v0 }
0x3f4b   :  { %11543 = vmatpush3.bf16.msra.mxu0 %v11542_v48 }
0x4007   :  { %v9297_v36 = vpop.f32.mrb[120].mxu1 }
0x4008   :  { %v9301_v40 = vsub.f32 %v9230_v3, %v9297_v36  ;;  %v9303_v41 = vadd.f32 %v9302_v45, %v9297_v36  ;;  %v11099_v22 = vpop.f32.mrb[121].mxu1 }
0x400a   :  { %9319 = vrot.lane.b32.xlu0 %v9303_v41, %s11898_s14  ;;  %v9402_v43 = vsel %vm75_vm1, %v9301_v40, 0.0  ;;  %v9317_v0 = vrot.slane %v9303_v41, 1  ;;  %v9316_v35 = vrot.slane %v9303_v41, 7  ;;  %s11899_s14 = smov 4  }
0x400b   :  { %9403 = vadd.xlane.f32.xlu1 %v9402_v43 }
0x400e   :  { %9323 = vrot.lane.b32.xlu0 %v9317_v0, %s13686_s30 }
0x401c   :  { %4716 = vrot.lane.b32.xlu1 %v11885_v2, %s13686_s30 }
0x407c   :  { %v9320_v39 = vpop.permute.xlu0 %9319 }
0x407d   :  { %v9326_v49 = vsel %vm75_vm1, %v9316_v35, %v9320_v39 }
0x4080   :  { %v9324_v50 = vpop.permute.xlu0 %9323 }
0x4081   :  { %v9327_v51 = vsel %vm2128_vm11, %v9326_v49, %v9324_v50 }
0x4082   :  { %11125 = vmatmul.mubr.msk.f32.vlgmr.msra.gmra.mrb[68].mxu0 %vm2300_vm12, %v9327_v51 }
0x4098   :  { %v9404_v5 = vpop.xlane.xlu1 %9403 }
0x4099   :  { %v9405_v52 = vmul.f32 0.03125, %v9404_v5 }
0x409b   :  { %v9406_v54 = vsub.f32 %v9301_v40, %v9405_v52 }
0x409c   :  { %v4717_v46 = vpop.permute.xlu1 %4716 }
0x409d   :  { %v9407_v55 = vmul.f32 %v9406_v54, %v9406_v54  ;;  %v4789_v29 = vadd.f32 %v12793_v31, %v4717_v46 }
0x409f   :  { %v9408_v56 = vsel %vm75_vm1, %v9407_v55, 0.0 }
0x40a0   :  { %9409 = vadd.xlane.f32.xlu0 %v9408_v56 }
0x40b6   :  { %4793 = vrot.lane.b32.xlu0 %v11550_v47, %s11899_s14 }
0x412d   :  { %v9410_v33 = vpop.xlane.xlu0 %9409 }
0x412e   :  { %v9411_v8 = vmul.f32 0.03125, %v9410_v33 }
0x4130   :  { %v9412_v6 = vadd.f32 1e-05, %v9411_v8 }
0x4131   :  { %v4794_v58 = vpop.permute.xlu0 %4793 }
0x4132   :  { %11880 = vrsqrt.f32 %v9412_v6  ;;  %v4797_v1 = vsel %vm4796_vm13, %v4789_v29, %v4794_v58 }
0x4133   :  { %4798 = vst.msk [vmem:[%s13673_s13] sm:$0xff] %vm158_vm2, %v4797_v1 }
0x413c   :  { %v11881_v13 = vpop.eup %11880 }
0x413d   :  { %v9414_v53 = vmul.f32 %v11881_v13, %v9406_v54 }
0x413f   :  { %v9415_v10 = vmul.f32 %v11885_v2, %v9414_v53 }
0x4141   :  { %v9416_v11 = vadd.f32 %v9415_v10, %v12763_v9 }
0x4143   :  { %v9417_v60 = vsel %vm75_vm1, %v9416_v11, 0.0 }
0x4144   :  { %v9418_v12 = vrot.slane %v9417_v60, 4 }
0x4146   :  { %v9419_v45 = vadd.f32 %v9418_v12, %v9417_v60 }
0x4148   :  { %v9420_v31 = vrot.slane %v9419_v45, 2 }
0x414a   :  { %v9421_v15 = vadd.f32 %v9420_v31, %v9419_v45 }
0x414c   :  { %v9422_v62 = vrot.slane %v9421_v15, 1 }
0x414e   :  { %v9423_v19 = vadd.f32 %v9422_v62, %v9421_v15 }
0x4150   :  { %v9424_v63 = vmul.f32 0.125, %v9423_v19 }
0x4152   :  { %v9425_v23 = vsub.f32 %v9416_v11, %v9424_v63 }
0x4154   :  { %11136 = vmatmul.mubr.msk.f32.vlgmr.msra.gmra.mrb[122].mxu1 %vm75_vm1, %v9425_v23 }
0x4155   :  { %v9397_v14 = vpop.f32.mrb[68].mxu0 }
0x4156   :  { %v11551_v25 = vadd.f32 %v9665_v44, %v9397_v14  ;;  %v11126_v3 = vpop.f32.mrb[69].mxu0 }
0x4158   :  { %9500 = vrot.lane.b32.xlu1 %v11551_v25, %s11899_s14 }
0x41ca   :  { %v9501_v21 = vpop.permute.xlu1 %9500 }
0x4227   :  { %v9495_v9 = vpop.f32.mrb[122].mxu1 }
0x4228   :  { %v9496_v24 = vadd.f32 %v9495_v9, %v4717_v46  ;;  %v11137_v28 = vpop.f32.mrb[123].mxu1 }
0x422a   :  { %v9503_v18 = vsel %vm4796_vm13, %v9496_v24, %v9501_v21 }
0x422b   :  { %9817 = vst.msk [vmem:[%s13673_s13 + $0x8] sm:$0xff] %vm158_vm2, %v9503_v18 }

</bundles_post_ra>
